<compile_context>
chip_gen: v7x
topology: tpu7x:2x2x1
jax: 0.10.0
libtpu: 0.0.40
codegen_flags: <defaults>
</compile_context>

<pallas_src>
import functools

import numpy as np
import jax
import jax.numpy as jnp
from jax.experimental import pallas as pl
from jax.experimental.pallas import tpu as pltpu

# ----------------------------- configuration --------------------------------
N_AGENTS = 4
N_ENTITIES = 8
ENTITY_SHAPE = 12
N_ACTIONS = 4
ENTITY_LAST_ACTION = True
ENTITY_DIM = ENTITY_SHAPE + (N_ACTIONS if ENTITY_LAST_ACTION else 0)   # 16
HYPERNET_EMBED = 32
MIXING_EMBED_DIM = 8
N_HEADS = 4
HEAD_DIM = HYPERNET_EMBED // N_HEADS

NA, NE, NH, HD = N_AGENTS, N_ENTITIES, N_HEADS, HEAD_DIM
H_EMB, E_MIX = HYPERNET_EMBED, MIXING_EMBED_DIM

# Lane widths of the flattened (lane-dense) in-kernel tensors.
Q_W = NA * H_EMB              # 128   q lanes, order (agent i, head h, dim d)
K_W = NE * NA * H_EMB         # 1024  expanded k lanes, order (j, i, h, d)
V_W = NE * H_EMB              # 256   v lanes, order (j, h, d)
SCORE_W = NA * NH * NE        # 128   score lanes, order (i, h, key j)
PROD_W = NA * NE * NH * HD    # 1024  weighted-sum product lanes, (i, j, h, d)
OUT_W = NA * E_MIX            # 32    output lanes, order (i, e)


# ------------------------------- kernel -------------------------------------
def _attention_hypernet_kernel(ents_ref, emask_ref, w1_ref, b1_ref, wqkv_ref,
                               mmask_ref, r_ref, s_ref, e_ref, gwf_ref, bf_ref,
                               out_ref):
    f32 = jnp.float32
    x = ents_ref[...].astype(f32)                                   # (bm, NE*D)

    # fc1 (block-diagonal over entities) + ReLU: one full-width MXU matmul.
    x1 = jnp.maximum(
        jnp.dot(x, w1_ref[...], preferred_element_type=f32) + b1_ref[...],
        0.0)                                                        # (bm, NE*H)

    # in_trans (no bias), block-diagonal per entity.  Column layout:
    #   [ q (agent queries only, 128) | k expanded over agents (1024) | v (256) ]
    qkv = jnp.dot(x1, wqkv_ref[...], preferred_element_type=f32)    # (bm, 1408)
    q = qkv[:, :Q_W]                                                # (i, h, d)
    k_exp = qkv[:, Q_W:Q_W + K_W]                                   # (j, i, h, d)
    v = qkv[:, Q_W + K_W:]                                          # (j, h, d)

    # Masks expanded to lane layout with one tiny matmul:
    #   memb[:, :SCORE_W] lane (i,h,j): emask[i] + emask[j]  (>0.5 == masked)
    #   memb[:, SCORE_W:] lane (i,e)  : emask[i]             (post mask)
    memb = jnp.dot(emask_ref[...].astype(f32), mmask_ref[...],
                   preferred_element_type=f32)                      # (bm, 160)
    attn_masked = memb[:, :SCORE_W] > 0.5                           # (bm, 128)
    out_masked = memb[:, SCORE_W:] > 0.5                            # (bm, 32)

    # Scores: q tiled along lanes (whole-vreg copies) to match k's expanded
    # (j, i, h, d) layout; head-dim reduction + 1/sqrt(hd) scaling is a
    # constant matmul producing (bm, 128) scores in (i, h, j) order.
    q_exp = jnp.concatenate([q] * NE, axis=-1)                      # (bm, 1024)
    scores = jnp.dot(q_exp * k_exp, r_ref[...],
                     preferred_element_type=f32)                    # (bm, 128)

    # Masked softmax over each contiguous 8-lane key group.  A single per-row
    # max is a valid shift for every group (softmax is shift invariant), so no
    # per-group max (which would need relayouts) is required.
    logits = jnp.where(attn_masked, -1e30, scores)
    row_max = jnp.max(logits, axis=-1, keepdims=True)
    p = jnp.exp(logits - row_max)
    denom = jnp.dot(p, s_ref[...], preferred_element_type=f32)      # group sums
    denom = jnp.maximum(denom, 1e-30)                               # no NaN path
    w = p * pl.reciprocal(denom, approx=True)
    w = jnp.where(attn_masked, 0.0, w)       # exact zeros; fully-masked rows -> 0

    # Weighted sum over keys + fused out_trans+fc2: w is expanded to the
    # (i, j, h, d) product layout with a constant matmul, v with whole-vreg
    # tiling; the key-dim reduction is folded into gwf (= G @ kron(I_NA, wout@w2)).
    w_exp = jnp.dot(w, e_ref[...], preferred_element_type=f32)      # (bm, 1024)
    v_exp = jnp.concatenate([v] * NA, axis=-1)                      # (bm, 1024)
    y = jnp.dot(w_exp * v_exp, gwf_ref[...],
                preferred_element_type=f32) + bf_ref[...]           # (bm, NA*E)

    out_ref[...] = jnp.where(out_masked, 0.0, y)


# ---------------------- offline constant construction ------------------------
@functools.lru_cache(maxsize=None)
def _index_constants():
    """Constant 0/1 layout/reduction matrices (built once, kept resident)."""
    # score lanes (i, h, j)
    sc = np.arange(SCORE_W)
    sc_i, sc_h, sc_j = sc // (NH * NE), (sc // NE) % NH, sc % NE
    # score-product lanes (j, i, h, d)
    pr = np.arange(PROD_W)
    pr_j, pr_i, pr_h = pr // (NA * H_EMB), (pr // H_EMB) % NA, (pr // HD) % NH
    # r_mat: head-dim reduction + 1/sqrt(hd): rows (j,i,h,d) -> cols (i,h,j)
    r_mat = ((pr_i[:, None] == sc_i) & (pr_h[:, None] == sc_h)
             & (pr_j[:, None] == sc_j)).astype(np.float32) / np.sqrt(HD)
    # s_mat: per-(i,h) group sum broadcast back across the 8 key lanes
    s_mat = ((sc_i[:, None] == sc_i) & (sc_h[:, None] == sc_h)).astype(np.float32)
    # output-product lanes (i, j, h, d)
    op = np.arange(PROD_W)
    op_i, op_j, op_h = op // (NE * H_EMB), (op // H_EMB) % NE, (op // HD) % NH
    # e_mat: expand attention weights (i,h,j) -> (i,j,h,d)
    e_mat = ((sc_i[:, None] == op_i) & (sc_h[:, None] == op_h)
             & (sc_j[:, None] == op_j)).astype(np.float32)
    # mmask: entity mask (NE,) -> [attn mask lanes (i,h,j) | output mask (i,e)]
    ent = np.arange(NE)[:, None]
    m_attn = (ent == sc_i).astype(np.float32) + (ent == sc_j).astype(np.float32)
    oc = np.arange(OUT_W)
    m_out = (ent == (oc // E_MIX)).astype(np.float32)
    mmask = np.concatenate([m_attn, m_out], axis=1)                 # (NE, 160)
    # selector for gwf: rows (i,j,h,d), cols (i',e) need i==i'
    gsel = (op_i[:, None] == (oc // E_MIX)[None, :]).astype(np.float32)
    hd_idx = op % H_EMB                                             # = h*HD + d
    col_e = np.tile(np.arange(E_MIX), NA)
    return (jnp.asarray(r_mat), jnp.asarray(s_mat), jnp.asarray(e_mat),
            jnp.asarray(mmask), jnp.asarray(gsel), hd_idx, col_e)


def _prepare_operands(params):
    """Block-diagonal / expanded weights built offline from the module params."""
    f32 = jnp.float32
    w1, b1, win, wout, bout, w2, b2 = (jnp.asarray(a, dtype=f32) for a in params)
    wq, wk, wv = win[:, :H_EMB], win[:, H_EMB:2 * H_EMB], win[:, 2 * H_EMB:]
    eye = jnp.eye(NE, dtype=f32)

    w1_bd = jnp.kron(eye, w1)                               # (NE*D, NE*H)
    b1_bd = jnp.tile(b1, (1, NE))                           # (1, NE*H)
    wq_bd = jnp.kron(eye[:, :NA], wq)                       # (NE*H, NA*H)
    wk_exp = jnp.kron(eye, jnp.tile(wk, (1, NA)))           # (NE*H, NE*NA*H)
    wv_bd = jnp.kron(eye, wv)                               # (NE*H, NE*H)
    wqkv = jnp.concatenate([wq_bd, wk_exp, wv_bd], axis=1)  # (NE*H, 1408)

    wf = wout @ w2                                          # fused out_trans+fc2
    bf = bout @ w2 + b2                                     # (1, E)
    r_mat, s_mat, e_mat, mmask, gsel, hd_idx, col_e = _index_constants()
    gwf = gsel * wf[hd_idx][:, col_e]                       # (PROD_W, NA*E)
    bf_bd = jnp.tile(bf, (1, NA))                           # (1, NA*E)
    return w1_bd, b1_bd, wqkv, mmask, r_mat, s_mat, e_mat, gwf, bf_bd


# ------------------------------- wrapper -------------------------------------
def _choose_blocking(B, block_b):
    """Pick a batch block that divides B (no padded copy) with >=2 grid steps."""
    cap = min(block_b, B)
    cands = [bm for bm in range((cap // 8) * 8, 0, -8) if B % bm == 0]
    for bm in cands:
        if B // bm >= 2:
            return bm, B
    if cands:
        return cands[0], B
    if B <= block_b:
        return B, B                       # single full block (full-dim exception)
    bm = max(8, (cap // 8) * 8)           # ragged fallback: pad
    return bm, ((B + bm - 1) // bm) * bm


def attention_hypernet(entities, entity_mask, params, mode='matrix',
                       block_b=256, input_dtype=jnp.float32):
    """entities: [B, NE, D]; entity_mask: [B, NE] (1 == masked/absent)."""
    B, ne, D = entities.shape
    assert ne == NE and D == ENTITY_DIM
    (w1_bd, b1_bd, wqkv, mmask, r_mat, s_mat, e_mat, gwf, bf_bd
     ) = _prepare_operands(params)

    ents2d = entities.reshape(B, NE * D).astype(input_dtype)   # lane-dense (B, 128)
    emask = entity_mask.astype(jnp.float32)

    bm, Bp = _choose_blocking(B, block_b)
    if Bp != B:   # ragged fallback only; common shapes never copy/pad
        ents2d = jnp.concatenate(
            [ents2d, jnp.zeros((Bp - B, NE * D), ents2d.dtype)], axis=0)
        emask = jnp.concatenate(
            [emask, jnp.ones((Bp - B, NE), jnp.float32)], axis=0)
    grid_b = Bp // bm

    def const_spec(a):
        return pl.BlockSpec(a.shape, lambda i: (0,) * a.ndim)

    out = pl.pallas_call(
        _attention_hypernet_kernel,
        out_shape=jax.ShapeDtypeStruct((Bp, OUT_W), jnp.float32),
        grid=(grid_b,),
        in_specs=[
            pl.BlockSpec((bm, NE * D), lambda i: (i, 0)),     # entities
            pl.BlockSpec((bm, NE), lambda i: (i, 0)),         # entity mask
            const_spec(w1_bd), const_spec(b1_bd), const_spec(wqkv),
            const_spec(mmask), const_spec(r_mat), const_spec(s_mat),
            const_spec(e_mat), const_spec(gwf), const_spec(bf_bd),
        ],
        out_specs=pl.BlockSpec((bm, OUT_W), lambda i: (i, 0)),
        compiler_params=pltpu.CompilerParams(
            dimension_semantics=("parallel",),
            vmem_limit_bytes=48 * 1024 * 1024),
    )(ents2d, emask, w1_bd, b1_bd, wqkv, mmask, r_mat, s_mat, e_mat, gwf,
      bf_bd)

    x3 = out[:B].reshape(B, NA, E_MIX)
    if mode == 'vector':
        return x3.mean(axis=1)
    elif mode == 'alt_vector':
        return x3.mean(axis=2)
    elif mode == 'scalar':
        return x3.mean(axis=(1, 2))
    return x3


# ------------------------- pure-JAX reference --------------------------------
def reference(entities, entity_mask, params):
    w1, b1, win, wout, bout, w2, b2 = params
    B, ne, _ = entities.shape
    x1 = jax.nn.relu(entities @ w1 + b1)
    agent_mask = entity_mask[:, :NA]
    attn_mask = 1.0 - jnp.einsum('ba,be->bae', 1.0 - agent_mask, 1.0 - entity_mask)
    qkv = x1 @ win
    q = qkv[:, :NA, :H_EMB].reshape(B, NA, NH, HD)
    k = qkv[:, :, H_EMB:2 * H_EMB].reshape(B, ne, NH, HD)
    v = qkv[:, :, 2 * H_EMB:].reshape(B, ne, NH, HD)
    logits = jnp.einsum('bqhd,bkhd->bhqk', q, k) / (HD ** 0.5)
    maskb = attn_mask[:, None, :, :] > 0.5
    logits = jnp.where(maskb, -jnp.inf, logits)
    w = jax.nn.softmax(logits, axis=-1)
    w = jnp.where(jnp.isnan(w), 0.0, w)
    o = jnp.einsum('bhqk,bkhd->bqhd', w, v).reshape(B, NA, H_EMB)
    x2 = o @ wout + bout
    x2 = jnp.where(agent_mask[:, :, None] > 0.5, 0.0, x2)
    x3 = x2 @ w2 + b2
    x3 = jnp.where(agent_mask[:, :, None] > 0.5, 0.0, x3)
    return x3


# --------------------------------- main ---------------------------------------
if __name__ == "__main__":
    key = jax.random.PRNGKey(0)
    ks = jax.random.split(key, 9)

    B, D, H, E = 64, ENTITY_DIM, HYPERNET_EMBED, MIXING_EMBED_DIM

    # Deterministic parameters (weights stored [in, out]; biases [1, out]).
    w1 = 0.1 * jax.random.normal(ks[0], (D, H), jnp.float32)
    b1 = 0.1 * jax.random.normal(ks[1], (1, H), jnp.float32)
    win = 0.1 * jax.random.normal(ks[2], (H, 3 * H), jnp.float32)
    wout = 0.1 * jax.random.normal(ks[3], (H, H), jnp.float32)
    bout = 0.1 * jax.random.normal(ks[4], (1, H), jnp.float32)
    w2 = 0.1 * jax.random.normal(ks[5], (H, E), jnp.float32)
    b2 = 0.1 * jax.random.normal(ks[6], (1, E), jnp.float32)
    params = (w1, b1, win, wout, bout, w2, b2)

    entities = jax.random.normal(ks[7], (B, NE, D), jnp.float32)
    # 1 == masked/absent entity; the first N_AGENTS entries are the agents.
    entity_mask = (jax.random.uniform(ks[8], (B, NE)) < 0.3).astype(jnp.float32)
    entity_mask = entity_mask.at[:, 0].set(0.0)   # keep agent 0 alive everywhere

    # f32 run (block_b=256 -> bm=32, grid=(2,): both TCs get work, no padding).
    out = attention_hypernet(entities, entity_mask, params, mode='matrix')
    out = jax.block_until_ready(out)
    ref = reference(entities, entity_mask, params)
    assert out.shape == (B, N_AGENTS, E)
    err = float(jnp.max(jnp.abs(out - ref)))
    # Tolerance covers the fused out_trans+fc2 weights and the EUP approximate
    # reciprocal in the softmax; real layout/mask bugs would be >> 1e-2.
    assert jnp.allclose(out, ref, atol=5e-3, rtol=5e-3), f"f32 mismatch: {err}"

    # bf16 entity stream (memory-bound win on v6e/v7x); accumulation stays f32.
    out_bf16 = attention_hypernet(entities, entity_mask, params, mode='matrix',
                                  input_dtype=jnp.bfloat16)
    out_bf16 = jax.block_until_ready(out_bf16)
    err_bf16 = float(jnp.max(jnp.abs(out_bf16 - ref)))
    assert err_bf16 < 0.1, f"bf16 mismatch: {err_bf16}"

    print("KERNEL_OK")
</pallas_src>

<mosaic_0001>
module attributes {stable_mosaic.version = 11 : i64} {
  func.func @_attention_hypernet_kernel(%arg0: i32, %arg1: memref<32x128xf32, #tpu.memory_space<vmem>>, %arg2: memref<32x8xf32, #tpu.memory_space<vmem>>, %arg3: memref<128x256xf32, #tpu.memory_space<vmem>>, %arg4: memref<1x256xf32, #tpu.memory_space<vmem>>, %arg5: memref<256x1408xf32, #tpu.memory_space<vmem>>, %arg6: memref<8x160xf32, #tpu.memory_space<vmem>>, %arg7: memref<1024x128xf32, #tpu.memory_space<vmem>>, %arg8: memref<128x128xf32, #tpu.memory_space<vmem>>, %arg9: memref<128x1024xf32, #tpu.memory_space<vmem>>, %arg10: memref<1024x32xf32, #tpu.memory_space<vmem>>, %arg11: memref<1x32xf32, #tpu.memory_space<vmem>>, %arg12: memref<32x32xf32, #tpu.memory_space<vmem>>) attributes {dimension_semantics = [#tpu.dimension_semantics<parallel>], iteration_bounds = array<i64: 2>, scalar_prefetch = 0 : i64, scratch_operands = 0 : i64, tpu.core_type = #tpu.core_type<tc>, window_params = [{transform_indices = @transform_0, window_bounds = array<i64: 32, 128>}, {transform_indices = @transform_1, window_bounds = array<i64: 32, 8>}, {pipeline_mode = #tpu.pipeline_mode<synchronous>, transform_indices = @transform_2, window_bounds = array<i64: 128, 256>}, {pipeline_mode = #tpu.pipeline_mode<synchronous>, transform_indices = @transform_3, window_bounds = array<i64: 1, 256>}, {pipeline_mode = #tpu.pipeline_mode<synchronous>, transform_indices = @transform_4, window_bounds = array<i64: 256, 1408>}, {pipeline_mode = #tpu.pipeline_mode<synchronous>, transform_indices = @transform_5, window_bounds = array<i64: 8, 160>}, {pipeline_mode = #tpu.pipeline_mode<synchronous>, transform_indices = @transform_6, window_bounds = array<i64: 1024, 128>}, {pipeline_mode = #tpu.pipeline_mode<synchronous>, transform_indices = @transform_7, window_bounds = array<i64: 128, 128>}, {pipeline_mode = #tpu.pipeline_mode<synchronous>, transform_indices = @transform_8, window_bounds = array<i64: 128, 1024>}, {pipeline_mode = #tpu.pipeline_mode<synchronous>, transform_indices = @transform_9, window_bounds = array<i64: 1024, 32>}, {pipeline_mode = #tpu.pipeline_mode<synchronous>, transform_indices = @transform_10, window_bounds = array<i64: 1, 32>}, {transform_indices = @transform_11, window_bounds = array<i64: 32, 32>}]} {
    %c0 = arith.constant 0 : index
    %c0_0 = arith.constant 0 : index
    %0 = vector.load %arg1[%c0, %c0_0] : memref<32x128xf32, #tpu.memory_space<vmem>>, vector<32x128xf32>
    %c0_1 = arith.constant 0 : index
    %c0_2 = arith.constant 0 : index
    %1 = vector.load %arg3[%c0_1, %c0_2] : memref<128x256xf32, #tpu.memory_space<vmem>>, vector<128x256xf32>
    %cst = arith.constant dense<0.000000e+00> : vector<32x256xf32>
    %2 = tpu.matmul %0, %1, %cst {dimension_numbers = #tpu.dot_dimension_numbers<[1], [0], [0], [1], [0, 0, 1, 1], [], []>} : vector<32x128xf32>, vector<128x256xf32>, vector<32x256xf32> -> vector<32x256xf32>
    %c0_3 = arith.constant 0 : index
    %c0_4 = arith.constant 0 : index
    %3 = vector.load %arg4[%c0_3, %c0_4] : memref<1x256xf32, #tpu.memory_space<vmem>>, vector<1x256xf32>
    %4 = vector.broadcast %3 : vector<1x256xf32> to vector<32x256xf32>
    %5 = arith.addf %2, %4 : vector<32x256xf32>
    %cst_5 = arith.constant 0.000000e+00 : f32
    %6 = vector.broadcast %cst_5 : f32 to vector<32x256xf32>
    %7 = arith.maximumf %5, %6 : vector<32x256xf32>
    %c0_6 = arith.constant 0 : index
    %c0_7 = arith.constant 0 : index
    %8 = vector.load %arg5[%c0_6, %c0_7] : memref<256x1408xf32, #tpu.memory_space<vmem>>, vector<256x1408xf32>
    %cst_8 = arith.constant dense<0.000000e+00> : vector<32x1408xf32>
    %9 = tpu.matmul %7, %8, %cst_8 {dimension_numbers = #tpu.dot_dimension_numbers<[1], [0], [0], [1], [0, 0, 1, 1], [], []>} : vector<32x256xf32>, vector<256x1408xf32>, vector<32x1408xf32> -> vector<32x1408xf32>
    %10 = vector.extract_strided_slice %9 {offsets = [0, 0], sizes = [32, 128], strides = [1, 1]} : vector<32x1408xf32> to vector<32x128xf32>
    %11 = vector.extract_strided_slice %9 {offsets = [0, 128], sizes = [32, 1024], strides = [1, 1]} : vector<32x1408xf32> to vector<32x1024xf32>
    %12 = vector.extract_strided_slice %9 {offsets = [0, 1152], sizes = [32, 256], strides = [1, 1]} : vector<32x1408xf32> to vector<32x256xf32>
    %c0_9 = arith.constant 0 : index
    %c0_10 = arith.constant 0 : index
    %13 = vector.load %arg2[%c0_9, %c0_10] : memref<32x8xf32, #tpu.memory_space<vmem>>, vector<32x8xf32>
    %c0_11 = arith.constant 0 : index
    %c0_12 = arith.constant 0 : index
    %14 = vector.load %arg6[%c0_11, %c0_12] : memref<8x160xf32, #tpu.memory_space<vmem>>, vector<8x160xf32>
    %cst_13 = arith.constant dense<0.000000e+00> : vector<32x160xf32>
    %15 = tpu.matmul %13, %14, %cst_13 {dimension_numbers = #tpu.dot_dimension_numbers<[1], [0], [0], [1], [0, 0, 1, 1], [], []>} : vector<32x8xf32>, vector<8x160xf32>, vector<32x160xf32> -> vector<32x160xf32>
    %16 = vector.extract_strided_slice %15 {offsets = [0, 0], sizes = [32, 128], strides = [1, 1]} : vector<32x160xf32> to vector<32x128xf32>
    %cst_14 = arith.constant 5.000000e-01 : f32
    %17 = vector.broadcast %cst_14 : f32 to vector<32x128xf32>
    %18 = arith.cmpf ogt, %16, %17 : vector<32x128xf32>
    %19 = vector.extract_strided_slice %15 {offsets = [0, 128], sizes = [32, 32], strides = [1, 1]} : vector<32x160xf32> to vector<32x32xf32>
    %cst_15 = arith.constant 5.000000e-01 : f32
    %20 = vector.broadcast %cst_15 : f32 to vector<32x32xf32>
    %21 = arith.cmpf ogt, %19, %20 : vector<32x32xf32>
    %22 = tpu.concatenate %10, %10, %10, %10, %10, %10, %10, %10 in 1 : vector<32x128xf32>, vector<32x128xf32>, vector<32x128xf32>, vector<32x128xf32>, vector<32x128xf32>, vector<32x128xf32>, vector<32x128xf32>, vector<32x128xf32> -> vector<32x1024xf32>
    %23 = arith.mulf %22, %11 : vector<32x1024xf32>
    %c0_16 = arith.constant 0 : index
    %c0_17 = arith.constant 0 : index
    %24 = vector.load %arg7[%c0_16, %c0_17] : memref<1024x128xf32, #tpu.memory_space<vmem>>, vector<1024x128xf32>
    %cst_18 = arith.constant dense<0.000000e+00> : vector<32x128xf32>
    %25 = tpu.matmul %23, %24, %cst_18 {dimension_numbers = #tpu.dot_dimension_numbers<[1], [0], [0], [1], [0, 0, 1, 1], [], []>} : vector<32x1024xf32>, vector<1024x128xf32>, vector<32x128xf32> -> vector<32x128xf32>
    %cst_19 = arith.constant -1.000000e+30 : f32
    %26 = vector.broadcast %cst_19 : f32 to vector<32x128xf32>
    %27 = arith.select %18, %26, %25 : vector<32x128xi1>, vector<32x128xf32>
    %cst_20 = arith.constant dense<0xFF800000> : vector<32xf32>
    %28 = vector.multi_reduction <maximumf>, %27, %cst_20 [1] : vector<32x128xf32> to vector<32xf32>
    %29 = vector.shape_cast %28 : vector<32xf32> to vector<32x1xf32>
    %30 = vector.broadcast %29 : vector<32x1xf32> to vector<32x128xf32>
    %31 = arith.subf %27, %30 : vector<32x128xf32>
    %32 = math.exp %31 : vector<32x128xf32>
    %c0_21 = arith.constant 0 : index
    %c0_22 = arith.constant 0 : index
    %33 = vector.load %arg8[%c0_21, %c0_22] : memref<128x128xf32, #tpu.memory_space<vmem>>, vector<128x128xf32>
    %cst_23 = arith.constant dense<0.000000e+00> : vector<32x128xf32>
    %34 = tpu.matmul %32, %33, %cst_23 {dimension_numbers = #tpu.dot_dimension_numbers<[1], [0], [0], [1], [0, 0, 1, 1], [], []>} : vector<32x128xf32>, vector<128x128xf32>, vector<32x128xf32> -> vector<32x128xf32>
    %cst_24 = arith.constant 1.000000e-30 : f32
    %35 = vector.broadcast %cst_24 : f32 to vector<32x128xf32>
    %36 = arith.maximumf %34, %35 : vector<32x128xf32>
    %37 = tpu.reciprocal %36 {approx = true} : vector<32x128xf32> -> vector<32x128xf32>
    %38 = arith.mulf %32, %37 : vector<32x128xf32>
    %cst_25 = arith.constant 0.000000e+00 : f32
    %39 = vector.broadcast %cst_25 : f32 to vector<32x128xf32>
    %40 = arith.select %18, %39, %38 : vector<32x128xi1>, vector<32x128xf32>
    %c0_26 = arith.constant 0 : index
    %c0_27 = arith.constant 0 : index
    %41 = vector.load %arg9[%c0_26, %c0_27] : memref<128x1024xf32, #tpu.memory_space<vmem>>, vector<128x1024xf32>
    %cst_28 = arith.constant dense<0.000000e+00> : vector<32x1024xf32>
    %42 = tpu.matmul %40, %41, %cst_28 {dimension_numbers = #tpu.dot_dimension_numbers<[1], [0], [0], [1], [0, 0, 1, 1], [], []>} : vector<32x128xf32>, vector<128x1024xf32>, vector<32x1024xf32> -> vector<32x1024xf32>
    %43 = tpu.concatenate %12, %12, %12, %12 in 1 : vector<32x256xf32>, vector<32x256xf32>, vector<32x256xf32>, vector<32x256xf32> -> vector<32x1024xf32>
    %44 = arith.mulf %42, %43 : vector<32x1024xf32>
    %c0_29 = arith.constant 0 : index
    %c0_30 = arith.constant 0 : index
    %45 = vector.load %arg10[%c0_29, %c0_30] : memref<1024x32xf32, #tpu.memory_space<vmem>>, vector<1024x32xf32>
    %cst_31 = arith.constant dense<0.000000e+00> : vector<32x32xf32>
    %46 = tpu.matmul %44, %45, %cst_31 {dimension_numbers = #tpu.dot_dimension_numbers<[1], [0], [0], [1], [0, 0, 1, 1], [], []>} : vector<32x1024xf32>, vector<1024x32xf32>, vector<32x32xf32> -> vector<32x32xf32>
    %c0_32 = arith.constant 0 : index
    %c0_33 = arith.constant 0 : index
    %47 = vector.load %arg11[%c0_32, %c0_33] : memref<1x32xf32, #tpu.memory_space<vmem>>, vector<1x32xf32>
    %48 = vector.broadcast %47 : vector<1x32xf32> to vector<32x32xf32>
    %49 = arith.addf %46, %48 : vector<32x32xf32>
    %cst_34 = arith.constant 0.000000e+00 : f32
    %50 = vector.broadcast %cst_34 : f32 to vector<32x32xf32>
    %51 = arith.select %21, %50, %49 : vector<32x32xi1>, vector<32x32xf32>
    %c0_35 = arith.constant 0 : index
    %c0_36 = arith.constant 0 : index
    %52 = vector.load %arg12[%c0_35, %c0_36] : memref<32x32xf32, #tpu.memory_space<vmem>>, vector<32x32xf32>
    tpu.vector_store %arg12[%c0_35, %c0_36], %51 {strides = array<i32>} : memref<32x32xf32, #tpu.memory_space<vmem>>, vector<32x32xf32>,
    return
  }
  func.func @transform_0(%arg0: i32) -> (i32, i32) {
    %c0_i32 = arith.constant 0 : i32
    %c0_i32_0 = arith.constant 0 : i32
    return %arg0, %c0_i32 : i32, i32
  }
  func.func @transform_1(%arg0: i32) -> (i32, i32) {
    %c0_i32 = arith.constant 0 : i32
    %c0_i32_0 = arith.constant 0 : i32
    return %arg0, %c0_i32 : i32, i32
  }
  func.func @transform_2(%arg0: i32) -> (i32, i32) {
    %c0_i32 = arith.constant 0 : i32
    %c0_i32_0 = arith.constant 0 : i32
    %c0_i32_1 = arith.constant 0 : i32
    return %c0_i32, %c0_i32_0 : i32, i32
  }
  func.func @transform_3(%arg0: i32) -> (i32, i32) {
    %c0_i32 = arith.constant 0 : i32
    %c0_i32_0 = arith.constant 0 : i32
    %c0_i32_1 = arith.constant 0 : i32
    return %c0_i32, %c0_i32_0 : i32, i32
  }
  func.func @transform_4(%arg0: i32) -> (i32, i32) {
    %c0_i32 = arith.constant 0 : i32
    %c0_i32_0 = arith.constant 0 : i32
    %c0_i32_1 = arith.constant 0 : i32
    return %c0_i32, %c0_i32_0 : i32, i32
  }
  func.func @transform_5(%arg0: i32) -> (i32, i32) {
    %c0_i32 = arith.constant 0 : i32
    %c0_i32_0 = arith.constant 0 : i32
    %c0_i32_1 = arith.constant 0 : i32
    return %c0_i32, %c0_i32_0 : i32, i32
  }
  func.func @transform_6(%arg0: i32) -> (i32, i32) {
    %c0_i32 = arith.constant 0 : i32
    %c0_i32_0 = arith.constant 0 : i32
    %c0_i32_1 = arith.constant 0 : i32
    return %c0_i32, %c0_i32_0 : i32, i32
  }
  func.func @transform_7(%arg0: i32) -> (i32, i32) {
    %c0_i32 = arith.constant 0 : i32
    %c0_i32_0 = arith.constant 0 : i32
    %c0_i32_1 = arith.constant 0 : i32
    return %c0_i32, %c0_i32_0 : i32, i32
  }
  func.func @transform_8(%arg0: i32) -> (i32, i32) {
    %c0_i32 = arith.constant 0 : i32
    %c0_i32_0 = arith.constant 0 : i32
    %c0_i32_1 = arith.constant 0 : i32
    return %c0_i32, %c0_i32_0 : i32, i32
  }
  func.func @transform_9(%arg0: i32) -> (i32, i32) {
    %c0_i32 = arith.constant 0 : i32
    %c0_i32_0 = arith.constant 0 : i32
    %c0_i32_1 = arith.constant 0 : i32
    return %c0_i32, %c0_i32_0 : i32, i32
  }
  func.func @transform_10(%arg0: i32) -> (i32, i32) {
    %c0_i32 = arith.constant 0 : i32
    %c0_i32_0 = arith.constant 0 : i32
    %c0_i32_1 = arith.constant 0 : i32
    return %c0_i32, %c0_i32_0 : i32, i32
  }
  func.func @transform_11(%arg0: i32) -> (i32, i32) {
    %c0_i32 = arith.constant 0 : i32
    %c0_i32_0 = arith.constant 0 : i32
    return %arg0, %c0_i32 : i32, i32
  }
}

</mosaic_0001>

<bundles_post_ra>
// kernel: tpu_custom_call.1
= control target key start
LH: loop header
LB: loop body
LE: loop exit
PB: predicated region body
PF: predicated region fallthrough
CT: control target
= control target key end

     0   :  { %s6443_s0 = inlined_call_operand.hbm [shape: f32[64,128], index: 0, kind: input, shape index: {}]   ;;  %s6444_s1 = inlined_call_operand.vmem [shape: f32[64,8], index: 1, kind: input, shape index: {}]   ;;  %s6445_s2 = inlined_call_operand.hbm [shape: f32[128,256], index: 2, kind: input, shape index: {}]   ;;  %s6446_s3 = inlined_call_operand.hbm [shape: f32[1,256], index: 3, kind: input, shape index: {}]   ;;  %s6447_s4 = inlined_call_operand.hbm [shape: f32[256,1408], index: 4, kind: input, shape index: {}]   ;;  %s6448_s5 = inlined_call_operand.hbm [shape: f32[8,160], index: 5, kind: input, shape index: {}]   ;;  %s6449_s6 = inlined_call_operand.hbm [shape: f32[1024,128], index: 6, kind: input, shape index: {}]   ;;  %s6450_s7 = inlined_call_operand.hbm [shape: f32[128,128], index: 7, kind: input, shape index: {}]   ;;  %s6451_s8 = inlined_call_operand.hbm [shape: f32[128,1024], index: 8, kind: input, shape index: {}]   ;;  %s6452_s9 = inlined_call_operand.vmem [shape: f32[1024,32], index: 9, kind: input, shape index: {}]   ;;  %s6453_s10 = inlined_call_operand.hbm [shape: f32[1,32], index: 10, kind: input, shape index: {}]   ;;  %s6454_s11 = inlined_call_operand.vmem [shape: f32[64,32], index: 11, kind: output, shape index: {}]  }
   0x1   :  { %6464 = sst [smem:[#allocation21_spill]] %s6444_s1 }
   0x2   :  { %6465 = sst [smem:[#allocation22_spill]] %s6452_s9 }
   0x3   :  { %6466 = sst [smem:[#allocation23_spill]] %s6454_s11 }
   0x4   :  { %16 = vsyncpa [#allocation3], 0 }
   0x5   :  { %18 = vsyncpa [#allocation3 + $0x1], 0 }
   0x6   :  { %19 = vsyncpa [#allocation5], 0 }
   0x7   :  { %20 = vsyncpa [#allocation8], 0 }
   0x8   :  { %21 = vsyncpa [#allocation11], 0 }
   0x9   :  { %22 = vsyncpa [#allocation14], 0  ;;  %s5332_s17 = smov 0   ;;  %s5334_s18 = smov 0  }
   0xa   :  { %s5336_s19 = smov 0   ;;  %s5338_s20 = smov 0  }
   0xb LB: > { %s5254_s21 = smov [#allocation4]   ;;  %s6455_s23 = sadd.s32 4294967295, %s5252_s20   ;;  %s5252_s20 = sphi %s5338_s20, %s6493_s20   ;;  %s5248_s19 = sphi %s5336_s19, %s6492_s19   ;;  %s5244_s18 = sphi %s5334_s18, %s6491_s18   ;;  %s5240_s17 = sphi %s5332_s17, %s6490_s17  }
   0xc   : > { %s312_s22 = sshll.u32 %s5254_s21, 4  ;;  %p3482_p0 = scmp.ge.s32.totalorder %s5252_s20, 1  ;;  %s5361_s22 = int_to_ptr.vmem [resolvable:$true] %s312_s22 }
   0xd   : > { %p5356_p1 = scmp.eq.s32.totalorder %s6455_s23, 0  ;;  %p300_p2 = scmp.lt.s32.totalorder %s5252_s20, 3 }
   0xe   : > { %s5255_s26 = smov [#allocation7]   ;;  %s5256_s29 = smov [#allocation10]  }
   0xf   : > { %s6467_s24 = scalar_select %p5356_p1, 1, 0 }
  0x10   : > { %p5363_p3 = pnand %p3482_p0, %p300_p2  ;;  %s336_s27 = sshll.u32 %s5255_s26, 4  ;;  %s5375_s27 = int_to_ptr.vmem [resolvable:$true] %s336_s27 }
  0x11   : > { %s5377_s30 = sshll.u32 %s5256_s29, 4  ;;  %s4948_s14 = scalar_lea.hbm %s6445_s2, 4096  ;;  %s361_s30 = int_to_ptr.vmem [resolvable:$true] %s5377_s30 }
  0x12   : > { %s6468_s25 = scalar_select %p5363_p3, 1, 0 }
  0x13   : > { %p4837_p4 = pneg %p5363_p3  ;;  %p4949_p6 = scmp.ne.s32.totalorder %s6445_s2, %s4948_s14 }
  0x14   : > { %p4955_p10 = scmp.lt.u32.totalorder %s4948_s14, %s6445_s2 }
  0x15   : > { %p5371_p5 = pnand %p4837_p4, %p5356_p1 }
  0x17   : > { %p5387_p7 = pneg %p5371_p5 }
  0x19   : > { %p4951_p8 = pnand %p5387_p7, %p4949_p6 }
  0x1b   : > { %p4952_p9 = pneg %p4951_p8 }
  0x1d   : > { %p4957_p11 = pnand %p4955_p10, %p4952_p9 }
  0x1f   : > { %4960 = shalt.err (!%p4957_p11)
}
  0x20   : > { %s4961_s12 = scalar_lea.vmem %s5361_s22, 4096  ;;  %p4969_p2 = scmp.lt.s32.totalorder %s5361_s22, %s5361_s22 }
  0x21   : > { %p4962_p12 = scmp.ne.s32.totalorder %s5361_s22, %s4961_s12  ;;  %p4970_p4 = scmp.lt.s32.totalorder %s4961_s12, %s4961_s12 }
  0x23   : > { %p4964_p13 = pnand %p4962_p12, %p5387_p7  ;;  %p4971_p6 = por %p4970_p4, %p4969_p2 }
  0x25   : > { %p4965_p0 = pneg %p4964_p13 }
  0x27   : > { %p4972_p8 = pnand %p4971_p6, %p4965_p0 }
  0x29   : > { %4975 = shalt.err (!%p4972_p8)
}
  0x2a   : > { %s5257_s13 = smov 256   ;;  %s5258_s14 = smov 16  }
  0x2b   : > { %4840 = dma.hbm_to_vmem [thread:$0]  (!%p5371_p5), %s6445_s2, 4096, %s5361_s22, [#allocation5], %s5257_s13, %s5257_s13, %s5258_s14  }
  0x2c   : > { %s4976_s23 = scalar_lea.hbm %s6447_s4, 45056 }
  0x2d   : > { %p4977_p9 = scmp.ne.s32.totalorder %s6447_s4, %s4976_s23  ;;  %p4983_p12 = scmp.lt.u32.totalorder %s4976_s23, %s6447_s4 }
  0x2f   : > { %p4979_p10 = pnand %p4977_p9, %p5387_p7 }
  0x31   : > { %p4980_p11 = pneg %p4979_p10 }
  0x33   : > { %p4985_p13 = pnand %p4983_p12, %p4980_p11 }
  0x35   : > { %4988 = shalt.err (!%p4985_p13)
}
  0x36   : > { %s4989_s22 = scalar_lea.vmem %s5375_s27, 45056  ;;  %p4997_p6 = scmp.lt.s32.totalorder %s5375_s27, %s5375_s27 }
  0x37   : > { %p4990_p0 = scmp.ne.s32.totalorder %s5375_s27, %s4989_s22  ;;  %p4998_p8 = scmp.lt.s32.totalorder %s4989_s22, %s4989_s22 }
  0x39   : > { %p4992_p2 = pnand %p4990_p0, %p5387_p7  ;;  %p4999_p9 = por %p4998_p8, %p4997_p6 }
  0x3b   : > { %p4993_p4 = pneg %p4992_p2 }
  0x3d   : > { %p5000_p10 = pnand %p4999_p9, %p4993_p4 }
  0x3f   : > { %5003 = shalt.err (!%p5000_p10)
}
  0x40   : > { %s5259_s9 = smov 1408   ;;  %s5260_s1 = smov 88  }
  0x41   : > { %4846 = dma.hbm_to_vmem [thread:$0]  (!%p5371_p5), %s6447_s4, 45056, %s5375_s27, [#allocation8], %s5259_s9, %s5259_s9, %s5260_s1  }
  0x42   : > { %s5004_s15 = scalar_lea.hbm %s6449_s6, 16384 }
  0x43   : > { %p5005_p11 = scmp.ne.s32.totalorder %s6449_s6, %s5004_s15  ;;  %p5011_p0 = scmp.lt.u32.totalorder %s5004_s15, %s6449_s6 }
  0x45   : > { %p5007_p12 = pnand %p5005_p11, %p5387_p7 }
  0x47   : > { %p5008_p13 = pneg %p5007_p12 }
  0x49   : > { %p5013_p2 = pnand %p5011_p0, %p5008_p13 }
  0x4b   : > { %5016 = shalt.err (!%p5013_p2)
}
  0x4c   : > { %s5017_s22 = scalar_lea.vmem %s361_s30, 16384  ;;  %p5025_p9 = scmp.lt.s32.totalorder %s361_s30, %s361_s30 }
  0x4d   : > { %p5018_p4 = scmp.ne.s32.totalorder %s361_s30, %s5017_s22  ;;  %p5026_p10 = scmp.lt.s32.totalorder %s5017_s22, %s5017_s22 }
  0x4f   : > { %p5020_p6 = pnand %p5018_p4, %p5387_p7  ;;  %p5027_p3 = por %p5026_p10, %p5025_p9 }
  0x51   : > { %p5021_p8 = pneg %p5020_p6 }
  0x53   : > { %p5028_p1 = pnand %p5027_p3, %p5021_p8 }
  0x55   : > { %5031 = shalt.err (!%p5028_p1)
}
  0x56   : > { %s6460_s27 = smov 128   ;;  %s6462_s9 = smov 8  }
  0x57   : > { %4852 = dma.hbm_to_vmem [thread:$0]  (!%p5371_p5), %s6449_s6, 16384, %s361_s30, [#allocation11], %s6460_s27, %s6460_s27, %s6462_s9  }
  0x58   : > { %s5263_s23 = smov [#allocation13]   ;;  %s5032_s16 = scalar_lea.hbm %s6451_s8, 16384 }
  0x59   : > { %s386_s13 = sshll.u32 %s5263_s23, 4  ;;  %p5033_p1 = scmp.ne.s32.totalorder %s6451_s8, %s5032_s16  ;;  %s387_s13 = int_to_ptr.vmem [resolvable:$true] %s386_s13 }
  0x5a   : > { %p5039_p12 = scmp.lt.u32.totalorder %s5032_s16, %s6451_s8 }
  0x5b   : > { %p5035_p3 = pnand %p5033_p1, %p5387_p7 }
  0x5d   : > { %p5036_p11 = pneg %p5035_p3 }
  0x5f   : > { %p5041_p13 = pnand %p5039_p12, %p5036_p11 }
  0x61   : > { %5044 = shalt.err (!%p5041_p13)
}
  0x62   : > { %s5045_s30 = scalar_lea.vmem %s387_s13, 16384  ;;  %p5053_p6 = scmp.lt.s32.totalorder %s387_s13, %s387_s13 }
  0x63   : > { %p5046_p0 = scmp.ne.s32.totalorder %s387_s13, %s5045_s30  ;;  %p5054_p8 = scmp.lt.s32.totalorder %s5045_s30, %s5045_s30 }
  0x65   : > { %p5048_p2 = pnand %p5046_p0, %p5387_p7  ;;  %p5055_p9 = por %p5054_p8, %p5053_p6 }
  0x67   : > { %p5049_p4 = pneg %p5048_p2 }
  0x69   : > { %p5056_p10 = pnand %p5055_p9, %p5049_p4 }
  0x6b   : > { %5059 = shalt.err (!%p5056_p10)
}
  0x6c   : > { %s5264_s1 = smov 1024   ;;  %s5265_s11 = smov 64  }
  0x6d   : > { %4858 = dma.hbm_to_vmem [thread:$0]  (!%p5371_p5), %s6451_s8, 16384, %s387_s13, [#allocation14], %s5264_s1, %s5264_s1, %s5265_s11  }
  0x6e   : > { %s5266_s15 = smov [#allocation6]   ;;  %s5267_s26 = smov [#allocation9]  }
  0x6f   : > { %s326_s16 = sshll.u32 %s5266_s15, 4  ;;  %s350_s29 = sshll.u32 %s5267_s26, 4  ;;  %s327_s16 = int_to_ptr.vmem [resolvable:$true] %s326_s16  ;;  %s5471_s29 = int_to_ptr.vmem [resolvable:$true] %s350_s29 }
  0x70   : > { %s5060_s30 = scalar_lea.hbm %s6446_s3, 32 }
  0x71   : > { %p5061_p1 = scmp.ne.s32.totalorder %s6446_s3, %s5060_s30  ;;  %p5067_p12 = scmp.lt.u32.totalorder %s5060_s30, %s6446_s3 }
  0x73   : > { %p5063_p3 = pnand %p5061_p1, %p5387_p7 }
  0x75   : > { %p5064_p11 = pneg %p5063_p3 }
  0x77   : > { %p5069_p13 = pnand %p5067_p12, %p5064_p11 }
  0x79   : > { %5072 = shalt.err (!%p5069_p13)
}
  0x7a   : > { %s5073_s1 = scalar_lea.vmem %s327_s16, 32  ;;  %p5081_p6 = scmp.lt.s32.totalorder %s327_s16, %s327_s16 }
  0x7b   : > { %p5074_p0 = scmp.ne.s32.totalorder %s327_s16, %s5073_s1  ;;  %p5082_p8 = scmp.lt.s32.totalorder %s5073_s1, %s5073_s1 }
  0x7d   : > { %p5076_p2 = pnand %p5074_p0, %p5387_p7  ;;  %p5083_p9 = por %p5082_p8, %p5081_p6 }
  0x7f   : > { %p5077_p4 = pneg %p5076_p2 }
  0x81   : > { %p5084_p10 = pnand %p5083_p9, %p5077_p4 }
  0x83   : > { %5087 = shalt.err (!%p5084_p10)
}
  0x84   : > { %4843 = dma.hbm_to_vmem [thread:$0]  (!%p5371_p5), %s6446_s3, 32, %s327_s16, [#allocation5]  }
  0x85   : > { %s5088_s15 = scalar_lea.hbm %s6448_s5, 256 }
  0x86   : > { %p5089_p1 = scmp.ne.s32.totalorder %s6448_s5, %s5088_s15  ;;  %p5095_p12 = scmp.lt.u32.totalorder %s5088_s15, %s6448_s5 }
  0x88   : > { %p5091_p3 = pnand %p5089_p1, %p5387_p7 }
  0x8a   : > { %p5092_p11 = pneg %p5091_p3 }
  0x8c   : > { %p5097_p13 = pnand %p5095_p12, %p5092_p11 }
  0x8e   : > { %5100 = shalt.err (!%p5097_p13)
}
  0x8f   : > { %s5101_s16 = scalar_lea.vmem %s5471_s29, 256  ;;  %p5109_p6 = scmp.lt.s32.totalorder %s5471_s29, %s5471_s29 }
  0x90   : > { %p5102_p0 = scmp.ne.s32.totalorder %s5471_s29, %s5101_s16  ;;  %p5110_p8 = scmp.lt.s32.totalorder %s5101_s16, %s5101_s16 }
  0x92   : > { %p5104_p2 = pnand %p5102_p0, %p5387_p7  ;;  %p5111_p9 = por %p5110_p8, %p5109_p6 }
  0x94   : > { %p5105_p4 = pneg %p5104_p2 }
  0x96   : > { %p5112_p10 = pnand %p5111_p9, %p5105_p4 }
  0x98   : > { %5115 = shalt.err (!%p5112_p10)
}
  0x99   : > { %4849 = dma.hbm_to_vmem [thread:$0]  (!%p5371_p5), %s6448_s5, 256, %s5471_s29, [#allocation8]  }
  0x9a   : > { %s5268_s1 = smov [#allocation12]   ;;  %s5269_s9 = smov [#allocation15]  }
  0x9b   : > { %s373_s27 = sshll.u32 %s5268_s1, 4  ;;  %s403_s11 = sshll.u32 %s5269_s9, 4  ;;  %s374_s27 = int_to_ptr.vmem [resolvable:$true] %s373_s27  ;;  %s5514_s11 = int_to_ptr.vmem [resolvable:$true] %s403_s11 }
  0x9c   : > { %s5116_s26 = scalar_lea.hbm %s6450_s7, 2048 }
  0x9d   : > { %p5117_p1 = scmp.ne.s32.totalorder %s6450_s7, %s5116_s26  ;;  %p5123_p12 = scmp.lt.u32.totalorder %s5116_s26, %s6450_s7 }
  0x9f   : > { %p5119_p3 = pnand %p5117_p1, %p5387_p7 }
  0xa1   : > { %p5120_p11 = pneg %p5119_p3 }
  0xa3   : > { %p5125_p13 = pnand %p5123_p12, %p5120_p11 }
  0xa5   : > { %5128 = shalt.err (!%p5125_p13)
}
  0xa6   : > { %s5129_s16 = scalar_lea.vmem %s374_s27, 2048  ;;  %p5137_p6 = scmp.lt.s32.totalorder %s374_s27, %s374_s27 }
  0xa7   : > { %p5130_p0 = scmp.ne.s32.totalorder %s374_s27, %s5129_s16  ;;  %p5138_p8 = scmp.lt.s32.totalorder %s5129_s16, %s5129_s16 }
  0xa9   : > { %p5132_p2 = pnand %p5130_p0, %p5387_p7  ;;  %p5139_p9 = por %p5138_p8, %p5137_p6 }
  0xab   : > { %p5133_p4 = pneg %p5132_p2 }
  0xad   : > { %p5140_p10 = pnand %p5139_p9, %p5133_p4 }
  0xaf   : > { %5143 = shalt.err (!%p5140_p10)
}
  0xb0   : > { %s6471_s23 = smov 8   ;;  %s6472_s13 = smov 128  }
  0xb1   : > { %4855 = dma.hbm_to_vmem [thread:$0]  (!%p5371_p5), %s6450_s7, 2048, %s374_s27, [#allocation11], %s6472_s13, %s6472_s13, %s6471_s23  }
  0xb2   : > { %s5144_s26 = scalar_lea.hbm %s6453_s10, 16 }
  0xb3   : > { %p5145_p1 = scmp.ne.s32.totalorder %s6453_s10, %s5144_s26  ;;  %p5151_p12 = scmp.lt.u32.totalorder %s5144_s26, %s6453_s10 }
  0xb5   : > { %p5147_p3 = pnand %p5145_p1, %p5387_p7 }
  0xb7   : > { %p5148_p11 = pneg %p5147_p3 }
  0xb9   : > { %p5153_p13 = pnand %p5151_p12, %p5148_p11 }
  0xbb   : > { %5156 = shalt.err (!%p5153_p13)
}
  0xbc   : > { %s5157_s27 = scalar_lea.vmem %s5514_s11, 16  ;;  %s5164_s16 = scalar_lea.vmem %s5514_s11, 32 }
  0xbd   : > { %p5158_p0 = scmp.ne.s32.totalorder %s5514_s11, %s5157_s27  ;;  %p5165_p6 = scmp.lt.s32.totalorder %s5514_s11, %s5514_s11 }
  0xbe   : > { %p5166_p8 = scmp.lt.s32.totalorder %s5164_s16, %s5157_s27 }
  0xbf   : > { %p5160_p2 = pnand %p5158_p0, %p5387_p7 }
  0xc0   : > { %p5167_p9 = por %p5166_p8, %p5165_p6 }
  0xc1   : > { %p5161_p4 = pneg %p5160_p2 }
  0xc3   : > { %p5168_p10 = pnand %p5167_p9, %p5161_p4 }
  0xc5   : > { %5171 = shalt.err (!%p5168_p10)
}
  0xc6   : > { %4861 = dma.hbm_to_vmem [thread:$0]  (!%p5371_p5), %s6453_s10, 16, %s5514_s11, [#allocation14]  }
  0xc7   : > { %s5562_s21 = sadd.s32 1, %s5252_s20   ;;  %s35_s28 = sadd.s32 1, %s5248_s19 }
  0xc8   : > { %s32_s14 = ssub.s32 %s5252_s20, %s5562_s21  ;;  %p42_p7 = scmp.ne.s32.totalorder %s5248_s19, %s5244_s18 }
  0xc9   : > { %p33_p1 = scmp.eq.s32.totalorder %s32_s14, 0  ;;  %p43_p3 = scmp.eq.s32.totalorder %s5252_s20, 0 }
  0xca   : > { %p48_p11 = scmp.ne.s32.totalorder %s5244_s18, %s5240_s17  ;;  %p4874_p12 = scmp.lt.s32.totalorder %s5252_s20, 2 }
  0xcb   : > { %s5574_s15 = scalar_select %p33_p1, %s5248_s19, %s35_s28  }
  0xcc   : > { %p44_p13 = por %p43_p3, %p42_p7  ;;  %p6473_p0 = scmp.ne.s32.totalorder %s6467_s24, 0 }
  0xcd   : > { %s414_s12 = sand.u32 1, %s5248_s19   ;;  %s3548_s11 = sshll.u32 %s5252_s20, 9 }
  0xce   : > { %p5578_p2 = por %p6473_p0, %p48_p11  ;;  %s3492_s22 = sshll.u32 %s414_s12, 5 }
  0xcf   : > { %s5587_s27 = scalar_lea.hbm %s6443_s0, %s3548_s11  ;;  %s418_s17 = scalar_lea.vmem [#allocation2], %s3492_s22 }
  0xd0   : > { %s425_s16 = sshll.u32 %s418_s17, 4  ;;  %p5589_p5 = pnand %p4874_p12, %p44_p13  ;;  %s5593_s16 = int_to_ptr.vmem [resolvable:$true] %s425_s16 }
  0xd1   : > { %s5595_s9 = scalar_lea.sflag [#allocation3], %s414_s12  ;;  %s5172_s28 = scalar_lea.hbm %s5587_s27, 512 }
  0xd2   : > { %p5173_p4 = scmp.ne.s32.totalorder %s5587_s27, %s5172_s28  ;;  %p5174_p6 = pneg %p5589_p5 }
  0xd3   : > { %s5177_s22 = scalar_lea.hbm %s6443_s0, 1024  ;;  %p5178_p10 = scmp.lt.u32.totalorder %s5587_s27, %s6443_s0 }
  0xd4   : > { %p5175_p8 = pnand %p5174_p6, %p5173_p4  ;;  %p5179_p7 = scmp.lt.u32.totalorder %s5177_s22, %s5172_s28 }
  0xd5   : > { %p5181_p3 = scmp.lt.u32.totalorder %s5172_s28, %s5587_s27 }
  0xd6   : > { %p5176_p9 = pneg %p5175_p8  ;;  %p5180_p1 = por %p5179_p7, %p5178_p10 }
  0xd8   : > { %p5182_p11 = por %p5181_p3, %p5180_p1 }
  0xda   : > { %p5183_p12 = pnand %p5182_p11, %p5176_p9 }
  0xdc   : > { %5186 = shalt.err (!%p5183_p12)
}
  0xdd   : > { %s5187_s12 = scalar_lea.vmem %s5593_s16, 512  ;;  %s5270_s17 = smov [#allocation2]  }
  0xde   : > { %p5188_p13 = scmp.ne.s32.totalorder %s5593_s16, %s5187_s12  ;;  %s5192_s14 = sshll.u32 %s5270_s17, 4  ;;  %s5193_s14 = int_to_ptr.vmem [resolvable:$false] %s5192_s14 }
  0xdf   : > { %s5194_s11 = scalar_lea.vmem %s5193_s14, 1024  ;;  %p5195_p8 = scmp.lt.s32.totalorder %s5593_s16, %s5193_s14 }
  0xe0   : > { %p5190_p0 = pnand %p5188_p13, %p5174_p6  ;;  %p5196_p10 = scmp.lt.s32.totalorder %s5194_s11, %s5187_s12 }
  0xe2   : > { %p5191_p4 = pneg %p5190_p0  ;;  %p5197_p7 = por %p5196_p10, %p5195_p8 }
  0xe4   : > { %p5198_p1 = pnand %p5197_p7, %p5191_p4 }
  0xe6   : > { %5201 = shalt.err (!%p5198_p1)
}
  0xe7   : > { %4865 = dma.hbm_to_vmem [thread:$0]  (!%p5589_p5), %s5587_s27, 512, %s5593_s16, %s5595_s9, %s6472_s13, %s6472_s13, %s6471_s23  }
  0xe8   : > { %p6476_p6 = scmp.ne.s32.totalorder %s6468_s25, 0 }
  0xe9   : > { %s448_s28 = sand.u32 (!%p6476_p6), 1, %s5244_s18  }
  0xea   : > { %446 = sbr.rel (%p6476_p6) target bundleno = 1936 (0x790), region = 64  ;;  %s3496_s22 = sshll.u32 (!%p6476_p6), %s448_s28, 5 }
  0xeb   : > { %s449_s30 = scalar_lea.sflag (!%p6476_p6), [#allocation3], %s448_s28  ;;  %s5629_s29 = scalar_lea.vmem (!%p6476_p6), [#allocation2], %s3496_s22 }
  0xf1   : > { %5219 = dma.done.wait (%p5578_p2), %s449_s30, 512  }
  0xf2   : > { %5221 = vsyncadd (%p5578_p2), %s449_s30, 4294966784  ;;  %p6477_p9 = scmp.ne.s32.totalorder %s6467_s24, 0 }
  0xf4   : > { %5223 = dma.done.wait (%p6477_p9), [#allocation5], 4128  }
  0xf5   : > { %5225 = vsyncadd (%p6477_p9), [#allocation5], 4294963168 }
  0xf6   : > { %5227 = dma.done.wait (%p6477_p9), [#allocation8], 45312  }
  0xf7   : > { %5229 = vsyncadd (%p6477_p9), [#allocation8], 4294921984 }
  0xf8   : > { %5231 = dma.done.wait (%p6477_p9), [#allocation11], 18432  }
  0xf9   : > { %5233 = vsyncadd (%p6477_p9), [#allocation11], 4294948864 }
  0xfa   : > { %5235 = dma.done.wait (%p6477_p9), [#allocation14], 16400  }
  0xfb   : > { %5237 = vsyncadd (%p6477_p9), [#allocation14], 4294950896  ;;  %v5271_v0 = vmov 0.0   ;;  %v546_v1 = vld [vmem:[#allocation4 + $0x8] sm:$0xff]  ;;  %v548_v2 = vld [vmem:[#allocation4 + $0x18] sm:$0xff]  ;;  %s6478_s24 = sadd.s32 4294967295, %s5252_s20  }
  0xfc   : > { %653 = vmatprep.mubr.f32.mxu0 %v5271_v0  ;;  %v545_v3 = vld [vmem:[#allocation4] sm:$0xff]  ;;  %v4003_v4 = vpack.c.bf16 %v548_v2, %v546_v1  ;;  %v547_v5 = vld [vmem:[#allocation4 + $0x10] sm:$0xff]  ;;  %v550_v6 = vld [vmem:[#allocation4 + $0x28] sm:$0xff]  ;;  %s3505_s25 = sshll.u32 %s6478_s24, 2  ;;  %s6479_s26 = sld [smem:[#allocation21_spill]]  ;;  %vm1574_vm0 = vcmask 64512  }
  0xfd   : > { %v552_v7 = vld [vmem:[#allocation4 + $0x38] sm:$0xff]  ;;  %v4005_v8 = vpack.c.bf16 %v547_v5, %v545_v3  ;;  %v549_v10 = vld [vmem:[#allocation4 + $0x20] sm:$0xff]  ;;  %v551_v11 = vld [vmem:[#allocation4 + $0x30] sm:$0xff]  ;;  %p530_p2 = scmp.lt.s32.totalorder %s3505_s25, 7  ;;  %s6488_s9 = sld [smem:[#allocation22_spill]]  ;;  %vm3320_vm9 = vcmask 261120  }
  0xfe   : > { %v4007_v9 = vpack.c.bf16 %v552_v7, %v550_v6  ;;  %v554_v12 = vld [vmem:[#allocation4 + $0x48] sm:$0xff]  ;;  %4004 = vmatprep.subr.bf16.mxu0 %v4003_v4  ;;  %v556_v13 = vld [vmem:[#allocation4 + $0x58] sm:$0xff]  ;;  %v4009_v14 = vpack.c.bf16 %v551_v11, %v549_v10  ;;  %v553_v16 = vld [vmem:[#allocation4 + $0x40] sm:$0xff]  ;;  %s6489_s17 = sld [smem:[#allocation23_spill]] }
  0xff   : > { %4006 = vmatpush1.bf16.msra.mxu0 %v4005_v8  ;;  %v4011_v15 = vpack.c.bf16 %v556_v13, %v554_v12  ;;  %v555_v17 = vld [vmem:[#allocation4 + $0x50] sm:$0xff]  ;;  %v558_v18 = vld [vmem:[#allocation4 + $0x68] sm:$0xff]  ;;  %v560_v19 = vld [vmem:[#allocation4 + $0x78] sm:$0xff]  ;;  %s6495_s25 = smov (!%p530_p2, %s3505_s25), 7 }
 0x100   : > { %4008 = vmatprep.subr.bf16.mxu0 %v4007_v9  ;;  %v4013_v20 = vpack.c.bf16 %v555_v17, %v553_v16  ;;  %v4015_v21 = vpack.c.bf16 %v560_v19, %v558_v18  ;;  %v557_v22 = vld [vmem:[#allocation4 + $0x60] sm:$0xff]  ;;  %v559_v23 = vld [vmem:[#allocation4 + $0x70] sm:$0xff]  ;;  %v562_v24 = vld [vmem:[#allocation4 + $0x88] sm:$0xff]  ;;  %s3506_s20 = sshll.u32 %s6495_s25, 3 }
 0x101   : > { %v564_v25 = vld [vmem:[#allocation4 + $0x98] sm:$0xff]  ;;  %v4017_v26 = vpack.c.bf16 %v559_v23, %v557_v22  ;;  %v561_v27 = vld [vmem:[#allocation4 + $0x80] sm:$0xff]  ;;  %v687_v28 = vld [vmem:[#allocation7 + $0x8] sm:$0xff] }
 0x102   : > { %v698_v29 = vld [vmem:[#allocation7 + $0x60] sm:$0xff]  ;;  %v4019_v30 = vpack.c.bf16 %v564_v25, %v562_v24  ;;  %v563_v31 = vld [vmem:[#allocation4 + $0x90] sm:$0xff]  ;;  %v697_v34 = vld [vmem:[#allocation7 + $0x58] sm:$0xff]  ;;  %s5737_s27 = scalar_lea.vmem %s6479_s26, %s3506_s20 }
 0x103   : > { %4010 = vmatpush1.bf16.msra.mxu0 %v4009_v14  ;;  %v4035_v32 = vpack.c.bf16 %v698_v29, %v687_v28  ;;  %v686_v33 = vld [vmem:[#allocation7] sm:$0xff]  ;;  %v568_v36 = vld [vmem:[#allocation4 + $0xb8] sm:$0xff]  ;;  %v4021_v40 = vpack.c.bf16 %v563_v31, %v561_v27  ;;  %v719_v44 = vld [vmem:[#allocation7 + $0x108] sm:$0xff] }
 0x104   : > { %4012 = vmatprep.subr.bf16.mxu0 %v4011_v15  ;;  %v566_v35 = vld [vmem:[#allocation4 + $0xa8] sm:$0xff]  ;;  %v4037_v37 = vpack.c.bf16 %v697_v34, %v686_v33  ;;  %v709_v38 = vld [vmem:[#allocation7 + $0xb8] sm:$0xff]  ;;  %v720_v39 = vld [vmem:[#allocation7 + $0x110] sm:$0xff]  ;;  %s6416_s14 = scalar_lea.vmem %s6489_s17, %s3506_s20 }
 0x105   : > { %4036 = vmatprep.subr.bf16.mxu1 %v4035_v32  ;;  %v565_v41 = vld [vmem:[#allocation4 + $0xa0] sm:$0xff]  ;;  %v4039_v42 = vpack.c.bf16 %v720_v39, %v709_v38  ;;  %v708_v43 = vld [vmem:[#allocation7 + $0xb0] sm:$0xff]  ;;  %v4023_v45 = vpack.c.bf16 %v568_v36, %v566_v35  ;;  %v731_v48 = vld [vmem:[#allocation7 + $0x168] sm:$0xff] }
 0x106   : > { %4038 = vmatpush1.bf16.msra.mxu1 %v4037_v37  ;;  %v567_v46 = vld [vmem:[#allocation4 + $0xb0] sm:$0xff]  ;;  %v4041_v47 = vpack.c.bf16 %v719_v44, %v708_v43  ;;  %v742_v49 = vld [vmem:[#allocation7 + $0x1c0] sm:$0xff]  ;;  %v572_v51 = vld [vmem:[#allocation4 + $0xd8] sm:$0xff] }
 0x107   : > { %4014 = vmatpush1.bf16.msra.mxu0 %v4013_v20  ;;  %v570_v50 = vld [vmem:[#allocation4 + $0xc8] sm:$0xff]  ;;  %4040 = vmatprep.subr.bf16.mxu1 %v4039_v42  ;;  %v4043_v52 = vpack.c.bf16 %v742_v49, %v731_v48  ;;  %v741_v54 = vld [vmem:[#allocation7 + $0x1b8] sm:$0xff]  ;;  %v4025_v55 = vpack.c.bf16 %v567_v46, %v565_v41  ;;  %v764_v59 = vld [vmem:[#allocation7 + $0x270] sm:$0xff] }
 0x108   : > { %4016 = vmatprep.subr.bf16.mxu0 %v4015_v21  ;;  %v730_v53 = vld [vmem:[#allocation7 + $0x160] sm:$0xff]  ;;  %v753_v58 = vld [vmem:[#allocation7 + $0x218] sm:$0xff]  ;;  %v4027_v60 = vpack.c.bf16 %v572_v51, %v570_v50  ;;  %v571_v61 = vld [vmem:[#allocation4 + $0xd0] sm:$0xff] }
 0x109   : > { %v569_v56 = vld [vmem:[#allocation4 + $0xc0] sm:$0xff]  ;;  %v4045_v57 = vpack.c.bf16 %v741_v54, %v730_v53  ;;  %v4047_v62 = vpack.c.bf16 %v764_v59, %v753_v58  ;;  %v752_v63 = vld [vmem:[#allocation7 + $0x210] sm:$0xff]  ;;  %v763_v1 = vld [vmem:[#allocation7 + $0x268] sm:$0xff] }
 0x10a   : > { %4042 = vmatpush1.bf16.msra.mxu1 %v4041_v47  ;;  %v574_v2 = vld [vmem:[#allocation4 + $0xe8] sm:$0xff]  ;;  %v576_v3 = vld [vmem:[#allocation4 + $0xf8] sm:$0xff]  ;;  %v4029_v6 = vpack.c.bf16 %v571_v61, %v569_v56  ;;  %v573_v7 = vld [vmem:[#allocation4 + $0xe0] sm:$0xff]  ;;  %v4049_v9 = vpack.c.bf16 %v763_v1, %v752_v63 }
 0x10b   : > { %4018 = vmatpush1.bf16.msra.mxu0 %v4017_v26  ;;  %4044 = vmatprep.subr.bf16.mxu1 %v4043_v52  ;;  %v775_v4 = vld [vmem:[#allocation7 + $0x2c8] sm:$0xff]  ;;  %v786_v5 = vld [vmem:[#allocation7 + $0x320] sm:$0xff]  ;;  %v4031_v10 = vpack.c.bf16 %v576_v3, %v574_v2  ;;  %v689_v11 = vld [vmem:[#allocation7 + $0x18] sm:$0xff] }
 0x10c   : > { %4020 = vmatprep.subr.bf16.mxu0 %v4019_v30  ;;  %v575_v8 = vld [vmem:[#allocation4 + $0xf0] sm:$0xff]  ;;  %v4051_v12 = vpack.c.bf16 %v786_v5, %v775_v4  ;;  %v774_v13 = vld [vmem:[#allocation7 + $0x2c0] sm:$0xff]  ;;  %v785_v14 = vld [vmem:[#allocation7 + $0x318] sm:$0xff] }
 0x10d   : > { %v700_v15 = vld [vmem:[#allocation7 + $0x70] sm:$0xff]  ;;  %v797_v16 = vld [vmem:[#allocation7 + $0x378] sm:$0xff]  ;;  %v4033_v18 = vpack.c.bf16 %v575_v8, %v573_v7  ;;  %v4053_v19 = vpack.c.bf16 %v785_v14, %v774_v13  ;;  %v699_v22 = vld [vmem:[#allocation7 + $0x68] sm:$0xff] }
 0x10e   : > { %4046 = vmatpush1.bf16.msra.mxu1 %v4045_v57  ;;  %v808_v17 = vld [vmem:[#allocation7 + $0x3d0] sm:$0xff]  ;;  %v4099_v20 = vpack.c.bf16 %v700_v15, %v689_v11  ;;  %v711_v23 = vld [vmem:[#allocation7 + $0xc8] sm:$0xff]  ;;  %v722_v25 = vld [vmem:[#allocation7 + $0x120] sm:$0xff] }
 0x10f   : > { %4022 = vmatpush1.bf16.msra.mxu0 %v4021_v40  ;;  %4048 = vmatprep.subr.bf16.mxu1 %v4047_v62  ;;  %v688_v21 = vld [vmem:[#allocation7 + $0x10] sm:$0xff]  ;;  %v4055_v24 = vpack.c.bf16 %v808_v17, %v797_v16  ;;  %v807_v27 = vld [vmem:[#allocation7 + $0x3c8] sm:$0xff]  ;;  %v830_v29 = vld [vmem:[#allocation7 + $0x480] sm:$0xff]  ;;  %v4103_v32 = vpack.c.bf16 %v722_v25, %v711_v23 }
 0x110   : > { %4024 = vmatprep.subr.bf16.mxu0 %v4023_v45  ;;  %v796_v26 = vld [vmem:[#allocation7 + $0x370] sm:$0xff]  ;;  %v819_v28 = vld [vmem:[#allocation7 + $0x428] sm:$0xff]  ;;  %v541_v30 = vld [vmem:[%s5629_s29] sm:$0xff]  ;;  %v4101_v31 = vpack.c.bf16 %v699_v22, %v688_v21 }
 0x111   : > { %v710_v33 = vld [vmem:[#allocation7 + $0xc0] sm:$0xff]  ;;  %v721_v34 = vld [vmem:[#allocation7 + $0x118] sm:$0xff]  ;;  %v4057_v36 = vpack.c.bf16 %v807_v27, %v796_v26  ;;  %v744_v37 = vld [vmem:[#allocation7 + $0x1d0] sm:$0xff]  ;;  %v4059_v38 = vpack.c.bf16 %v830_v29, %v819_v28 }
 0x112   : > { %4050 = vmatpush1.bf16.msra.mxu1 %v4049_v9  ;;  %v733_v35 = vld [vmem:[#allocation7 + $0x178] sm:$0xff]  ;;  %v818_v39 = vld [vmem:[#allocation7 + $0x420] sm:$0xff]  ;;  %v852_v42 = vld [vmem:[#allocation7 + $0x530] sm:$0xff]  ;;  %v4105_v44 = vpack.c.bf16 %v721_v34, %v710_v33 }
 0x113   : > { %4026 = vmatpush1.bf16.msra.mxu0 %v4025_v55  ;;  %4052 = vmatprep.subr.bf16.mxu1 %v4051_v12  ;;  %v829_v40 = vld [vmem:[#allocation7 + $0x478] sm:$0xff]  ;;  %v542_v43 = vld [vmem:[%s5629_s29 + $0x8] sm:$0xff]  ;;  %v4107_v45 = vpack.c.bf16 %v744_v37, %v733_v35  ;;  %v732_v46 = vld [vmem:[#allocation7 + $0x170] sm:$0xff] }
 0x114   : > { %4028 = vmatprep.subr.bf16.mxu0 %v4027_v60  ;;  %v841_v41 = vld [vmem:[#allocation7 + $0x4d8] sm:$0xff]  ;;  %v743_v47 = vld [vmem:[#allocation7 + $0x1c8] sm:$0xff]  ;;  %v4061_v49 = vpack.c.bf16 %v829_v40, %v818_v39  ;;  %v766_v50 = vld [vmem:[#allocation7 + $0x280] sm:$0xff] }
 0x115   : > { %v755_v48 = vld [vmem:[#allocation7 + $0x228] sm:$0xff]  ;;  %v4063_v51 = vpack.c.bf16 %v852_v42, %v841_v41  ;;  %v840_v52 = vld [vmem:[#allocation7 + $0x4d0] sm:$0xff]  ;;  %v874_v55 = vld [vmem:[#allocation7 + $0x5e0] sm:$0xff]  ;;  %v4109_v57 = vpack.c.bf16 %v743_v47, %v732_v46 }
 0x116   : > { %4054 = vmatpush1.bf16.msra.mxu1 %v4053_v19  ;;  %v851_v53 = vld [vmem:[#allocation7 + $0x528] sm:$0xff]  ;;  %v4111_v58 = vpack.c.bf16 %v766_v50, %v755_v48  ;;  %v754_v59 = vld [vmem:[#allocation7 + $0x220] sm:$0xff]  ;;  %v765_v60 = vld [vmem:[#allocation7 + $0x278] sm:$0xff] }
 0x117   : > { %4030 = vmatpush1.bf16.msra.mxu0 %v4029_v6  ;;  %4056 = vmatprep.subr.bf16.mxu1 %v4055_v24  ;;  %v863_v54 = vld [vmem:[#allocation7 + $0x588] sm:$0xff]  ;;  %v777_v61 = vld [vmem:[#allocation7 + $0x2d8] sm:$0xff]  ;;  %v4065_v62 = vpack.c.bf16 %v851_v53, %v840_v52  ;;  %v788_v63 = vld [vmem:[#allocation7 + $0x330] sm:$0xff]  ;;  %v4113_v7 = vpack.c.bf16 %v765_v60, %v754_v59 }
 0x118   : > { %4032 = vmatprep.subr.bf16.mxu0 %v4031_v10  ;;  %v543_v56 = vld [vmem:[%s5629_s29 + $0x10] sm:$0xff]  ;;  %v4067_v1 = vpack.c.bf16 %v874_v55, %v863_v54  ;;  %v862_v2 = vld [vmem:[#allocation7 + $0x580] sm:$0xff]  ;;  %v873_v3 = vld [vmem:[#allocation7 + $0x5d8] sm:$0xff]  ;;  %v4115_v8 = vpack.c.bf16 %v788_v63, %v777_v61 }
 0x119   : > { %v885_v4 = vld [vmem:[#allocation7 + $0x638] sm:$0xff]  ;;  %v896_v5 = vld [vmem:[#allocation7 + $0x690] sm:$0xff]  ;;  %v787_v10 = vld [vmem:[#allocation7 + $0x328] sm:$0xff]  ;;  %v4069_v12 = vpack.c.bf16 %v873_v3, %v862_v2 }
 0x11a   : > { %4058 = vmatpush1.bf16.msra.mxu1 %v4057_v36  ;;  %v544_v6 = vld [vmem:[%s5629_s29 + $0x18] sm:$0xff]  ;;  %v799_v11 = vld [vmem:[#allocation7 + $0x388] sm:$0xff]  ;;  %v810_v13 = vld [vmem:[#allocation7 + $0x3e0] sm:$0xff]  ;;  %v4071_v14 = vpack.c.bf16 %v896_v5, %v885_v4 }
 0x11b   : > { %4034 = vmatpush1.bf16.msra.mxu0 %v4033_v18  ;;  %4060 = vmatprep.subr.bf16.mxu1 %v4059_v38  ;;  %v776_v9 = vld [vmem:[#allocation7 + $0x2d0] sm:$0xff]  ;;  %v895_v16 = vld [vmem:[#allocation7 + $0x688] sm:$0xff]  ;;  %v918_v18 = vld [vmem:[#allocation7 + $0x740] sm:$0xff] }
 0x11c   : > { %4100 = vmatprep.subr.bf16.mxu0 %v4099_v20  ;;  %v884_v15 = vld [vmem:[#allocation7 + $0x630] sm:$0xff]  ;;  %v907_v17 = vld [vmem:[#allocation7 + $0x6e8] sm:$0xff]  ;;  %v4117_v19 = vpack.c.bf16 %v787_v10, %v776_v9  ;;  %v4119_v20 = vpack.c.bf16 %v810_v13, %v799_v11  ;;  %v798_v21 = vld [vmem:[#allocation7 + $0x380] sm:$0xff] }
 0x11d   : > { %v809_v22 = vld [vmem:[#allocation7 + $0x3d8] sm:$0xff]  ;;  %v4073_v24 = vpack.c.bf16 %v895_v16, %v884_v15  ;;  %v832_v25 = vld [vmem:[#allocation7 + $0x490] sm:$0xff]  ;;  %v4075_v26 = vpack.c.bf16 %v918_v18, %v907_v17  ;;  %v906_v27 = vld [vmem:[#allocation7 + $0x6e0] sm:$0xff] }
 0x11e   : > { %654 = vmatmul.mubr.f32.vlgmr.msra.gmra.mrb[0].mxu0 %v541_v30  ;;  %4062 = vmatpush1.bf16.msra.mxu1 %v4061_v49  ;;  %v821_v23 = vld [vmem:[#allocation7 + $0x438] sm:$0xff]  ;;  %v940_v30 = vld [vmem:[#allocation7 + $0x7f0] sm:$0xff]  ;;  %v831_v34 = vld [vmem:[#allocation7 + $0x488] sm:$0xff] }
 0x11f   : > { %659 = vmatprep.mubr.f32.mxu0 %v5271_v0  ;;  %4102 = vmatpush1.bf16.msra.mxu0 %v4101_v31  ;;  %v917_v28 = vld [vmem:[#allocation7 + $0x738] sm:$0xff]  ;;  %v4121_v31 = vpack.c.bf16 %v809_v22, %v798_v21  ;;  %v820_v33 = vld [vmem:[#allocation7 + $0x430] sm:$0xff]  ;;  %v843_v35 = vld [vmem:[#allocation7 + $0x4e8] sm:$0xff] }
 0x120   : > { %4104 = vmatprep.subr.bf16.mxu0 %v4103_v32  ;;  %4064 = vmatprep.subr.bf16.mxu1 %v4063_v51  ;;  %v929_v29 = vld [vmem:[#allocation7 + $0x798] sm:$0xff]  ;;  %v4123_v32 = vpack.c.bf16 %v832_v25, %v821_v23  ;;  %v4077_v36 = vpack.c.bf16 %v917_v28, %v906_v27  ;;  %v854_v37 = vld [vmem:[#allocation7 + $0x540] sm:$0xff]  ;;  %v928_v39 = vld [vmem:[#allocation7 + $0x790] sm:$0xff] }
 0x121   : > { %v4079_v38 = vpack.c.bf16 %v940_v30, %v929_v29  ;;  %v939_v40 = vld [vmem:[#allocation7 + $0x7e8] sm:$0xff]  ;;  %v962_v42 = vld [vmem:[#allocation7 + $0x8a0] sm:$0xff]  ;;  %v853_v46 = vld [vmem:[#allocation7 + $0x538] sm:$0xff] }
 0x122   : > { %660 = vmatmul.mubr.f32.gmra.mrb[2].mxu0 %v542_v43  ;;  %4066 = vmatpush1.bf16.msra.mxu1 %v4065_v62  ;;  %v951_v41 = vld [vmem:[#allocation7 + $0x848] sm:$0xff]  ;;  %v4125_v43 = vpack.c.bf16 %v831_v34, %v820_v33  ;;  %v865_v47 = vld [vmem:[#allocation7 + $0x598] sm:$0xff]  ;;  %v4081_v48 = vpack.c.bf16 %v939_v40, %v928_v39  ;;  %v876_v49 = vld [vmem:[#allocation7 + $0x5f0] sm:$0xff] }
 0x123   : > { %665 = vmatprep.mubr.f32.mxu0 %v5271_v0  ;;  %4106 = vmatpush1.bf16.msra.mxu0 %v4105_v44  ;;  %v4127_v44 = vpack.c.bf16 %v854_v37, %v843_v35  ;;  %v4083_v50 = vpack.c.bf16 %v962_v42, %v951_v41  ;;  %v950_v51 = vld [vmem:[#allocation7 + $0x840] sm:$0xff]  ;;  %v961_v52 = vld [vmem:[#allocation7 + $0x898] sm:$0xff]  ;;  %v984_v54 = vld [vmem:[#allocation7 + $0x950] sm:$0xff] }
 0x124   : > { %4108 = vmatprep.subr.bf16.mxu0 %v4107_v45  ;;  %4068 = vmatprep.subr.bf16.mxu1 %v4067_v1  ;;  %v842_v45 = vld [vmem:[#allocation7 + $0x4e0] sm:$0xff]  ;;  %v973_v53 = vld [vmem:[#allocation7 + $0x8f8] sm:$0xff]  ;;  %v887_v59 = vld [vmem:[#allocation7 + $0x648] sm:$0xff]  ;;  %v4085_v60 = vpack.c.bf16 %v961_v52, %v950_v51 }
 0x125   : > { %v4129_v55 = vpack.c.bf16 %v853_v46, %v842_v45  ;;  %v898_v61 = vld [vmem:[#allocation7 + $0x6a0] sm:$0xff]  ;;  %v4087_v62 = vpack.c.bf16 %v984_v54, %v973_v53  ;;  %v972_v63 = vld [vmem:[#allocation7 + $0x8f0] sm:$0xff]  ;;  %v983_v1 = vld [vmem:[#allocation7 + $0x948] sm:$0xff] }
 0x126   : > { %666 = vmatmul.mubr.f32.gmra.mrb[4].mxu0 %v543_v56  ;;  %4070 = vmatpush1.bf16.msra.mxu1 %v4069_v12  ;;  %v4131_v56 = vpack.c.bf16 %v876_v49, %v865_v47  ;;  %v995_v2 = vld [vmem:[#allocation7 + $0x9a8] sm:$0xff]  ;;  %v1006_v3 = vld [vmem:[#allocation7 + $0xa00] sm:$0xff]  ;;  %v4135_v5 = vpack.c.bf16 %v898_v61, %v887_v59  ;;  %v4089_v9 = vpack.c.bf16 %v983_v1, %v972_v63  ;;  %v920_v10 = vld [vmem:[#allocation7 + $0x750] sm:$0xff] }
 0x127   : > { %671 = vmatprep.mubr.f32.mxu0 %v5271_v0  ;;  %4110 = vmatpush1.bf16.msra.mxu0 %v4109_v57  ;;  %v864_v57 = vld [vmem:[#allocation7 + $0x590] sm:$0xff]  ;;  %v4091_v11 = vpack.c.bf16 %v1006_v3, %v995_v2  ;;  %v994_v12 = vld [vmem:[#allocation7 + $0x9a0] sm:$0xff]  ;;  %v1005_v13 = vld [vmem:[#allocation7 + $0x9f8] sm:$0xff] }
 0x128   : > { %4112 = vmatprep.subr.bf16.mxu0 %v4111_v58  ;;  %4072 = vmatprep.subr.bf16.mxu1 %v4071_v14  ;;  %v875_v58 = vld [vmem:[#allocation7 + $0x5e8] sm:$0xff]  ;;  %v908_v16 = vld [vmem:[#allocation7 + $0x6f0] sm:$0xff]  ;;  %v4093_v18 = vpack.c.bf16 %v1005_v13, %v994_v12  ;;  %v930_v23 = vld [vmem:[#allocation7 + $0x7a0] sm:$0xff] }
 0x129   : > { %v4133_v4 = vpack.c.bf16 %v875_v58, %v864_v57  ;;  %v919_v17 = vld [vmem:[#allocation7 + $0x748] sm:$0xff]  ;;  %v953_v25 = vld [vmem:[#allocation7 + $0x858] sm:$0xff]  ;;  %v952_v29 = vld [vmem:[#allocation7 + $0x850] sm:$0xff] }
 0x12a   : > { %672 = vmatmul.mubr.f32.gmra.mrb[6].mxu0 %v544_v6  ;;  %4074 = vmatpush1.bf16.msra.mxu1 %v4073_v24  ;;  %v886_v6 = vld [vmem:[#allocation7 + $0x640] sm:$0xff]  ;;  %v4141_v21 = vpack.c.bf16 %v919_v17, %v908_v16  ;;  %v941_v24 = vld [vmem:[#allocation7 + $0x7f8] sm:$0xff]  ;;  %v963_v30 = vld [vmem:[#allocation7 + $0x8a8] sm:$0xff] }
 0x12b   : > { %4114 = vmatpush1.bf16.msra.mxu0 %v4113_v7  ;;  %4076 = vmatprep.subr.bf16.mxu1 %v4075_v26  ;;  %v897_v7 = vld [vmem:[#allocation7 + $0x698] sm:$0xff]  ;;  %v964_v26 = vld [vmem:[#allocation7 + $0x8b0] sm:$0xff]  ;;  %v4145_v27 = vpack.c.bf16 %v941_v24, %v930_v23  ;;  %v4149_v33 = vpack.c.bf16 %v963_v30, %v952_v29  ;;  %v974_v35 = vld [vmem:[#allocation7 + $0x900] sm:$0xff] }
 0x12c   : > { %4116 = vmatprep.subr.bf16.mxu0 %v4115_v8  ;;  %v909_v8 = vld [vmem:[#allocation7 + $0x6f8] sm:$0xff]  ;;  %v4137_v14 = vpack.c.bf16 %v897_v7, %v886_v6  ;;  %v4147_v28 = vpack.c.bf16 %v964_v26, %v953_v25  ;;  %v996_v41 = vld [vmem:[#allocation7 + $0x9b0] sm:$0xff]  ;;  %v1007_v42 = vld [vmem:[#allocation7 + $0xa08] sm:$0xff] }
 0x12d   : > { %v4139_v15 = vpack.c.bf16 %v920_v10, %v909_v8  ;;  %v997_v37 = vld [vmem:[#allocation7 + $0x9b8] sm:$0xff]  ;;  %v1028_v45 = vld [vmem:[#allocation7 + $0xab0] sm:$0xff]  ;;  %v1019_v46 = vld [vmem:[#allocation7 + $0xa68] sm:$0xff] }
 0x12e   : > { %4078 = vmatpush1.bf16.msra.mxu1 %v4077_v36  ;;  %v985_v36 = vld [vmem:[#allocation7 + $0x958] sm:$0xff]  ;;  %v1016_v49 = vld [vmem:[#allocation7 + $0xa50] sm:$0xff]  ;;  %v1018_v53 = vld [vmem:[#allocation7 + $0xa60] sm:$0xff] }
 0x12f   : > { %4118 = vmatpush1.bf16.msra.mxu0 %v4117_v19  ;;  %4080 = vmatprep.subr.bf16.mxu1 %v4079_v38  ;;  %v931_v19 = vld [vmem:[#allocation7 + $0x7a8] sm:$0xff]  ;;  %v1008_v38 = vld [vmem:[#allocation7 + $0xa10] sm:$0xff]  ;;  %v4153_v39 = vpack.c.bf16 %v985_v36, %v974_v35  ;;  %v1029_v54 = vld [vmem:[#allocation7 + $0xab8] sm:$0xff] }
 0x130   : > { %4120 = vmatprep.subr.bf16.mxu0 %v4119_v20  ;;  %v942_v20 = vld [vmem:[#allocation7 + $0x800] sm:$0xff]  ;;  %v4155_v40 = vpack.c.bf16 %v1008_v38, %v997_v37  ;;  %v693_v58 = vld [vmem:[#allocation7 + $0x38] sm:$0xff]  ;;  %v703_v12 = vld [vmem:[#allocation7 + $0x88] sm:$0xff] }
 0x131   : > { %v4143_v22 = vpack.c.bf16 %v942_v20, %v931_v19  ;;  %v702_v57 = vld [vmem:[#allocation7 + $0x80] sm:$0xff]  ;;  %v577_v2 = vld [vmem:[#allocation6] sm:$0x3]  ;;  %v715_v16 = vld [vmem:[#allocation7 + $0xe8] sm:$0xff] }
 0x132   : > { %4082 = vmatpush1.bf16.msra.mxu1 %v4081_v48  ;;  %v1030_v48 = vld [vmem:[#allocation7 + $0xac0] sm:$0xff]  ;;  %v701_v8 = vld [vmem:[#allocation7 + $0x78] sm:$0xff]  ;;  %v723_v23 = vld [vmem:[#allocation7 + $0x128] sm:$0xff] }
 0x133   : > { %4122 = vmatpush1.bf16.msra.mxu0 %v4121_v31  ;;  %4084 = vmatprep.subr.bf16.mxu1 %v4083_v50  ;;  %v975_v31 = vld [vmem:[#allocation7 + $0x908] sm:$0xff]  ;;  %v4159_v51 = vpack.c.bf16 %v1030_v48, %v1019_v46  ;;  %v690_v7 = vld [vmem:[#allocation7 + $0x20] sm:$0xff]  ;;  %v713_v13 = vld [vmem:[#allocation7 + $0xd8] sm:$0xff] }
 0x134   : > { %4124 = vmatprep.subr.bf16.mxu0 %v4123_v32  ;;  %v986_v32 = vld [vmem:[#allocation7 + $0x960] sm:$0xff]  ;;  %v1027_v50 = vld [vmem:[#allocation7 + $0xaa8] sm:$0xff]  ;;  %v4165_v20 = vpack.c.bf16 %v701_v8, %v690_v7  ;;  %v725_v30 = vld [vmem:[#allocation7 + $0x138] sm:$0xff] }
 0x135   : > { %v4151_v34 = vpack.c.bf16 %v986_v32, %v975_v31  ;;  %v4097_v52 = vpack.c.bf16 %v1027_v50, %v1016_v49  ;;  %v726_v17 = vld [vmem:[#allocation7 + $0x140] sm:$0xff]  ;;  %v735_v31 = vld [vmem:[#allocation7 + $0x188] sm:$0xff]  ;;  %v748_v35 = vld [vmem:[#allocation7 + $0x1f0] sm:$0xff] }
 0x136   : > { %4086 = vmatpush1.bf16.msra.mxu1 %v4085_v60  ;;  %v704_v60 = vld [vmem:[#allocation7 + $0x90] sm:$0xff]  ;;  %v714_v29 = vld [vmem:[#allocation7 + $0xe0] sm:$0xff]  ;;  %v747_v48 = vld [vmem:[#allocation7 + $0x1e8] sm:$0xff] }
 0x137   : > { %4126 = vmatpush1.bf16.msra.mxu0 %v4125_v43  ;;  %4088 = vmatprep.subr.bf16.mxu1 %v4087_v62  ;;  %v4157_v43 = vpack.c.bf16 %v1007_v42, %v996_v41  ;;  %v4227_v61 = vpack.c.bf16 %v704_v60, %v693_v58  ;;  %v579_v62 = vlaneseq  ;;  %v734_v41 = vld [vmem:[#allocation7 + $0x180] sm:$0xff]  ;;  %v745_v42 = vld [vmem:[#allocation7 + $0x1d8] sm:$0xff]  ;;  %v779_v7 = vld [vmem:[#allocation7 + $0x2e8] sm:$0xff] }
 0x138   : > { %4128 = vmatprep.subr.bf16.mxu0 %v4127_v44  ;;  %v1017_v44 = vld [vmem:[#allocation7 + $0xa58] sm:$0xff] }
 0x139   : > { %v4095_v47 = vpack.c.bf16 %v1028_v45, %v1017_v44  ;;  %v580_v63 = vshrl.u32 %v579_v62, 7  ;;  %v757_v49 = vld [vmem:[#allocation7 + $0x238] sm:$0xff] }
 0x13a   : > { %4090 = vmatpush1.bf16.msra.mxu1 %v4089_v9 }
 0x13b   : > { %4130 = vmatpush1.bf16.msra.mxu0 %v4129_v55  ;;  %4092 = vmatprep.subr.bf16.mxu1 %v4091_v11  ;;  %v4161_v55 = vpack.c.bf16 %v1029_v54, %v1018_v53  ;;  %v581_v1 = vsub.s32 0, %v580_v63  ;;  %v585_v3 = vsub.s32 1, %v580_v63  ;;  %v692_v11 = vld [vmem:[#allocation7 + $0x30] sm:$0xff]  ;;  %v770_v53 = vld [vmem:[#allocation7 + $0x2a0] sm:$0xff] }
 0x13c   : > { %4132 = vmatprep.subr.bf16.mxu0 %v4131_v56  ;;  %v691_v56 = vld [vmem:[#allocation7 + $0x28] sm:$0xff] }
 0x13d   : > { %v4163_v59 = vpack.c.bf16 %v702_v57, %v691_v56  ;;  %v4173_v57 = vpack.c.bf16 %v745_v42, %v734_v41  ;;  %v822_v41 = vld [vmem:[#allocation7 + $0x440] sm:$0xff]  ;;  %v833_v42 = vld [vmem:[#allocation7 + $0x498] sm:$0xff] }
 0x13e   : > { %4094 = vmatpush1.bf16.msra.mxu1 %v4093_v18 }
 0x13f   : > { %4134 = vmatpush1.bf16.msra.mxu0 %v4133_v4  ;;  %4096 = vmatprep.subr.bf16.mxu1 %v4095_v47  ;;  %v5659_v4 = vrot.slane %v577_v2, %v581_v1  ;;  %v736_v47 = vld [vmem:[#allocation7 + $0x190] sm:$0xff]  ;;  %v767_v1 = vld [vmem:[#allocation7 + $0x288] sm:$0xff] }
 0x140   : > { %4136 = vmatprep.subr.bf16.mxu0 %v4135_v5  ;;  %v5661_v5 = vrot.slane %v577_v2, %v585_v3  ;;  %v4237_v58 = vpack.c.bf16 %v747_v48, %v736_v47  ;;  %v758_v2 = vld [vmem:[#allocation7 + $0x240] sm:$0xff]  ;;  %v769_v3 = vld [vmem:[#allocation7 + $0x298] sm:$0xff]  ;;  %v856_v48 = vld [vmem:[#allocation7 + $0x550] sm:$0xff] }
 0x141   : > { %v845_v47 = vld [vmem:[#allocation7 + $0x4f8] sm:$0xff] }
 0x142   : > { %4098 = vmatpush1.bf16.msra.mxu1 %v4097_v52  ;;  %v759_v52 = vld [vmem:[#allocation7 + $0x248] sm:$0xff] }
 0x143   : > { %4138 = vmatpush1.bf16.msra.mxu0 %v4137_v14  ;;  %4164 = vmatprep.subr.bf16.mxu1 %v4163_v59  ;;  %v756_v59 = vld [vmem:[#allocation7 + $0x230] sm:$0xff]  ;;  %v4239_v63 = vpack.c.bf16 %v770_v53, %v759_v52 }
 0x144   : > { %4140 = vmatprep.subr.bf16.mxu0 %v4139_v15  ;;  %v724_v15 = vld [vmem:[#allocation7 + $0x130] sm:$0xff] }
 0x145   : > { %v844_v53 = vld [vmem:[#allocation7 + $0x4f0] sm:$0xff] }
 0x147   : > { %4142 = vmatpush1.bf16.msra.mxu0 %v4141_v21  ;;  %v4229_v21 = vpack.c.bf16 %v703_v12, %v692_v11  ;;  %v4177_v12 = vpack.c.bf16 %v767_v1, %v756_v59  ;;  %v846_v59 = vld [vmem:[#allocation7 + $0x500] sm:$0xff]  ;;  %v880_v1 = vld [vmem:[#allocation7 + $0x610] sm:$0xff] }
 0x148   : > { %4144 = vmatprep.subr.bf16.mxu0 %v4143_v22  ;;  %v712_v22 = vld [vmem:[#allocation7 + $0xd0] sm:$0xff] }
 0x14b   : > { %4146 = vmatpush1.bf16.msra.mxu0 %v4145_v27  ;;  %v4167_v27 = vpack.c.bf16 %v724_v15, %v713_v13  ;;  %v778_v13 = vld [vmem:[#allocation7 + $0x2e0] sm:$0xff]  ;;  %v780_v15 = vld [vmem:[#allocation7 + $0x2f0] sm:$0xff] }
 0x14c   : > { %4148 = vmatprep.subr.bf16.mxu0 %v4147_v28  ;;  %v4231_v28 = vpack.c.bf16 %v726_v17, %v715_v16  ;;  %v791_v16 = vld [vmem:[#allocation7 + $0x348] sm:$0xff]  ;;  %v801_v17 = vld [vmem:[#allocation7 + $0x398] sm:$0xff] }
 0x14f   : > { %4150 = vmatpush1.bf16.msra.mxu0 %v4149_v33  ;;  %v746_v33 = vld [vmem:[#allocation7 + $0x1e0] sm:$0xff] }
 0x150   : > { %4152 = vmatprep.subr.bf16.mxu0 %v4151_v34  ;;  %v737_v34 = vld [vmem:[#allocation7 + $0x198] sm:$0xff]  ;;  %v4171_v45 = vpack.c.bf16 %v746_v33, %v735_v31  ;;  %v802_v31 = vld [vmem:[#allocation7 + $0x3a0] sm:$0xff]  ;;  %v823_v33 = vld [vmem:[#allocation7 + $0x448] sm:$0xff] }
 0x151   : > { %v4235_v46 = vpack.c.bf16 %v748_v35, %v737_v34  ;;  %v834_v34 = vld [vmem:[#allocation7 + $0x4a0] sm:$0xff]  ;;  %v825_v35 = vld [vmem:[#allocation7 + $0x458] sm:$0xff] }
 0x153   : > { %4154 = vmatpush1.bf16.msra.mxu0 %v4153_v39  ;;  %v4169_v39 = vpack.c.bf16 %v723_v23, %v712_v22  ;;  %v803_v22 = vld [vmem:[#allocation7 + $0x3a8] sm:$0xff]  ;;  %v814_v23 = vld [vmem:[#allocation7 + $0x400] sm:$0xff] }
 0x154   : > { %4156 = vmatprep.subr.bf16.mxu0 %v4155_v40  ;;  %v4233_v40 = vpack.c.bf16 %v725_v30, %v714_v29  ;;  %v4247_v30 = vpack.c.bf16 %v814_v23, %v803_v22  ;;  %v890_v23 = vld [vmem:[#allocation7 + $0x660] sm:$0xff] }
 0x157   : > { %4158 = vmatpush1.bf16.msra.mxu0 %v4157_v43 }
 0x158   : > { %4160 = vmatprep.subr.bf16.mxu0 %v4159_v51  ;;  %v768_v51 = vld [vmem:[#allocation7 + $0x290] sm:$0xff] }
 0x159   : > { %v4175_v62 = vpack.c.bf16 %v768_v51, %v757_v49  ;;  %v847_v49 = vld [vmem:[#allocation7 + $0x508] sm:$0xff]  ;;  %v4189_v51 = vpack.c.bf16 %v833_v42, %v822_v41  ;;  %v944_v41 = vld [vmem:[#allocation7 + $0x810] sm:$0xff] }
 0x15a   : > { %v935_v42 = vld [vmem:[#allocation7 + $0x7c8] sm:$0xff] }
 0x15b   : > { %4162 = vmatpush1.bf16.msra.mxu0 %v4161_v55 }
 0x15c   : > { %4228 = vmatprep.subr.bf16.mxu0 %v4227_v61 }
 0x1f1   : > { %v655_v6 = vpop.f32.mrb[0].mxu0 }
 0x1f2   : > { %v656_v9 = vadd.f32 %v655_v6, %v5659_v4  ;;  %v657_v10 = vpop.f32.mrb[1].mxu0 }
 0x1f3   : > { %v658_v14 = vadd.f32 %v657_v10, %v5661_v5  ;;  %v792_v10 = vld [vmem:[#allocation7 + $0x350] sm:$0xff] }
 0x1f4   : > { %v5667_v24 = vmax.f32 %v656_v9, 0.0  ;;  %v781_v9 = vld [vmem:[#allocation7 + $0x2f8] sm:$0xff] }
 0x1f5   : > { %v5665_v18 = vmax.f32 %v658_v14, 0.0  ;;  %v661_v19 = vpop.f32.mrb[2].mxu0  ;;  %v789_v14 = vld [vmem:[#allocation7 + $0x338] sm:$0xff] }
 0x1f6   : > { %v662_v25 = vadd.f32 %v661_v19, %v5659_v4  ;;  %v663_v26 = vpop.f32.mrb[3].mxu0 }
 0x1f7   : > { %v664_v32 = vadd.f32 %v663_v26, %v5661_v5  ;;  %1102 = vmatprep.mubr.f32.mxu1 %v5665_v18  ;;  %1191 = vmatprep.mubr.f32.mxu0 %v5665_v18  ;;  %v4245_v26 = vpack.c.bf16 %v791_v16, %v780_v15  ;;  %v902_v15 = vld [vmem:[#allocation7 + $0x6c0] sm:$0xff] }
 0x1f8   : > { %v5673_v36 = vmax.f32 %v662_v25, 0.0  ;;  %1103 = vmatmul.mubr.f32.vlgmr.msra.gmra.mrb[0].mxu1 %v5667_v24  ;;  %1192 = vmatmul.mubr.f32.vlgmr.msra.gmra.mrb[8].mxu0 %v5667_v24  ;;  %v4181_v25 = vpack.c.bf16 %v789_v14, %v778_v13  ;;  %v900_v13 = vld [vmem:[#allocation7 + $0x6b0] sm:$0xff]  ;;  %v891_v14 = vld [vmem:[#allocation7 + $0x668] sm:$0xff] }
 0x1f9   : > { %v5677_v37 = vmax.f32 %v664_v32, 0.0  ;;  %4166 = vmatpush1.bf16.msra.mxu1 %v4165_v20  ;;  %4230 = vmatpush1.bf16.msra.mxu0 %v4229_v21  ;;  %v667_v38 = vpop.f32.mrb[4].mxu0  ;;  %v4243_v20 = vpack.c.bf16 %v792_v10, %v781_v9  ;;  %v812_v21 = vld [vmem:[#allocation7 + $0x3f0] sm:$0xff]  ;;  %v813_v32 = vld [vmem:[#allocation7 + $0x3f8] sm:$0xff]  ;;  %v4263_v22 = vpack.c.bf16 %v902_v15, %v891_v14  ;;  %v978_v15 = vld [vmem:[#allocation7 + $0x920] sm:$0xff] }
 0x1fa   : > { %v668_v43 = vadd.f32 %v667_v38, %v5659_v4  ;;  %v669_v44 = vpop.f32.mrb[5].mxu0  ;;  %4168 = vmatprep.subr.bf16.mxu1 %v4167_v27  ;;  %4232 = vmatprep.subr.bf16.mxu0 %v4231_v28  ;;  %v800_v27 = vld [vmem:[#allocation7 + $0x390] sm:$0xff]  ;;  %v811_v28 = vld [vmem:[#allocation7 + $0x3e8] sm:$0xff]  ;;  %v4183_v29 = vpack.c.bf16 %v812_v21, %v801_v17 }
 0x1fb   : > { %v670_v50 = vadd.f32 %v669_v44, %v5661_v5  ;;  %1108 = vmatprep.mubr.f32.mxu1 %v5677_v37  ;;  %1197 = vmatprep.mubr.f32.mxu0 %v5677_v37  ;;  %v836_v38 = vld [vmem:[#allocation7 + $0x4b0] sm:$0xff] }
 0x1fc   : > { %v5683_v54 = vmax.f32 %v668_v43, 0.0  ;;  %1109 = vmatmul.mubr.f32.gmra.mrb[2].mxu1 %v5673_v36  ;;  %1198 = vmatmul.mubr.f32.gmra.mrb[10].mxu0 %v5673_v36  ;;  %v4187_v43 = vpack.c.bf16 %v834_v34, %v823_v33  ;;  %v4251_v44 = vpack.c.bf16 %v836_v38, %v825_v35  ;;  %v868_v10 = vld [vmem:[#allocation7 + $0x5b0] sm:$0xff]  ;;  %v921_v33 = vld [vmem:[#allocation7 + $0x758] sm:$0xff] }
 0x1fd   : > { %v5687_v55 = vmax.f32 %v670_v50, 0.0  ;;  %4170 = vmatpush1.bf16.msra.mxu1 %v4169_v39  ;;  %4234 = vmatpush1.bf16.msra.mxu0 %v4233_v40  ;;  %v673_v56 = vpop.f32.mrb[6].mxu0  ;;  %v4185_v39 = vpack.c.bf16 %v811_v28, %v800_v27  ;;  %v4249_v40 = vpack.c.bf16 %v813_v32, %v802_v31  ;;  %v858_v50 = vld [vmem:[#allocation7 + $0x560] sm:$0xff]  ;;  %v913_v28 = vld [vmem:[#allocation7 + $0x718] sm:$0xff]  ;;  %v912_v38 = vld [vmem:[#allocation7 + $0x710] sm:$0xff] }
 0x1fe   : > { %v674_v60 = vadd.f32 %v673_v56, %v5659_v4  ;;  %v675_v61 = vpop.f32.mrb[7].mxu0  ;;  %4172 = vmatprep.subr.bf16.mxu1 %v4171_v45  ;;  %4236 = vmatprep.subr.bf16.mxu0 %v4235_v46  ;;  %v790_v4 = vld [vmem:[#allocation7 + $0x340] sm:$0xff]  ;;  %v824_v45 = vld [vmem:[#allocation7 + $0x450] sm:$0xff]  ;;  %v835_v46 = vld [vmem:[#allocation7 + $0x4a8] sm:$0xff] }
 0x1ff   : > { %v676_v6 = vadd.f32 %v675_v61, %v5661_v5  ;;  %1114 = vmatprep.mubr.f32.mxu1 %v5687_v55  ;;  %1203 = vmatprep.mubr.f32.mxu0 %v5687_v55  ;;  %v4241_v5 = vpack.c.bf16 %v769_v3, %v758_v2  ;;  %v4179_v19 = vpack.c.bf16 %v790_v4, %v779_v7  ;;  %v855_v56 = vld [vmem:[#allocation7 + $0x548] sm:$0xff]  ;;  %v877_v7 = vld [vmem:[#allocation7 + $0x5f8] sm:$0xff]  ;;  %v922_v27 = vld [vmem:[#allocation7 + $0x760] sm:$0xff] }
 0x200   : > { %v5693_v8 = vmax.f32 %v674_v60, 0.0  ;;  %1115 = vmatmul.mubr.f32.gmra.mrb[4].mxu1 %v5683_v54  ;;  %1204 = vmatmul.mubr.f32.gmra.mrb[12].mxu0 %v5683_v54  ;;  %v4253_v52 = vpack.c.bf16 %v835_v46, %v824_v45  ;;  %v857_v60 = vld [vmem:[#allocation7 + $0x558] sm:$0xff]  ;;  %v867_v61 = vld [vmem:[#allocation7 + $0x5a8] sm:$0xff]  ;;  %v4193_v2 = vpack.c.bf16 %v855_v56, %v844_v53  ;;  %v910_v32 = vld [vmem:[#allocation7 + $0x700] sm:$0xff] }
 0x201   : > { %v5697_v11 = vmax.f32 %v676_v6, 0.0  ;;  %4174 = vmatpush1.bf16.msra.mxu1 %v4173_v57  ;;  %4238 = vmatpush1.bf16.msra.mxu0 %v4237_v58  ;;  %v4191_v57 = vpack.c.bf16 %v856_v48, %v845_v47  ;;  %v4255_v58 = vpack.c.bf16 %v858_v50, %v847_v49  ;;  %v4257_v3 = vpack.c.bf16 %v857_v60, %v846_v59  ;;  %v866_v6 = vld [vmem:[#allocation7 + $0x5a0] sm:$0xff]  ;;  %v932_v46 = vld [vmem:[#allocation7 + $0x7b0] sm:$0xff]  ;;  %v943_v47 = vld [vmem:[#allocation7 + $0x808] sm:$0xff] }
 0x202   : > { %4176 = vmatprep.subr.bf16.mxu1 %v4175_v62  ;;  %4240 = vmatprep.subr.bf16.mxu0 %v4239_v63  ;;  %v878_v62 = vld [vmem:[#allocation7 + $0x600] sm:$0xff]  ;;  %v869_v63 = vld [vmem:[#allocation7 + $0x5b8] sm:$0xff]  ;;  %v4197_v16 = vpack.c.bf16 %v877_v7, %v866_v6  ;;  %v988_v6 = vld [vmem:[#allocation7 + $0x970] sm:$0xff] }
 0x203   : > { %1120 = vmatprep.mubr.f32.mxu1 %v5697_v11  ;;  %1209 = vmatprep.mubr.f32.mxu0 %v5697_v11  ;;  %v4195_v4 = vpack.c.bf16 %v878_v62, %v867_v61  ;;  %v4259_v9 = vpack.c.bf16 %v880_v1, %v869_v63  ;;  %v934_v50 = vld [vmem:[#allocation7 + $0x7c0] sm:$0xff]  ;;  %v957_v56 = vld [vmem:[#allocation7 + $0x878] sm:$0xff]  ;;  %v956_v1 = vld [vmem:[#allocation7 + $0x870] sm:$0xff] }
 0x204   : > { %1121 = vmatmul.mubr.f32.gmra.mrb[6].mxu1 %v5693_v8  ;;  %1210 = vmatmul.mubr.f32.gmra.mrb[14].mxu0 %v5693_v8  ;;  %v966_v53 = vld [vmem:[#allocation7 + $0x8c0] sm:$0xff]  ;;  %v965_v61 = vld [vmem:[#allocation7 + $0x8b8] sm:$0xff]  ;;  %v979_v7 = vld [vmem:[#allocation7 + $0x928] sm:$0xff] }
 0x205   : > { %4178 = vmatpush1.bf16.msra.mxu1 %v4177_v12  ;;  %4242 = vmatpush1.bf16.msra.mxu0 %v4241_v5  ;;  %v879_v12 = vld [vmem:[#allocation7 + $0x608] sm:$0xff]  ;;  %v889_v5 = vld [vmem:[#allocation7 + $0x658] sm:$0xff]  ;;  %v954_v60 = vld [vmem:[#allocation7 + $0x860] sm:$0xff] }
 0x206   : > { %1280 = vmatprep.mubr.f32.mxu1 %v5665_v18  ;;  %1369 = vmatprep.mubr.f32.mxu0 %v5665_v18  ;;  %v4261_v17 = vpack.c.bf16 %v879_v12, %v868_v10  ;;  %v4199_v21 = vpack.c.bf16 %v900_v13, %v889_v5  ;;  %v976_v12 = vld [vmem:[#allocation7 + $0x910] sm:$0xff]  ;;  %v987_v5 = vld [vmem:[#allocation7 + $0x968] sm:$0xff] }
 0x207   : > { %4180 = vmatprep.subr.bf16.mxu1 %v4179_v19  ;;  %4244 = vmatprep.subr.bf16.mxu0 %v4243_v20  ;;  %v888_v19 = vld [vmem:[#allocation7 + $0x650] sm:$0xff]  ;;  %v899_v20 = vld [vmem:[#allocation7 + $0x6a8] sm:$0xff] }
 0x209   : > { %4182 = vmatpush1.bf16.msra.mxu1 %v4181_v25  ;;  %4246 = vmatpush1.bf16.msra.mxu0 %v4245_v26  ;;  %v901_v25 = vld [vmem:[#allocation7 + $0x6b8] sm:$0xff]  ;;  %v911_v26 = vld [vmem:[#allocation7 + $0x708] sm:$0xff] }
 0x20a   : > { %4184 = vmatprep.subr.bf16.mxu1 %v4183_v29  ;;  %4248 = vmatprep.subr.bf16.mxu0 %v4247_v30  ;;  %v924_v29 = vld [vmem:[#allocation7 + $0x770] sm:$0xff]  ;;  %v4201_v30 = vpack.c.bf16 %v899_v20, %v888_v19  ;;  %v4265_v31 = vpack.c.bf16 %v901_v25, %v890_v23  ;;  %v4203_v34 = vpack.c.bf16 %v922_v27, %v911_v26  ;;  %v1010_v19 = vld [vmem:[#allocation7 + $0xa20] sm:$0xff]  ;;  %v1001_v20 = vld [vmem:[#allocation7 + $0x9d8] sm:$0xff] }
 0x20b   : > { %v4267_v35 = vpack.c.bf16 %v924_v29, %v913_v28  ;;  %v998_v25 = vld [vmem:[#allocation7 + $0x9c0] sm:$0xff]  ;;  %v1009_v26 = vld [vmem:[#allocation7 + $0xa18] sm:$0xff]  ;;  %v1000_v29 = vld [vmem:[#allocation7 + $0x9d0] sm:$0xff] }
 0x20d   : > { %4186 = vmatpush1.bf16.msra.mxu1 %v4185_v39  ;;  %4250 = vmatpush1.bf16.msra.mxu0 %v4249_v40  ;;  %v923_v39 = vld [vmem:[#allocation7 + $0x768] sm:$0xff]  ;;  %v933_v40 = vld [vmem:[#allocation7 + $0x7b8] sm:$0xff] }
 0x20e   : > { %4188 = vmatprep.subr.bf16.mxu1 %v4187_v43  ;;  %4252 = vmatprep.subr.bf16.mxu0 %v4251_v44  ;;  %v946_v43 = vld [vmem:[#allocation7 + $0x820] sm:$0xff]  ;;  %v4205_v44 = vpack.c.bf16 %v921_v33, %v910_v32  ;;  %v4269_v45 = vpack.c.bf16 %v923_v39, %v912_v38  ;;  %v4207_v48 = vpack.c.bf16 %v944_v41, %v933_v40  ;;  %v1032_v32 = vld [vmem:[#allocation7 + $0xad0] sm:$0xff]  ;;  %v1023_v33 = vld [vmem:[#allocation7 + $0xa88] sm:$0xff] }
 0x20f   : > { %v4271_v49 = vpack.c.bf16 %v946_v43, %v935_v42  ;;  %v1020_v39 = vld [vmem:[#allocation7 + $0xa70] sm:$0xff]  ;;  %v1031_v40 = vld [vmem:[#allocation7 + $0xac8] sm:$0xff]  ;;  %v1022_v43 = vld [vmem:[#allocation7 + $0xa80] sm:$0xff] }
 0x211   : > { %4190 = vmatpush1.bf16.msra.mxu1 %v4189_v51  ;;  %4254 = vmatpush1.bf16.msra.mxu0 %v4253_v52  ;;  %v945_v51 = vld [vmem:[#allocation7 + $0x818] sm:$0xff]  ;;  %v955_v52 = vld [vmem:[#allocation7 + $0x868] sm:$0xff] }
 0x212   : > { %4192 = vmatprep.subr.bf16.mxu1 %v4191_v57  ;;  %4256 = vmatprep.subr.bf16.mxu0 %v4255_v58  ;;  %v968_v57 = vld [vmem:[#allocation7 + $0x8d0] sm:$0xff]  ;;  %v4209_v58 = vpack.c.bf16 %v943_v47, %v932_v46  ;;  %v4273_v59 = vpack.c.bf16 %v945_v51, %v934_v50  ;;  %v4211_v62 = vpack.c.bf16 %v966_v53, %v955_v52  ;;  %v706_v46 = vld [vmem:[#allocation7 + $0xa0] sm:$0xff] }
 0x213   : > { %v4275_v63 = vpack.c.bf16 %v968_v57, %v957_v56  ;;  %v872_v47 = vld [vmem:[#allocation7 + $0x5d0] sm:$0xff]  ;;  %v694_v53 = vld [vmem:[#allocation7 + $0x40] sm:$0xff]  ;;  %v705_v56 = vld [vmem:[#allocation7 + $0x98] sm:$0xff] }
 0x214   : > { %v696_v57 = vld [vmem:[#allocation7 + $0x50] sm:$0xff] }
 0x215   : > { %4194 = vmatpush1.bf16.msra.mxu1 %v4193_v2  ;;  %4258 = vmatpush1.bf16.msra.mxu0 %v4257_v3  ;;  %v967_v2 = vld [vmem:[#allocation7 + $0x8c8] sm:$0xff]  ;;  %v977_v3 = vld [vmem:[#allocation7 + $0x918] sm:$0xff] }
 0x216   : > { %4196 = vmatprep.subr.bf16.mxu1 %v4195_v4  ;;  %4260 = vmatprep.subr.bf16.mxu0 %v4259_v9  ;;  %v990_v4 = vld [vmem:[#allocation7 + $0x980] sm:$0xff]  ;;  %v4213_v9 = vpack.c.bf16 %v965_v61, %v954_v60  ;;  %v4277_v10 = vpack.c.bf16 %v967_v2, %v956_v1  ;;  %v4215_v13 = vpack.c.bf16 %v988_v6, %v977_v3  ;;  %v728_v60 = vld [vmem:[#allocation7 + $0x150] sm:$0xff]  ;;  %v727_v3 = vld [vmem:[#allocation7 + $0x148] sm:$0xff] }
 0x217   : > { %v4279_v14 = vpack.c.bf16 %v990_v4, %v979_v7  ;;  %v894_v61 = vld [vmem:[#allocation7 + $0x680] sm:$0xff]  ;;  %v716_v2 = vld [vmem:[#allocation7 + $0xf0] sm:$0xff] }
 0x218   : > { %v718_v4 = vld [vmem:[#allocation7 + $0x100] sm:$0xff] }
 0x219   : > { %4198 = vmatpush1.bf16.msra.mxu1 %v4197_v16  ;;  %4262 = vmatpush1.bf16.msra.mxu0 %v4261_v17  ;;  %v989_v16 = vld [vmem:[#allocation7 + $0x978] sm:$0xff]  ;;  %v999_v17 = vld [vmem:[#allocation7 + $0x9c8] sm:$0xff] }
 0x21a   : > { %4200 = vmatprep.subr.bf16.mxu1 %v4199_v21  ;;  %4264 = vmatprep.subr.bf16.mxu0 %v4263_v22  ;;  %v1012_v21 = vld [vmem:[#allocation7 + $0xa30] sm:$0xff]  ;;  %v4217_v22 = vpack.c.bf16 %v987_v5, %v976_v12  ;;  %v4281_v23 = vpack.c.bf16 %v989_v16, %v978_v15  ;;  %v4219_v27 = vpack.c.bf16 %v1010_v19, %v999_v17  ;;  %v750_v12 = vld [vmem:[#allocation7 + $0x200] sm:$0xff]  ;;  %v749_v17 = vld [vmem:[#allocation7 + $0x1f8] sm:$0xff] }
 0x21b   : > { %v4283_v28 = vpack.c.bf16 %v1012_v21, %v1001_v20  ;;  %v916_v5 = vld [vmem:[#allocation7 + $0x730] sm:$0xff]  ;;  %v738_v16 = vld [vmem:[#allocation7 + $0x1a0] sm:$0xff] }
 0x21c   : > { %v740_v21 = vld [vmem:[#allocation7 + $0x1b0] sm:$0xff] }
 0x21d   : > { %4202 = vmatpush1.bf16.msra.mxu1 %v4201_v30  ;;  %4266 = vmatpush1.bf16.msra.mxu0 %v4265_v31  ;;  %v1011_v30 = vld [vmem:[#allocation7 + $0xa28] sm:$0xff]  ;;  %v1021_v31 = vld [vmem:[#allocation7 + $0xa78] sm:$0xff] }
 0x21e   : > { %4204 = vmatprep.subr.bf16.mxu1 %v4203_v34  ;;  %4268 = vmatprep.subr.bf16.mxu0 %v4267_v35  ;;  %v1034_v34 = vld [vmem:[#allocation7 + $0xae0] sm:$0xff]  ;;  %v4221_v35 = vpack.c.bf16 %v1009_v26, %v998_v25  ;;  %v4285_v38 = vpack.c.bf16 %v1011_v30, %v1000_v29  ;;  %v4223_v41 = vpack.c.bf16 %v1032_v32, %v1021_v31  ;;  %v772_v25 = vld [vmem:[#allocation7 + $0x2b0] sm:$0xff]  ;;  %v771_v31 = vld [vmem:[#allocation7 + $0x2a8] sm:$0xff] }
 0x21f   : > { %v4287_v42 = vpack.c.bf16 %v1034_v34, %v1023_v33  ;;  %v938_v26 = vld [vmem:[#allocation7 + $0x7e0] sm:$0xff]  ;;  %v760_v30 = vld [vmem:[#allocation7 + $0x250] sm:$0xff] }
 0x220   : > { %v762_v34 = vld [vmem:[#allocation7 + $0x260] sm:$0xff] }
 0x221   : > { %4206 = vmatpush1.bf16.msra.mxu1 %v4205_v44  ;;  %4270 = vmatpush1.bf16.msra.mxu0 %v4269_v45  ;;  %v1033_v44 = vld [vmem:[#allocation7 + $0xad8] sm:$0xff]  ;;  %v695_v45 = vld [vmem:[#allocation7 + $0x48] sm:$0xff] }
 0x222   : > { %4208 = vmatprep.subr.bf16.mxu1 %v4207_v48  ;;  %4272 = vmatprep.subr.bf16.mxu0 %v4271_v49  ;;  %v883_v48 = vld [vmem:[#allocation7 + $0x628] sm:$0xff]  ;;  %v4225_v49 = vpack.c.bf16 %v1031_v40, %v1020_v39  ;;  %v4289_v50 = vpack.c.bf16 %v1033_v44, %v1022_v43  ;;  %v4291_v51 = vpack.c.bf16 %v706_v46, %v695_v45  ;;  %v794_v39 = vld [vmem:[#allocation7 + $0x360] sm:$0xff]  ;;  %v960_v40 = vld [vmem:[#allocation7 + $0x890] sm:$0xff] }
 0x223   : > { %v4355_v52 = vpack.c.bf16 %v883_v48, %v872_v47  ;;  %v782_v44 = vld [vmem:[#allocation7 + $0x300] sm:$0xff]  ;;  %v793_v45 = vld [vmem:[#allocation7 + $0x358] sm:$0xff]  ;;  %v784_v48 = vld [vmem:[#allocation7 + $0x310] sm:$0xff] }
 0x225   : > { %4210 = vmatpush1.bf16.msra.mxu1 %v4209_v58  ;;  %4274 = vmatpush1.bf16.msra.mxu0 %v4273_v59  ;;  %v707_v58 = vld [vmem:[#allocation7 + $0xa8] sm:$0xff]  ;;  %v717_v59 = vld [vmem:[#allocation7 + $0xf8] sm:$0xff] }
 0x226   : > { %4212 = vmatprep.subr.bf16.mxu1 %v4211_v62  ;;  %4276 = vmatprep.subr.bf16.mxu0 %v4275_v63  ;;  %v905_v62 = vld [vmem:[#allocation7 + $0x6d8] sm:$0xff]  ;;  %v4293_v63 = vpack.c.bf16 %v705_v56, %v694_v53  ;;  %v4357_v1 = vpack.c.bf16 %v707_v58, %v696_v57  ;;  %v4295_v6 = vpack.c.bf16 %v728_v60, %v717_v59  ;;  %v804_v58 = vld [vmem:[#allocation7 + $0x3b0] sm:$0xff]  ;;  %v815_v59 = vld [vmem:[#allocation7 + $0x408] sm:$0xff] }
 0x227   : > { %v4359_v7 = vpack.c.bf16 %v905_v62, %v894_v61  ;;  %v993_v53 = vld [vmem:[#allocation7 + $0x998] sm:$0xff]  ;;  %v4309_v56 = vpack.c.bf16 %v793_v45, %v782_v44  ;;  %v806_v62 = vld [vmem:[#allocation7 + $0x3c0] sm:$0xff]  ;;  %v892_v44 = vld [vmem:[#allocation7 + $0x670] sm:$0xff] }
 0x228   : > { %v903_v45 = vld [vmem:[#allocation7 + $0x6c8] sm:$0xff] }
 0x229   : > { %4214 = vmatpush1.bf16.msra.mxu1 %v4213_v9  ;;  %4278 = vmatpush1.bf16.msra.mxu0 %v4277_v10  ;;  %v729_v9 = vld [vmem:[#allocation7 + $0x158] sm:$0xff]  ;;  %v739_v10 = vld [vmem:[#allocation7 + $0x1a8] sm:$0xff] }
 0x22a   : > { %4216 = vmatprep.subr.bf16.mxu1 %v4215_v13  ;;  %4280 = vmatprep.subr.bf16.mxu0 %v4279_v14  ;;  %v927_v13 = vld [vmem:[#allocation7 + $0x788] sm:$0xff]  ;;  %v4297_v14 = vpack.c.bf16 %v727_v3, %v716_v2  ;;  %v4361_v15 = vpack.c.bf16 %v729_v9, %v718_v4  ;;  %v4299_v19 = vpack.c.bf16 %v750_v12, %v739_v10  ;;  %v838_v2 = vld [vmem:[#allocation7 + $0x4c0] sm:$0xff]  ;;  %v1004_v3 = vld [vmem:[#allocation7 + $0x9f0] sm:$0xff] }
 0x22b   : > { %v4363_v20 = vpack.c.bf16 %v927_v13, %v916_v5  ;;  %v826_v4 = vld [vmem:[#allocation7 + $0x460] sm:$0xff]  ;;  %v837_v9 = vld [vmem:[#allocation7 + $0x4b8] sm:$0xff]  ;;  %v828_v5 = vld [vmem:[#allocation7 + $0x470] sm:$0xff] }
 0x22c   : > { %v839_v13 = vld [vmem:[#allocation7 + $0x4c8] sm:$0xff] }
 0x22d   : > { %4218 = vmatpush1.bf16.msra.mxu1 %v4217_v22  ;;  %4282 = vmatpush1.bf16.msra.mxu0 %v4281_v23  ;;  %v751_v22 = vld [vmem:[#allocation7 + $0x208] sm:$0xff]  ;;  %v761_v23 = vld [vmem:[#allocation7 + $0x258] sm:$0xff] }
 0x22e   : > { %4220 = vmatprep.subr.bf16.mxu1 %v4219_v27  ;;  %4284 = vmatprep.subr.bf16.mxu0 %v4283_v28  ;;  %v949_v27 = vld [vmem:[#allocation7 + $0x838] sm:$0xff]  ;;  %v4301_v28 = vpack.c.bf16 %v749_v17, %v738_v16  ;;  %v4365_v29 = vpack.c.bf16 %v751_v22, %v740_v21  ;;  %v4303_v32 = vpack.c.bf16 %v772_v25, %v761_v23  ;;  %v1026_v16 = vld [vmem:[#allocation7 + $0xaa0] sm:$0xff]  ;;  %v848_v21 = vld [vmem:[#allocation7 + $0x510] sm:$0xff] }
 0x22f   : > { %v4367_v33 = vpack.c.bf16 %v949_v27, %v938_v26  ;;  %v1037_v17 = vld [vmem:[#allocation7 + $0xaf8] sm:$0xff]  ;;  %v859_v25 = vld [vmem:[#allocation7 + $0x568] sm:$0xff]  ;;  %v850_v26 = vld [vmem:[#allocation7 + $0x520] sm:$0xff] }
 0x230   : > { %v4383_v23 = vpack.c.bf16 %v1037_v17, %v1026_v16  ;;  %v861_v27 = vld [vmem:[#allocation7 + $0x578] sm:$0xff] }
 0x231   : > { %4222 = vmatpush1.bf16.msra.mxu1 %v4221_v35  ;;  %4286 = vmatpush1.bf16.msra.mxu0 %v4285_v38  ;;  %v773_v35 = vld [vmem:[#allocation7 + $0x2b8] sm:$0xff]  ;;  %v783_v38 = vld [vmem:[#allocation7 + $0x308] sm:$0xff] }
 0x232   : > { %4224 = vmatprep.subr.bf16.mxu1 %v4223_v41  ;;  %4288 = vmatprep.subr.bf16.mxu0 %v4287_v42  ;;  %v971_v41 = vld [vmem:[#allocation7 + $0x8e8] sm:$0xff]  ;;  %v4305_v42 = vpack.c.bf16 %v771_v31, %v760_v30  ;;  %v4369_v43 = vpack.c.bf16 %v773_v35, %v762_v34  ;;  %v4307_v46 = vpack.c.bf16 %v794_v39, %v783_v38  ;;  %v881_v34 = vld [vmem:[#allocation7 + $0x618] sm:$0xff]  ;;  %v904_v38 = vld [vmem:[#allocation7 + $0x6d0] sm:$0xff] }
 0x233   : > { %v4371_v47 = vpack.c.bf16 %v971_v41, %v960_v40  ;;  %v4321_v30 = vpack.c.bf16 %v859_v25, %v848_v21  ;;  %v4385_v31 = vpack.c.bf16 %v861_v27, %v850_v26  ;;  %v893_v35 = vld [vmem:[#allocation7 + $0x678] sm:$0xff]  ;;  %v1573_v39 = vld [vmem:[#allocation9 + $0x8] sm:$0xff]  ;;  %v1764_v40 = vld [vmem:[#allocation10 + $0x180] sm:$0xff] }
 0x234   : > { %v1765_v41 = vld [vmem:[#allocation10 + $0x188] sm:$0xff]  ;;  %v1750_v21 = vld [vmem:[#allocation10 + $0x110] sm:$0xff]  ;;  %v1768_v25 = vld [vmem:[#allocation10 + $0x1a0] sm:$0xff] }
 0x235   : > { %4226 = vmatpush1.bf16.msra.mxu1 %v4225_v49  ;;  %4290 = vmatpush1.bf16.msra.mxu0 %v4289_v50  ;;  %v795_v49 = vld [vmem:[#allocation7 + $0x368] sm:$0xff]  ;;  %v805_v50 = vld [vmem:[#allocation7 + $0x3b8] sm:$0xff] }
 0x236   : > { %4292 = vmatprep.subr.bf16.mxu1 %v4291_v51  ;;  %4356 = vmatprep.subr.bf16.mxu0 %v4355_v52  ;;  %v816_v51 = vld [vmem:[#allocation7 + $0x410] sm:$0xff]  ;;  %v982_v52 = vld [vmem:[#allocation7 + $0x940] sm:$0xff]  ;;  %v4373_v57 = vpack.c.bf16 %v795_v49, %v784_v48  ;;  %v4419_v49 = vpack.c.bf16 %v1765_v41, %v1764_v40  ;;  %v1769_v26 = vld [vmem:[#allocation10 + $0x1a8] sm:$0xff] }
 0x237   : > { %v4311_v60 = vpack.c.bf16 %v816_v51, %v805_v50  ;;  %v4375_v61 = vpack.c.bf16 %v993_v53, %v982_v52  ;;  %v1572_v48 = vld [vmem:[#allocation9] sm:$0xff]  ;;  %v4329_v50 = vpack.c.bf16 %v903_v45, %v892_v44  ;;  %v925_v53 = vld [vmem:[#allocation7 + $0x778] sm:$0xff]  ;;  %v1771_v41 = vld [vmem:[#allocation10 + $0x1b8] sm:$0xff] }
 0x238   : > { %1281 = vmatmul.mubr.f32.vlgmr.msra.gmra.mrb[8].mxu1 %v5667_v24  ;;  %1370 = vmatmul.mubr.f32.vlgmr.msra.gmra.mrb[16].mxu0 %v5667_v24  ;;  %v914_v52 = vld [vmem:[#allocation7 + $0x720] sm:$0xff]  ;;  %v1035_v44 = vld [vmem:[#allocation7 + $0xae8] sm:$0xff] }
 0x239   : > { %1286 = vmatprep.mubr.f32.mxu1 %v5677_v37  ;;  %1375 = vmatprep.mubr.f32.mxu0 %v5677_v37  ;;  %v1770_v40 = vld [vmem:[#allocation10 + $0x1b0] sm:$0xff] }
 0x23a   : > { %4294 = vmatpush1.bf16.msra.mxu1 %v4293_v63  ;;  %4358 = vmatpush3.bf16.msra.mxu0 %v4357_v1  ;;  %v817_v63 = vld [vmem:[#allocation7 + $0x418] sm:$0xff]  ;;  %v827_v1 = vld [vmem:[#allocation7 + $0x468] sm:$0xff] }
 0x23b   : > { %4296 = vmatprep.subr.bf16.mxu1 %v4295_v6  ;;  %4360 = vmatprep.subr.bf16.mxu0 %v4359_v7  ;;  %v1015_v6 = vld [vmem:[#allocation7 + $0xa48] sm:$0xff]  ;;  %v4313_v7 = vpack.c.bf16 %v815_v59, %v804_v58  ;;  %v4315_v10 = vpack.c.bf16 %v838_v2, %v827_v1  ;;  %v4333_v58 = vpack.c.bf16 %v925_v53, %v914_v52  ;;  %v958_v2 = vld [vmem:[#allocation7 + $0x880] sm:$0xff]  ;;  %v1733_v52 = vld [vmem:[#allocation10 + $0x88] sm:$0xff] }
 0x23c   : > { %1287 = vmatmul.mubr.f32.gmra.mrb[10].mxu1 %v5673_v36  ;;  %1376 = vmatmul.mubr.f32.gmra.mrb[18].mxu0 %v5673_v36  ;;  %v4379_v12 = vpack.c.bf16 %v1015_v6, %v1004_v3  ;;  %v969_v3 = vld [vmem:[#allocation7 + $0x8d8] sm:$0xff]  ;;  %v1772_v53 = vld [vmem:[#allocation10 + $0x1c0] sm:$0xff] }
 0x23d   : > { %1292 = vmatprep.mubr.f32.mxu1 %v5687_v55  ;;  %1381 = vmatprep.mubr.f32.mxu0 %v5687_v55 }
 0x23e   : > { %4298 = vmatpush1.bf16.msra.mxu1 %v4297_v14  ;;  %4362 = vmatpush3.bf16.msra.mxu0 %v4361_v15  ;;  %v849_v14 = vld [vmem:[#allocation7 + $0x518] sm:$0xff]  ;;  %v860_v15 = vld [vmem:[#allocation7 + $0x570] sm:$0xff] }
 0x23f   : > { %4300 = vmatprep.subr.bf16.mxu1 %v4299_v19  ;;  %4364 = vmatprep.subr.bf16.mxu0 %v4363_v20  ;;  %v4317_v19 = vpack.c.bf16 %v837_v9, %v826_v4  ;;  %v4381_v20 = vpack.c.bf16 %v839_v13, %v828_v5  ;;  %v4319_v22 = vpack.c.bf16 %v860_v15, %v849_v14  ;;  %v1749_v4 = vld [vmem:[#allocation10 + $0x108] sm:$0xff]  ;;  %v992_v9 = vld [vmem:[#allocation7 + $0x990] sm:$0xff]  ;;  %v991_v14 = vld [vmem:[#allocation7 + $0x988] sm:$0xff] }
 0x240   : > { %1293 = vmatmul.mubr.f32.gmra.mrb[12].mxu1 %v5683_v54  ;;  %1382 = vmatmul.mubr.f32.gmra.mrb[20].mxu0 %v5683_v54  ;;  %v4341_v5 = vpack.c.bf16 %v969_v3, %v958_v2  ;;  %v980_v13 = vld [vmem:[#allocation7 + $0x930] sm:$0xff]  ;;  %v1568_v15 = vld [vmem:[%s5737_s27] sm:$0xff] }
 0x241   : > { %1298 = vmatprep.mubr.f32.mxu1 %v5697_v11  ;;  %1387 = vmatprep.mubr.f32.mxu0 %v5697_v11  ;;  %v4345_v27 = vpack.c.bf16 %v991_v14, %v980_v13  ;;  %v1756_v2 = vld [vmem:[#allocation10 + $0x140] sm:$0xff]  ;;  %v1757_v3 = vld [vmem:[#allocation10 + $0x148] sm:$0xff] }
 0x242   : > { %4302 = vmatpush1.bf16.msra.mxu1 %v4301_v28  ;;  %4366 = vmatpush3.bf16.msra.mxu0 %v4365_v29  ;;  %v871_v28 = vld [vmem:[#allocation7 + $0x5c8] sm:$0xff]  ;;  %v882_v29 = vld [vmem:[#allocation7 + $0x620] sm:$0xff]  ;;  %v1737_v13 = vld [vmem:[#allocation10 + $0xa8] sm:$0xff] }
 0x243   : > { %4304 = vmatprep.subr.bf16.mxu1 %v4303_v32  ;;  %4368 = vmatprep.subr.bf16.mxu0 %v4367_v33  ;;  %v4323_v32 = vpack.c.bf16 %v882_v29, %v871_v28  ;;  %v870_v33 = vld [vmem:[#allocation7 + $0x5c0] sm:$0xff]  ;;  %v1013_v29 = vld [vmem:[#allocation7 + $0xa38] sm:$0xff] }
 0x244   : > { %1299 = vmatmul.mubr.f32.gmra.mrb[14].mxu1 %v5693_v8  ;;  %1388 = vmatmul.mubr.f32.gmra.mrb[22].mxu0 %v5693_v8  ;;  %v1002_v28 = vld [vmem:[#allocation7 + $0x9e0] sm:$0xff] }
 0x245   : > { %1458 = vmatprep.mubr.f32.mxu1 %v5665_v18  ;;  %1547 = vmatprep.mubr.f32.mxu0 %v5665_v18  ;;  %v4377_v18 = vpack.c.bf16 %v817_v63, %v806_v62  ;;  %v959_v62 = vld [vmem:[#allocation7 + $0x888] sm:$0xff]  ;;  %v970_v63 = vld [vmem:[#allocation7 + $0x8e0] sm:$0xff] }
 0x246   : > { %4306 = vmatpush1.bf16.msra.mxu1 %v4305_v42  ;;  %4370 = vmatpush3.bf16.msra.mxu0 %v4369_v43  ;;  %v4325_v42 = vpack.c.bf16 %v881_v34, %v870_v33  ;;  %v4327_v43 = vpack.c.bf16 %v904_v38, %v893_v35  ;;  %v4339_v6 = vpack.c.bf16 %v970_v63, %v959_v62  ;;  %v1025_v33 = vld [vmem:[#allocation7 + $0xa98] sm:$0xff]  ;;  %v1752_v35 = vld [vmem:[#allocation10 + $0x120] sm:$0xff]  ;;  %v1734_v62 = vld [vmem:[#allocation10 + $0x90] sm:$0xff] }
 0x247   : > { %4308 = vmatprep.subr.bf16.mxu1 %v4307_v46  ;;  %4372 = vmatprep.subr.bf16.mxu0 %v4371_v47  ;;  %v915_v46 = vld [vmem:[#allocation7 + $0x728] sm:$0xff]  ;;  %v926_v47 = vld [vmem:[#allocation7 + $0x780] sm:$0xff]  ;;  %v4427_v34 = vpack.c.bf16 %v1769_v26, %v1768_v25  ;;  %v1753_v38 = vld [vmem:[#allocation10 + $0x128] sm:$0xff] }
 0x248   : > { %v4331_v51 = vpack.c.bf16 %v926_v47, %v915_v46  ;;  %v4429_v45 = vpack.c.bf16 %v1753_v38, %v1752_v35  ;;  %v1570_v46 = vld [vmem:[%s5737_s27 + $0x10] sm:$0xff]  ;;  %v1738_v25 = vld [vmem:[#allocation10 + $0xb0] sm:$0xff]  ;;  %v1741_v35 = vld [vmem:[#allocation10 + $0xc8] sm:$0xff] }
 0x24a   : > { %4310 = vmatpush1.bf16.msra.mxu1 %v4309_v56  ;;  %4374 = vmatpush3.bf16.msra.mxu0 %v4373_v57  ;;  %v937_v56 = vld [vmem:[#allocation7 + $0x7d8] sm:$0xff]  ;;  %v948_v57 = vld [vmem:[#allocation7 + $0x830] sm:$0xff] }
 0x24b   : > { %4312 = vmatprep.subr.bf16.mxu1 %v4311_v60  ;;  %4376 = vmatprep.subr.bf16.mxu0 %v4375_v61  ;;  %v4335_v59 = vpack.c.bf16 %v948_v57, %v937_v56  ;;  %v936_v60 = vld [vmem:[#allocation7 + $0x7d0] sm:$0xff]  ;;  %v947_v61 = vld [vmem:[#allocation7 + $0x828] sm:$0xff]  ;;  %v1773_v56 = vld [vmem:[#allocation10 + $0x1c8] sm:$0xff] }
 0x24c   : > { %v4337_v1 = vpack.c.bf16 %v947_v61, %v936_v60  ;;  %v1716_v60 = vld [vmem:[#allocation10] sm:$0xff]  ;;  %v1717_v61 = vld [vmem:[#allocation10 + $0x8] sm:$0xff]  ;;  %v4435_v63 = vpack.c.bf16 %v1773_v56, %v1772_v53 }
 0x24d   : > { %v1728_v53 = vld [vmem:[#allocation10 + $0x60] sm:$0xff] }
 0x24e   : > { %4314 = vmatpush1.bf16.msra.mxu1 %v4313_v7  ;;  %4378 = vmatpush3.bf16.msra.mxu0 %v4377_v18  ;;  %v981_v7 = vld [vmem:[#allocation7 + $0x938] sm:$0xff]  ;;  %v1748_v18 = vld [vmem:[#allocation10 + $0x100] sm:$0xff] }
 0x24f   : > { %4316 = vmatprep.subr.bf16.mxu1 %v4315_v10  ;;  %4380 = vmatprep.subr.bf16.mxu0 %v4379_v12  ;;  %v1766_v10 = vld [vmem:[#allocation10 + $0x190] sm:$0xff]  ;;  %v1767_v12 = vld [vmem:[#allocation10 + $0x198] sm:$0xff]  ;;  %v4421_v16 = vpack.c.bf16 %v1749_v4, %v1748_v18  ;;  %v4343_v17 = vpack.c.bf16 %v992_v9, %v981_v7  ;;  %v4389_v18 = vpack.c.bf16 %v1717_v61, %v1716_v60  ;;  %v1571_v56 = vld [vmem:[%s5737_s27 + $0x18] sm:$0xff] }
 0x250   : > { %v1775_v7 = vld [vmem:[#allocation10 + $0x1d8] sm:$0xff]  ;;  %v1718_v9 = vld [vmem:[#allocation10 + $0x10] sm:$0xff] }
 0x252   : > { %4318 = vmatpush1.bf16.msra.mxu1 %v4317_v19  ;;  %4382 = vmatpush3.bf16.msra.mxu0 %v4381_v20  ;;  %v1003_v19 = vld [vmem:[#allocation7 + $0x9e8] sm:$0xff]  ;;  %v4423_v20 = vpack.c.bf16 %v1767_v12, %v1766_v10  ;;  %v1736_v12 = vld [vmem:[#allocation10 + $0xa0] sm:$0xff] }
 0x253   : > { %4320 = vmatprep.subr.bf16.mxu1 %v4319_v22  ;;  %4384 = vmatprep.subr.bf16.mxu0 %v4383_v23  ;;  %v1751_v22 = vld [vmem:[#allocation10 + $0x118] sm:$0xff]  ;;  %v1014_v23 = vld [vmem:[#allocation7 + $0xa40] sm:$0xff] }
 0x254   : > { %v1719_v10 = vld [vmem:[#allocation10 + $0x18] sm:$0xff] }
 0x256   : > { %4322 = vmatpush1.bf16.msra.mxu1 %v4321_v30  ;;  %4386 = vmatpush3.bf16.msra.mxu0 %v4385_v31  ;;  %v4425_v30 = vpack.c.bf16 %v1751_v22, %v1750_v21  ;;  %v1569_v31 = vld [vmem:[%s5737_s27 + $0x8] sm:$0xff]  ;;  %v4395_v21 = vpack.c.bf16 %v1737_v13, %v1736_v12  ;;  %v1720_v22 = vld [vmem:[#allocation10 + $0x20] sm:$0xff] }
 0x257   : > { %4324 = vmatprep.subr.bf16.mxu1 %v4323_v32  ;;  %1587 = vmatprep.subr.mxu0 %v1573_v39  ;;  %v4347_v32 = vpack.c.bf16 %v1014_v23, %v1003_v19  ;;  %v1036_v39 = vld [vmem:[#allocation7 + $0xaf0] sm:$0xff]  ;;  %v1777_v19 = vld [vmem:[#allocation10 + $0x1e8] sm:$0xff]  ;;  %v1798_v12 = vld [vmem:[#allocation10 + $0x290] sm:$0xff] }
 0x258   : > { %v4351_v47 = vpack.c.bf16 %v1036_v39, %v1025_v33  ;;  %v1721_v23 = vld [vmem:[#allocation10 + $0x28] sm:$0xff] }
 0x259   : > { %1548 = vmatmul.mubr.f32.vlgmr.msra.gmra.mrb[24].mxu0 %v5667_v24  ;;  %v1725_v39 = vld [vmem:[#allocation10 + $0x48] sm:$0xff] }
 0x25a   : > { %4326 = vmatpush1.bf16.msra.mxu1 %v4325_v42  ;;  %1552 = vmatprep.mubr.f32.mxu0 %v5677_v37  ;;  %v4349_v42 = vpack.c.bf16 %v1013_v29, %v1002_v28  ;;  %v1760_v29 = vld [vmem:[#allocation10 + $0x160] sm:$0xff] }
 0x25b   : > { %4328 = vmatprep.subr.bf16.mxu1 %v4327_v43  ;;  %1588 = vmatpush1.msra.mxu0 %v1572_v48  ;;  %v1024_v43 = vld [vmem:[#allocation7 + $0xa90] sm:$0xff] }
 0x25c   : > { %4420 = vmatprep.subr.bf16.mxu0 %v4419_v49  ;;  %v1732_v48 = vld [vmem:[#allocation10 + $0x80] sm:$0xff]  ;;  %v4431_v49 = vpack.c.bf16 %v1771_v41, %v1770_v40  ;;  %v4353_v57 = vpack.c.bf16 %v1035_v44, %v1024_v43  ;;  %v1742_v40 = vld [vmem:[#allocation10 + $0xd0] sm:$0xff]  ;;  %v1743_v41 = vld [vmem:[#allocation10 + $0xd8] sm:$0xff] }
 0x25d   : > { %1553 = vmatmul.mubr.f32.gmra.mrb[26].mxu0 %v5673_v36  ;;  %v4407_v43 = vpack.c.bf16 %v1743_v41, %v1742_v40  ;;  %v1726_v44 = vld [vmem:[#allocation10 + $0x50] sm:$0xff] }
 0x25e   : > { %4330 = vmatpush1.bf16.msra.mxu1 %v4329_v50  ;;  %1557 = vmatprep.mubr.f32.mxu0 %v5687_v55  ;;  %v1754_v50 = vld [vmem:[#allocation10 + $0x130] sm:$0xff] }
 0x25f   : > { %4332 = vmatprep.subr.bf16.mxu1 %v4331_v51  ;;  %v1755_v51 = vld [vmem:[#allocation10 + $0x138] sm:$0xff] }
 0x261   : > { %1558 = vmatmul.mubr.f32.gmra.mrb[28].mxu0 %v5683_v54 }
 0x262   : > { %4334 = vmatpush1.bf16.msra.mxu1 %v4333_v58  ;;  %1562 = vmatprep.mubr.f32.mxu0 %v5697_v11  ;;  %v4433_v58 = vpack.c.bf16 %v1755_v51, %v1754_v50  ;;  %v1762_v50 = vld [vmem:[#allocation10 + $0x170] sm:$0xff]  ;;  %v1763_v51 = vld [vmem:[#allocation10 + $0x178] sm:$0xff] }
 0x263   : > { %4336 = vmatprep.subr.bf16.mxu1 %v4335_v59  ;;  %v4387_v59 = vpack.c.bf16 %v1733_v52, %v1732_v48 }
 0x265   : > { %1563 = vmatmul.mubr.f32.gmra.mrb[30].mxu0 %v5693_v8 }
 0x266   : > { %4338 = vmatpush1.bf16.msra.mxu1 %v4337_v1  ;;  %1651 = vmatprep.mubr.f32.mxu0 %v5271_v0  ;;  %v1735_v1 = vld [vmem:[#allocation10 + $0x98] sm:$0xff] }
 0x267   : > { %4340 = vmatprep.subr.bf16.mxu1 %v4339_v6  ;;  %v1774_v6 = vld [vmem:[#allocation10 + $0x1d0] sm:$0xff]  ;;  %v4391_v4 = vpack.c.bf16 %v1735_v1, %v1734_v62  ;;  %v1796_v1 = vld [vmem:[#allocation10 + $0x280] sm:$0xff] }
 0x268   : > { %v4439_v14 = vpack.c.bf16 %v1775_v7, %v1774_v6  ;;  %v1730_v62 = vld [vmem:[#allocation10 + $0x70] sm:$0xff]  ;;  %v1828_v7 = vld [vmem:[#allocation10 + $0x380] sm:$0xff] }
 0x269   : > { %3509 = vmatmul.mubr.msk.f32.vlgmr.msra.gmra.mrb[32].mxu0 %vm1574_vm0, %v1568_v15  ;;  %v1758_v15 = vld [vmem:[#allocation10 + $0x150] sm:$0xff] }
 0x26a   : > { %4342 = vmatpush1.bf16.msra.mxu1 %v4341_v5  ;;  %4422 = vmatpush3.bf16.msra.mxu0 %v4421_v16  ;;  %v4437_v5 = vpack.c.bf16 %v1757_v3, %v1756_v2  ;;  %v1759_v16 = vld [vmem:[#allocation10 + $0x158] sm:$0xff]  ;;  %v1797_v2 = vld [vmem:[#allocation10 + $0x288] sm:$0xff] }
 0x26b   : > { %4344 = vmatprep.subr.bf16.mxu1 %v4343_v17  ;;  %4424 = vmatprep.subr.bf16.mxu0 %v4423_v20  ;;  %v1776_v17 = vld [vmem:[#allocation10 + $0x1e0] sm:$0xff]  ;;  %v4393_v20 = vpack.c.bf16 %v1719_v10, %v1718_v9  ;;  %v4441_v26 = vpack.c.bf16 %v1759_v16, %v1758_v15  ;;  %v4451_v6 = vpack.c.bf16 %v1797_v2, %v1796_v1  ;;  %v1781_v10 = vld [vmem:[#allocation10 + $0x208] sm:$0xff] }
 0x26c   : > { %1657 = vmatprep.mubr.f32.mxu0 %v5271_v0  ;;  %v4443_v28 = vpack.c.bf16 %v1777_v19, %v1776_v17  ;;  %v1780_v9 = vld [vmem:[#allocation10 + $0x200] sm:$0xff] }
 0x26d   : > { %3510 = vmatmul.mubr.msk.f32.gmra.mrb[34].mxu0 %vm1574_vm0, %v1569_v31  ;;  %v1722_v31 = vld [vmem:[#allocation10 + $0x30] sm:$0xff]  ;;  %v4453_v19 = vpack.c.bf16 %v1781_v10, %v1780_v9  ;;  %v1792_v10 = vld [vmem:[#allocation10 + $0x260] sm:$0xff] }
 0x26e   : > { %4346 = vmatpush1.bf16.msra.mxu1 %v4345_v27  ;;  %4426 = vmatpush3.bf16.msra.mxu0 %v4425_v30  ;;  %v1739_v27 = vld [vmem:[#allocation10 + $0xb8] sm:$0xff]  ;;  %v1761_v30 = vld [vmem:[#allocation10 + $0x168] sm:$0xff] }
 0x26f   : > { %4348 = vmatprep.subr.bf16.mxu1 %v4347_v32  ;;  %4428 = vmatprep.subr.bf16.mxu0 %v4427_v34  ;;  %v1723_v32 = vld [vmem:[#allocation10 + $0x38] sm:$0xff]  ;;  %v4445_v33 = vpack.c.bf16 %v1761_v30, %v1760_v29  ;;  %v1740_v34 = vld [vmem:[#allocation10 + $0xc0] sm:$0xff] }
 0x270   : > { %1663 = vmatprep.mubr.f32.mxu0 %v5271_v0  ;;  %v4401_v38 = vpack.c.bf16 %v1723_v32, %v1722_v31 }
 0x271   : > { %3511 = vmatmul.mubr.msk.f32.gmra.mrb[36].mxu0 %vm1574_vm0, %v1570_v46  ;;  %v1778_v46 = vld [vmem:[#allocation10 + $0x1f0] sm:$0xff] }
 0x272   : > { %4350 = vmatpush1.bf16.msra.mxu1 %v4349_v42  ;;  %4430 = vmatpush3.bf16.msra.mxu0 %v4429_v45  ;;  %v1744_v45 = vld [vmem:[#allocation10 + $0xe0] sm:$0xff] }
 0x273   : > { %4352 = vmatprep.subr.bf16.mxu1 %v4351_v47  ;;  %4432 = vmatprep.subr.bf16.mxu0 %v4431_v49  ;;  %v1779_v47 = vld [vmem:[#allocation10 + $0x1f8] sm:$0xff] }
 0x274   : > { %1669 = vmatprep.mubr.f32.mxu0 %v5271_v0  ;;  %v4447_v49 = vpack.c.bf16 %v1779_v47, %v1778_v46 }
 0x275   : > { %3512 = vmatmul.mubr.msk.f32.gmra.mrb[38].mxu0 %vm1574_vm0, %v1571_v56 }
 0x276   : > { %4354 = vmatpush1.bf16.msra.mxu1 %v4353_v57  ;;  %4434 = vmatpush3.bf16.msra.mxu0 %v4433_v58  ;;  %v4449_v57 = vpack.c.bf16 %v1763_v51, %v1762_v50  ;;  %v1746_v58 = vld [vmem:[#allocation10 + $0xf0] sm:$0xff] }
 0x277   : > { %4388 = vmatprep.subr.bf16.mxu1 %v4387_v59  ;;  %4436 = vmatprep.subr.bf16.mxu0 %v4435_v63  ;;  %v1747_v59 = vld [vmem:[#allocation10 + $0xf8] sm:$0xff] }
 0x278   : > { %v4415_v61 = vpack.c.bf16 %v1747_v59, %v1746_v58  ;;  %v1731_v63 = vld [vmem:[#allocation10 + $0x78] sm:$0xff]  ;;  %v1788_v58 = vld [vmem:[#allocation10 + $0x240] sm:$0xff]  ;;  %v1789_v59 = vld [vmem:[#allocation10 + $0x248] sm:$0xff] }
 0x279   : > { %1459 = vmatmul.mubr.f32.vlgmr.msra.gmra.mrb[16].mxu1 %v5667_v24  ;;  %v4397_v24 = vpack.c.bf16 %v1721_v23, %v1720_v22  ;;  %v4417_v3 = vpack.c.bf16 %v1731_v63, %v1730_v62  ;;  %v1782_v23 = vld [vmem:[#allocation10 + $0x210] sm:$0xff]  ;;  %v1807_v63 = vld [vmem:[#allocation10 + $0x2d8] sm:$0xff]  ;;  %v4469_v1 = vpack.c.bf16 %v1789_v59, %v1788_v58 }
 0x27a   : > { %1464 = vmatprep.mubr.f32.mxu1 %v5677_v37  ;;  %4390 = vmatpush3.bf16.msra.mxu1 %v4389_v18  ;;  %v4399_v37 = vpack.c.bf16 %v1739_v27, %v1738_v25  ;;  %v1829_v18 = vld [vmem:[#allocation10 + $0x388] sm:$0xff]  ;;  %v1783_v25 = vld [vmem:[#allocation10 + $0x218] sm:$0xff]  ;;  %v1806_v62 = vld [vmem:[#allocation10 + $0x2d0] sm:$0xff] }
 0x27b   : > { %4392 = vmatprep.subr.bf16.mxu1 %v4391_v4  ;;  %4438 = vmatpush3.bf16.msra.mxu0 %v4437_v5  ;;  %v4483_v4 = vpack.c.bf16 %v1829_v18, %v1828_v7  ;;  %v1799_v5 = vld [vmem:[#allocation10 + $0x298] sm:$0xff]  ;;  %v1801_v27 = vld [vmem:[#allocation10 + $0x2a8] sm:$0xff]  ;;  %v4457_v30 = vpack.c.bf16 %v1783_v25, %v1782_v23  ;;  %v4471_v2 = vpack.c.bf16 %v1807_v63, %v1806_v62  ;;  %v1808_v7 = vld [vmem:[#allocation10 + $0x2e0] sm:$0xff] }
 0x27c   : > { %4440 = vmatprep.subr.bf16.mxu0 %v4439_v14  ;;  %v4455_v22 = vpack.c.bf16 %v1799_v5, %v1798_v12  ;;  %v1809_v18 = vld [vmem:[#allocation10 + $0x2e8] sm:$0xff]  ;;  %v1810_v5 = vld [vmem:[#allocation10 + $0x2f0] sm:$0xff] }
 0x27d   : > { %1465 = vmatmul.mubr.f32.gmra.mrb[18].mxu1 %v5673_v36  ;;  %v4403_v36 = vpack.c.bf16 %v1741_v35, %v1740_v34  ;;  %v1785_v34 = vld [vmem:[#allocation10 + $0x228] sm:$0xff]  ;;  %v4475_v9 = vpack.c.bf16 %v1809_v18, %v1808_v7  ;;  %v1830_v25 = vld [vmem:[#allocation10 + $0x390] sm:$0xff]  ;;  %v1819_v7 = vld [vmem:[#allocation10 + $0x338] sm:$0xff] }
 0x27e   : > { %1470 = vmatprep.mubr.f32.mxu1 %v5687_v55  ;;  %4394 = vmatpush3.bf16.msra.mxu1 %v4393_v20  ;;  %v1724_v55 = vld [vmem:[#allocation10 + $0x40] sm:$0xff]  ;;  %v1793_v12 = vld [vmem:[#allocation10 + $0x268] sm:$0xff] }
 0x27f   : > { %4396 = vmatprep.subr.bf16.mxu1 %v4395_v21  ;;  %4442 = vmatpush3.bf16.msra.mxu0 %v4441_v26  ;;  %v4405_v42 = vpack.c.bf16 %v1725_v39, %v1724_v55  ;;  %v1800_v26 = vld [vmem:[#allocation10 + $0x2a0] sm:$0xff]  ;;  %v1803_v55 = vld [vmem:[#allocation10 + $0x2b8] sm:$0xff]  ;;  %v1813_v23 = vld [vmem:[#allocation10 + $0x308] sm:$0xff] }
 0x280   : > { %4444 = vmatprep.subr.bf16.mxu0 %v4443_v28  ;;  %v4459_v32 = vpack.c.bf16 %v1801_v27, %v1800_v26  ;;  %v1831_v26 = vld [vmem:[#allocation10 + $0x398] sm:$0xff]  ;;  %v1837_v18 = vld [vmem:[#allocation10 + $0x3c8] sm:$0xff] }
 0x281   : > { %1471 = vmatmul.mubr.f32.gmra.mrb[20].mxu1 %v5683_v54  ;;  %v1727_v54 = vld [vmem:[#allocation10 + $0x58] sm:$0xff] }
 0x282   : > { %1476 = vmatprep.mubr.f32.mxu1 %v5697_v11  ;;  %4398 = vmatpush3.bf16.msra.mxu1 %v4397_v24  ;;  %v1745_v11 = vld [vmem:[#allocation10 + $0xe8] sm:$0xff]  ;;  %v4409_v48 = vpack.c.bf16 %v1727_v54, %v1726_v44 }
 0x283   : > { %4400 = vmatprep.subr.bf16.mxu1 %v4399_v37  ;;  %4446 = vmatpush3.bf16.msra.mxu0 %v4445_v33  ;;  %v4411_v52 = vpack.c.bf16 %v1745_v11, %v1744_v45  ;;  %v1784_v33 = vld [vmem:[#allocation10 + $0x220] sm:$0xff]  ;;  %v1786_v45 = vld [vmem:[#allocation10 + $0x230] sm:$0xff]  ;;  %v1787_v11 = vld [vmem:[#allocation10 + $0x238] sm:$0xff] }
 0x284   : > { %4448 = vmatprep.subr.bf16.mxu0 %v4447_v49  ;;  %v4461_v41 = vpack.c.bf16 %v1785_v34, %v1784_v33  ;;  %v1805_v49 = vld [vmem:[#allocation10 + $0x2c8] sm:$0xff] }
 0x285   : > { %1477 = vmatmul.mubr.f32.gmra.mrb[22].mxu1 %v5693_v8  ;;  %v1729_v8 = vld [vmem:[#allocation10 + $0x68] sm:$0xff] }
 0x286   : > { %4402 = vmatpush3.bf16.msra.mxu1 %v4401_v38  ;;  %v4413_v60 = vpack.c.bf16 %v1729_v8, %v1728_v53 }
 0x287   : > { %4404 = vmatprep.subr.bf16.mxu1 %v4403_v36  ;;  %4450 = vmatpush3.bf16.msra.mxu0 %v4449_v57  ;;  %v1802_v36 = vld [vmem:[#allocation10 + $0x2b0] sm:$0xff] }
 0x288   : > { %4484 = vmatprep.subr.bf16.mxu0 %v4483_v4  ;;  %v4463_v54 = vpack.c.bf16 %v1803_v55, %v1802_v36  ;;  %v1814_v36 = vld [vmem:[#allocation10 + $0x310] sm:$0xff]  ;;  %v1815_v55 = vld [vmem:[#allocation10 + $0x318] sm:$0xff] }
 0x28a   : > { %4406 = vmatpush3.bf16.msra.mxu1 %v4405_v42 }
 0x28b   : > { %4408 = vmatprep.subr.bf16.mxu1 %v4407_v43 }
 0x28e   : > { %4410 = vmatpush3.bf16.msra.mxu1 %v4409_v48  ;;  %v1804_v48 = vld [vmem:[#allocation10 + $0x2c0] sm:$0xff] }
 0x28f   : > { %4412 = vmatprep.subr.bf16.mxu1 %v4411_v52  ;;  %v4465_v52 = vpack.c.bf16 %v1787_v11, %v1786_v45  ;;  %v4467_v57 = vpack.c.bf16 %v1805_v49, %v1804_v48 }
 0x292   : > { %4414 = vmatpush3.bf16.msra.mxu1 %v4413_v60 }
 0x293   : > { %4416 = vmatprep.subr.bf16.mxu1 %v4415_v61 }
 0x296   : > { %4418 = vmatpush3.bf16.msra.mxu1 %v4417_v3  ;;  %v1790_v3 = vld [vmem:[#allocation10 + $0x250] sm:$0xff] }
 0x297   : > { %4452 = vmatprep.subr.bf16.mxu1 %v4451_v6  ;;  %v1791_v6 = vld [vmem:[#allocation10 + $0x258] sm:$0xff] }
 0x298   : > { %v4473_v4 = vpack.c.bf16 %v1791_v6, %v1790_v3  ;;  %v1818_v6 = vld [vmem:[#allocation10 + $0x330] sm:$0xff] }
 0x2cb   : > { %v5759_v13 = vpop.f32.mrb[0].mxu1  ;;  %v1193_v14 = vpop.f32.mrb[8].mxu0 }
 0x2cc   : > { %v1685_v15 = vmul.f32 %v1193_v14, %v5759_v13  ;;  %v1106_v16 = vpop.f32.mrb[1].mxu1  ;;  %v1195_v17 = vpop.f32.mrb[9].mxu0  ;;  %v1811_v14 = vld [vmem:[#allocation10 + $0x2f8] sm:$0xff] }
 0x2cd   : > { %v1684_v20 = vmul.f32 %v1106_v16, %v5759_v13  ;;  %v5764_v21 = vmul.f32 %v1195_v17, %v5759_v13  ;;  %v4479_v16 = vpack.c.bf16 %v1811_v14, %v1810_v5  ;;  %v1794_v17 = vld [vmem:[#allocation10 + $0x270] sm:$0xff] }
 0x2ce   : > { %1908 = vmatprep.mubr.f32.mxu1 %v1685_v15  ;;  %v4477_v15 = vpack.c.bf16 %v1793_v12, %v1792_v10 }
 0x2cf   : > { %1909 = vmatmul.mubr.f32.vlgmr.msra.gmra.mrb[24].mxu1 %v1684_v20  ;;  %v5766_v28 = vpop.f32.mrb[2].mxu1  ;;  %v1199_v29 = vpop.f32.mrb[10].mxu0 }
 0x2d0   : > { %4454 = vmatpush3.bf16.msra.mxu1 %v4453_v19  ;;  %v1693_v24 = vmul.f32 %v1199_v29, %v5766_v28  ;;  %v1112_v37 = vpop.f32.mrb[3].mxu1  ;;  %v1201_v31 = vpop.f32.mrb[11].mxu0  ;;  %v1795_v19 = vld [vmem:[#allocation10 + $0x278] sm:$0xff] }
 0x2d1   : > { %4456 = vmatprep.subr.bf16.mxu1 %v4455_v22  ;;  %v1692_v35 = vmul.f32 %v1112_v37, %v5766_v28  ;;  %v5771_v38 = vmul.f32 %v1201_v31, %v5766_v28  ;;  %v4481_v20 = vpack.c.bf16 %v1795_v19, %v1794_v17  ;;  %v1812_v22 = vld [vmem:[#allocation10 + $0x300] sm:$0xff] }
 0x2d2   : > { %1913 = vmatprep.mubr.f32.mxu1 %v1693_v24 }
 0x2d3   : > { %v5773_v39 = vpop.f32.mrb[4].mxu1  ;;  %v1205_v40 = vpop.f32.mrb[12].mxu0  ;;  %1914 = vmatmul.mubr.f32.gmra.mrb[26].mxu1 %v1692_v35  ;;  %v4487_v35 = vpack.c.bf16 %v1831_v26, %v1830_v25 }
 0x2d4   : > { %4458 = vmatpush3.bf16.msra.mxu1 %v4457_v30  ;;  %v1701_v42 = vmul.f32 %v1205_v40, %v5773_v39  ;;  %v1118_v43 = vpop.f32.mrb[5].mxu1  ;;  %v1207_v44 = vpop.f32.mrb[13].mxu0  ;;  %v1832_v40 = vld [vmem:[#allocation10 + $0x3a0] sm:$0xff] }
 0x2d5   : > { %4460 = vmatprep.subr.bf16.mxu1 %v4459_v32  ;;  %v1700_v46 = vmul.f32 %v1118_v43, %v5773_v39  ;;  %v5778_v47 = vmul.f32 %v1207_v44, %v5773_v39  ;;  %v4485_v32 = vpack.c.bf16 %v1813_v23, %v1812_v22  ;;  %v1821_v22 = vld [vmem:[#allocation10 + $0x348] sm:$0xff]  ;;  %v1839_v23 = vld [vmem:[#allocation10 + $0x3d8] sm:$0xff] }
 0x2d6   : > { %1918 = vmatprep.mubr.f32.mxu1 %v1701_v42 }
 0x2d7   : > { %v5780_v50 = vpop.f32.mrb[6].mxu1  ;;  %v1211_v51 = vpop.f32.mrb[14].mxu0  ;;  %1919 = vmatmul.mubr.f32.gmra.mrb[28].mxu1 %v1700_v46  ;;  %v4489_v46 = vpack.c.bf16 %v1815_v55, %v1814_v36  ;;  %v1843_v36 = vld [vmem:[#allocation10 + $0x3f8] sm:$0xff] }
 0x2d8   : > { %4462 = vmatpush3.bf16.msra.mxu1 %v4461_v41  ;;  %v1709_v53 = vmul.f32 %v1211_v51, %v5780_v50  ;;  %v1124_v8 = vpop.f32.mrb[7].mxu1  ;;  %v1213_v56 = vpop.f32.mrb[15].mxu0  ;;  %v1833_v41 = vld [vmem:[#allocation10 + $0x3a8] sm:$0xff] }
 0x2d9   : > { %4464 = vmatprep.subr.bf16.mxu1 %v4463_v54  ;;  %v1708_v60 = vmul.f32 %v1124_v8, %v5780_v50  ;;  %v5785_v61 = vmul.f32 %v1213_v56, %v5780_v50  ;;  %v4491_v51 = vpack.c.bf16 %v1833_v41, %v1832_v40  ;;  %v1835_v8 = vld [vmem:[#allocation10 + $0x3b8] sm:$0xff]  ;;  %v1826_v40 = vld [vmem:[#allocation10 + $0x370] sm:$0xff] }
 0x2da   : > { %1923 = vmatprep.mubr.f32.mxu1 %v1709_v53  ;;  %v1817_v53 = vld [vmem:[#allocation10 + $0x328] sm:$0xff]  ;;  %v1827_v41 = vld [vmem:[#allocation10 + $0x378] sm:$0xff] }
 0x2db   : > { %1924 = vmatmul.mubr.f32.gmra.mrb[30].mxu1 %v1708_v60 }
 0x2dc   : > { %4466 = vmatpush3.bf16.msra.mxu1 %v4465_v52  ;;  %v1816_v52 = vld [vmem:[#allocation10 + $0x320] sm:$0xff] }
 0x2dd   : > { %4468 = vmatprep.subr.bf16.mxu1 %v4467_v57  ;;  %v4493_v63 = vpack.c.bf16 %v1817_v53, %v1816_v52 }
 0x2e0   : > { %4470 = vmatpush3.bf16.msra.mxu1 %v4469_v1 }
 0x2e1   : > { %4472 = vmatprep.subr.bf16.mxu1 %v4471_v2 }
 0x2e4   : > { %4474 = vmatpush3.bf16.msra.mxu1 %v4473_v4 }
 0x2e5   : > { %4476 = vmatprep.subr.bf16.mxu1 %v4475_v9 }
 0x2e8   : > { %4478 = vmatpush3.bf16.msra.mxu1 %v4477_v15  ;;  %v4497_v15 = vpack.c.bf16 %v1819_v7, %v1818_v6 }
 0x2e9   : > { %4480 = vmatprep.subr.bf16.mxu1 %v4479_v16 }
 0x2ec   : > { %4482 = vmatpush3.bf16.msra.mxu1 %v4481_v20  ;;  %v1820_v20 = vld [vmem:[#allocation10 + $0x340] sm:$0xff] }
 0x2ed   : > { %v4501_v25 = vpack.c.bf16 %v1821_v22, %v1820_v20 }
 0x30b   : > { %v1282_v27 = vpop.f32.mrb[8].mxu1  ;;  %v1371_v29 = vpop.f32.mrb[16].mxu0 }
 0x30c   : > { %v1687_v30 = vmul.f32 %v1282_v27, %v5759_v13  ;;  %v1689_v24 = vmul.f32 %v1371_v29, %v5759_v13  ;;  %v1284_v37 = vpop.f32.mrb[9].mxu1  ;;  %v1373_v31 = vpop.f32.mrb[17].mxu0  ;;  %v1822_v27 = vld [vmem:[#allocation10 + $0x350] sm:$0xff]  ;;  %v1823_v29 = vld [vmem:[#allocation10 + $0x358] sm:$0xff] }
 0x30d   : > { %v1688_v33 = vmul.f32 %v1284_v37, %v5759_v13  ;;  %v5791_v34 = vmul.f32 %v1373_v31, %v5759_v13  ;;  %v4505_v37 = vpack.c.bf16 %v1823_v29, %v1822_v27  ;;  %v2211_v27 = vld [vmem:[#allocation12 + $0x18] sm:$0xff] }
 0x30e   : > { %1993 = vmatprep.mubr.f32.mxu0 %v1687_v30  ;;  %2078 = vmatprep.mubr.f32.mxu1 %v1689_v24  ;;  %v1840_v30 = vld [vmem:[#allocation10 + $0x3e0] sm:$0xff]  ;;  %v1841_v24 = vld [vmem:[#allocation10 + $0x3e8] sm:$0xff] }
 0x30f   : > { %v1288_v42 = vpop.f32.mrb[10].mxu1  ;;  %v1377_v43 = vpop.f32.mrb[18].mxu0  ;;  %1994 = vmatmul.mubr.f32.vlgmr.msra.gmra.mrb[40].mxu0 %v5764_v21  ;;  %2079 = vmatmul.mubr.f32.vlgmr.msra.gmra.mrb[32].mxu1 %v1688_v33  ;;  %v1834_v21 = vld [vmem:[#allocation10 + $0x3b0] sm:$0xff]  ;;  %v4507_v31 = vpack.c.bf16 %v1841_v24, %v1840_v30  ;;  %v1825_v33 = vld [vmem:[#allocation10 + $0x368] sm:$0xff]  ;;  %v2212_v30 = vld [vmem:[#allocation12 + $0x20] sm:$0xff] }
 0x310   : > { %v1695_v44 = vmul.f32 %v1288_v42, %v5766_v28  ;;  %v1697_v54 = vmul.f32 %v1377_v43, %v5766_v28  ;;  %v1290_v45 = vpop.f32.mrb[11].mxu1  ;;  %v1379_v11 = vpop.f32.mrb[19].mxu0  ;;  %4486 = vmatpush3.bf16.msra.mxu0 %v4485_v32  ;;  %v4495_v3 = vpack.c.bf16 %v1835_v8, %v1834_v21  ;;  %v1824_v32 = vld [vmem:[#allocation10 + $0x360] sm:$0xff]  ;;  %v4513_v42 = vpack.c.bf16 %v1827_v41, %v1826_v40  ;;  %v2213_v24 = vld [vmem:[#allocation12 + $0x28] sm:$0xff] }
 0x311   : > { %v1696_v48 = vmul.f32 %v1290_v45, %v5766_v28  ;;  %v5798_v49 = vmul.f32 %v1379_v11, %v5766_v28  ;;  %4488 = vmatprep.subr.bf16.mxu0 %v4487_v35  ;;  %v1842_v35 = vld [vmem:[#allocation10 + $0x3f0] sm:$0xff]  ;;  %v4509_v55 = vpack.c.bf16 %v1825_v33, %v1824_v32  ;;  %v2215_v32 = vld [vmem:[#allocation12 + $0x38] sm:$0xff] }
 0x312   : > { %1998 = vmatprep.mubr.f32.mxu0 %v1695_v44  ;;  %2083 = vmatprep.mubr.f32.mxu1 %v1697_v54 }
 0x313   : > { %v1294_v56 = vpop.f32.mrb[12].mxu1  ;;  %v1383_v57 = vpop.f32.mrb[20].mxu0  ;;  %1999 = vmatmul.mubr.f32.gmra.mrb[42].mxu0 %v5771_v38  ;;  %2084 = vmatmul.mubr.f32.gmra.mrb[34].mxu1 %v1696_v48  ;;  %v1836_v38 = vld [vmem:[#allocation10 + $0x3c0] sm:$0xff] }
 0x314   : > { %v1703_v58 = vmul.f32 %v1294_v56, %v5773_v39  ;;  %v1705_v59 = vmul.f32 %v1383_v57, %v5773_v39  ;;  %v1296_v60 = vpop.f32.mrb[13].mxu1  ;;  %v1385_v62 = vpop.f32.mrb[21].mxu0  ;;  %4490 = vmatpush3.bf16.msra.mxu0 %v4489_v46  ;;  %v4499_v19 = vpack.c.bf16 %v1837_v18, %v1836_v38 }
 0x315   : > { %v1704_v1 = vmul.f32 %v1296_v60, %v5773_v39  ;;  %v5805_v2 = vmul.f32 %v1385_v62, %v5773_v39  ;;  %4492 = vmatprep.subr.bf16.mxu0 %v4491_v51 }
 0x316   : > { %2003 = vmatprep.mubr.f32.mxu0 %v1703_v58  ;;  %2088 = vmatprep.mubr.f32.mxu1 %v1705_v59 }
 0x317   : > { %v1300_v4 = vpop.f32.mrb[14].mxu1  ;;  %v1389_v9 = vpop.f32.mrb[22].mxu0  ;;  %2004 = vmatmul.mubr.f32.gmra.mrb[44].mxu0 %v5778_v47  ;;  %2089 = vmatmul.mubr.f32.gmra.mrb[36].mxu1 %v1704_v1  ;;  %v1838_v47 = vld [vmem:[#allocation10 + $0x3d0] sm:$0xff] }
 0x318   : > { %v1711_v10 = vmul.f32 %v1300_v4, %v5780_v50  ;;  %v1713_v12 = vmul.f32 %v1389_v9, %v5780_v50  ;;  %v1302_v5 = vpop.f32.mrb[15].mxu1  ;;  %v1391_v14 = vpop.f32.mrb[23].mxu0  ;;  %4494 = vmatpush3.bf16.msra.mxu0 %v4493_v63  ;;  %v4503_v26 = vpack.c.bf16 %v1839_v23, %v1838_v47  ;;  %v2208_v23 = vld [vmem:[#allocation12] sm:$0xff] }
 0x319   : > { %v1712_v16 = vmul.f32 %v1302_v5, %v5780_v50  ;;  %v5812_v17 = vmul.f32 %v1391_v14, %v5780_v50  ;;  %4496 = vmatprep.subr.bf16.mxu0 %v4495_v3 }
 0x31a   : > { %2008 = vmatprep.mubr.f32.mxu0 %v1711_v10  ;;  %2093 = vmatprep.mubr.f32.mxu1 %v1713_v12 }
 0x31b   : > { %2009 = vmatmul.mubr.f32.gmra.mrb[46].mxu0 %v5785_v61  ;;  %2094 = vmatmul.mubr.f32.gmra.mrb[38].mxu1 %v1712_v16  ;;  %v4511_v61 = vpack.c.bf16 %v1843_v36, %v1842_v35 }
 0x31c   : > { %4498 = vmatpush3.bf16.msra.mxu0 %v4497_v15 }
 0x31d   : > { %4500 = vmatprep.subr.bf16.mxu0 %v4499_v19 }
 0x320   : > { %4502 = vmatpush3.bf16.msra.mxu0 %v4501_v25  ;;  %v2210_v25 = vld [vmem:[#allocation12 + $0x10] sm:$0xff] }
 0x321   : > { %4504 = vmatprep.subr.bf16.mxu0 %v4503_v26  ;;  %v4519_v29 = vpack.c.bf16 %v2211_v27, %v2210_v25 }
 0x324   : > { %4506 = vmatpush3.bf16.msra.mxu0 %v4505_v37  ;;  %v4523_v37 = vpack.c.bf16 %v2213_v24, %v2212_v30 }
 0x325   : > { %4508 = vmatprep.subr.bf16.mxu0 %v4507_v31  ;;  %v2214_v31 = vld [vmem:[#allocation12 + $0x30] sm:$0xff] }
 0x326   : > { %v4527_v33 = vpack.c.bf16 %v2215_v32, %v2214_v31 }
 0x328   : > { %4510 = vmatpush3.bf16.msra.mxu0 %v4509_v55 }
 0x329   : > { %4512 = vmatprep.subr.bf16.mxu0 %v4511_v61 }
 0x32c   : > { %v3581_v43 = vpop.f32.mrb[24].mxu0  ;;  %4514 = vmatpush3.bf16.msra.mxu0 %v4513_v42 }
 0x32d   : > { %v3582_v44 = vpop.f32.mrb[25].mxu0 }
 0x32e   : > { %v5815_v54 = vadd.f32 %v3582_v44, %v3581_v43 }
 0x330   : > { %v3584_v45 = vpop.f32.mrb[26].mxu0 }
 0x331   : > { %v3585_v11 = vpop.f32.mrb[27].mxu0 }
 0x332   : > { %v5817_v46 = vadd.f32 %v3585_v11, %v3584_v45 }
 0x334   : > { %v3587_v48 = vpop.f32.mrb[28].mxu0 }
 0x335   : > { %v3588_v51 = vpop.f32.mrb[29].mxu0 }
 0x336   : > { %v5819_v52 = vadd.f32 %v3588_v51, %v3587_v48 }
 0x338   : > { %v3590_v53 = vpop.f32.mrb[30].mxu0 }
 0x339   : > { %v3591_v21 = vpop.f32.mrb[31].mxu0 }
 0x33a   : > { %v5821_v8 = vadd.f32 %v3591_v21, %v3590_v53 }
 0x33c   : > { %v5823_v56 = vpop.f32.mrb[32].mxu0 }
 0x33d   : > { %v5825_v57 = vpop.f32.mrb[33].mxu0  ;;  %vm1676_vm1 = vcmp.gt.f32.partialorder %v5823_v56, 0.5 }
 0x33e   : > { %vm5902_vm5 = vmneg %vm1676_vm1  ;;  %vm1680_vm10 = vcmp.gt.f32.partialorder %v5825_v57, 0.5 }
 0x340   : > { %v5827_v58 = vpop.f32.mrb[34].mxu0 }
 0x341   : > { %v5829_v59 = vpop.f32.mrb[35].mxu0  ;;  %vm1677_vm2 = vcmp.gt.f32.partialorder %v5827_v58, 0.5  ;;  %v2388_v58 = vld [vmem:[#allocation13 + $0x1f8] sm:$0xff] }
 0x342   : > { %vm5919_vm6 = vmneg %vm1677_vm2  ;;  %vm1681_vm11 = vcmp.gt.f32.partialorder %v5829_v59, 0.5 }
 0x344   : > { %v5831_v60 = vpop.f32.mrb[36].mxu0 }
 0x345   : > { %v5833_v62 = vpop.f32.mrb[37].mxu0  ;;  %vm1678_vm3 = vcmp.gt.f32.partialorder %v5831_v60, 0.5  ;;  %v2394_v60 = vld [vmem:[#allocation13 + $0x228] sm:$0xff] }
 0x346   : > { %vm5931_vm7 = vmneg %vm1678_vm3  ;;  %vm1682_vm12 = vcmp.gt.f32.partialorder %v5833_v62, 0.5 }
 0x34c   : > { %v1460_v63 = vpop.f32.mrb[16].mxu1 }
 0x34d   : > { %v1691_v1 = vmul.f32 %v1460_v63, %v5759_v13  ;;  %v5836_v3 = vpop.f32.mrb[17].mxu1 }
 0x34f   : > { %2163 = vmatprep.mubr.f32.mxu0 %v1691_v1 }
 0x350   : > { %v1466_v6 = vpop.f32.mrb[18].mxu1  ;;  %2164 = vmatmul.mubr.f32.vlgmr.msra.gmra.mrb[48].mxu0 %v5791_v34 }
 0x351   : > { %v1699_v7 = vmul.f32 %v1466_v6, %v5766_v28  ;;  %v5840_v38 = vpop.f32.mrb[19].mxu1  ;;  %v5852_v28 = vpop.f32.mrb[38].mxu0 }
 0x352   : > { %v5854_v34 = vpop.f32.mrb[39].mxu0  ;;  %vm1679_vm4 = vcmp.gt.f32.partialorder %v5852_v28, 0.5  ;;  %v2395_v28 = vld [vmem:[#allocation13 + $0x230] sm:$0xff] }
 0x353   : > { %2168 = vmatprep.mubr.f32.mxu0 %v1699_v7  ;;  %vm5948_vm8 = vmneg %vm1679_vm4  ;;  %vm1683_vm13 = vcmp.gt.f32.partialorder %v5854_v34, 0.5 }
 0x354   : > { %v1472_v18 = vpop.f32.mrb[20].mxu1  ;;  %2169 = vmatmul.mubr.f32.gmra.mrb[50].mxu0 %v5798_v49 }
 0x355   : > { %v1707_v4 = vmul.f32 %v1472_v18, %v5773_v39  ;;  %v5844_v9 = vpop.f32.mrb[21].mxu1 }
 0x357   : > { %2173 = vmatprep.mubr.f32.mxu0 %v1707_v4 }
 0x358   : > { %v1478_v13 = vpop.f32.mrb[22].mxu1  ;;  %2174 = vmatmul.mubr.f32.gmra.mrb[52].mxu0 %v5805_v2 }
 0x359   : > { %v1715_v10 = vmul.f32 %v1478_v13, %v5780_v50  ;;  %v5848_v12 = vpop.f32.mrb[23].mxu1 }
 0x35b   : > { %2178 = vmatprep.mubr.f32.mxu0 %v1715_v10 }
 0x35c   : > { %2179 = vmatmul.mubr.f32.gmra.mrb[54].mxu0 %v5812_v17  ;;  %v2209_v17 = vld [vmem:[#allocation12 + $0x8] sm:$0xff] }
 0x35d   : > { %2517 = vmatprep.mubr.f32.mxu0 %v5271_v0  ;;  %v4515_v26 = vpack.c.bf16 %v2209_v17, %v2208_v23 }
 0x35f   : > { %4516 = vmatprep.subr.bf16.mxu1 %v4515_v26 }
 0x360   : > { %4518 = vmatpush3.bf16.msra.mxu1 %v4515_v26 }
 0x361   : > { %4520 = vmatprep.subr.bf16.mxu1 %v4519_v29 }
 0x364   : > { %4522 = vmatpush3.bf16.msra.mxu1 %v4519_v29 }
 0x365   : > { %4524 = vmatprep.subr.bf16.mxu1 %v4523_v37 }
 0x368   : > { %4526 = vmatpush3.bf16.msra.mxu1 %v4523_v37 }
 0x369   : > { %4528 = vmatprep.subr.bf16.mxu1 %v4527_v33 }
 0x36c   : > { %4530 = vmatpush3.bf16.msra.mxu1 %v4527_v33 }
 0x3a2   : > { %v3625_v39 = vpop.f32.mrb[24].mxu1 }
 0x3a3   : > { %v3626_v49 = vpop.f32.mrb[25].mxu1 }
 0x3a4   : > { %v3627_v5 = vadd.f32 %v3626_v49, %v3625_v39 }
 0x3a6   : > { %v3628_v14 = vpop.f32.mrb[26].mxu1 }
 0x3a7   : > { %v3629_v15 = vpop.f32.mrb[27].mxu1 }
 0x3a8   : > { %v3630_v16 = vadd.f32 %v3629_v15, %v3628_v14 }
 0x3aa   : > { %v3631_v2 = vpop.f32.mrb[28].mxu1 }
 0x3ab   : > { %v3632_v19 = vpop.f32.mrb[29].mxu1 }
 0x3ac   : > { %v3633_v50 = vadd.f32 %v3632_v19, %v3631_v2 }
 0x3ae   : > { %v3634_v20 = vpop.f32.mrb[30].mxu1 }
 0x3af   : > { %v3635_v22 = vpop.f32.mrb[31].mxu1 }
 0x3b0   : > { %v3636_v47 = vadd.f32 %v3635_v22, %v3634_v20 }
 0x3e2   : > { %v3669_v35 = vpop.f32.mrb[40].mxu0  ;;  %v3713_v36 = vpop.f32.mrb[32].mxu1 }
 0x3e3   : > { %v3670_v55 = vpop.f32.mrb[41].mxu0  ;;  %v3714_v61 = vpop.f32.mrb[33].mxu1 }
 0x3e4   : > { %v3671_v40 = vadd.f32 %v3670_v55, %v3669_v35  ;;  %v3715_v41 = vadd.f32 %v3714_v61, %v3713_v36 }
 0x3e6   : > { %v1996_v42 = vadd.f32 %v3671_v40, %v3627_v5  ;;  %v3672_v43 = vpop.f32.mrb[42].mxu0  ;;  %v3716_v44 = vpop.f32.mrb[34].mxu1 }
 0x3e7   : > { %v3673_v45 = vpop.f32.mrb[43].mxu0  ;;  %v3717_v11 = vpop.f32.mrb[35].mxu1 }
 0x3e8   : > { %v2081_v48 = vadd.f32 %v3715_v41, %v1996_v42  ;;  %v3674_v51 = vadd.f32 %v3673_v45, %v3672_v43  ;;  %v3718_v53 = vadd.f32 %v3717_v11, %v3716_v44  ;;  %v2216_v41 = vld [vmem:[#allocation12 + $0x40] sm:$0xff]  ;;  %v2217_v42 = vld [vmem:[#allocation12 + $0x48] sm:$0xff]  ;;  %v2218_v44 = vld [vmem:[#allocation12 + $0x50] sm:$0xff] }
 0x3e9   : > { %v4531_v43 = vpack.c.bf16 %v2217_v42, %v2216_v41  ;;  %v2219_v45 = vld [vmem:[#allocation12 + $0x58] sm:$0xff] }
 0x3ea   : > { %v2001_v21 = vadd.f32 %v3674_v51, %v3630_v16  ;;  %v3675_v63 = vpop.f32.mrb[44].mxu0  ;;  %v3719_v1 = vpop.f32.mrb[36].mxu1  ;;  %v4535_v11 = vpack.c.bf16 %v2219_v45, %v2218_v44  ;;  %v2221_v51 = vld [vmem:[#allocation12 + $0x68] sm:$0xff] }
 0x3eb   : > { %v3676_v6 = vpop.f32.mrb[45].mxu0  ;;  %v3720_v7 = vpop.f32.mrb[37].mxu1  ;;  %4532 = vmatprep.subr.bf16.mxu1 %v4531_v43 }
 0x3ec   : > { %v2086_v18 = vadd.f32 %v3718_v53, %v2001_v21  ;;  %v3677_v4 = vadd.f32 %v3676_v6, %v3675_v63  ;;  %v3721_v13 = vadd.f32 %v3720_v7, %v3719_v1  ;;  %4534 = vmatpush3.bf16.msra.mxu1 %v4531_v43  ;;  %v2222_v21 = vld [vmem:[#allocation12 + $0x70] sm:$0xff]  ;;  %v2223_v63 = vld [vmem:[#allocation12 + $0x78] sm:$0xff]  ;;  %v2326_v6 = vld [vmem:[#allocation13 + $0x8] sm:$0xff] }
 0x3ed   : > { %4536 = vmatprep.subr.bf16.mxu1 %v4535_v11  ;;  %v4543_v1 = vpack.c.bf16 %v2223_v63, %v2222_v21  ;;  %v2334_v7 = vld [vmem:[#allocation13 + $0x48] sm:$0xff]  ;;  %v2344_v63 = vld [vmem:[#allocation13 + $0x98] sm:$0xff] }
 0x3ee   : > { %v2006_v10 = vadd.f32 %v3677_v4, %v3633_v50  ;;  %v3678_v39 = vpop.f32.mrb[46].mxu0  ;;  %v3722_v49 = vpop.f32.mrb[38].mxu1  ;;  %v4547_v4 = vpack.c.bf16 %v2334_v7, %v2326_v6  ;;  %v2343_v7 = vld [vmem:[#allocation13 + $0x90] sm:$0xff] }
 0x3ef   : > { %v3679_v14 = vpop.f32.mrb[47].mxu0  ;;  %v3723_v5 = vpop.f32.mrb[39].mxu1 }
 0x3f0   : > { %v2091_v15 = vadd.f32 %v3721_v13, %v2006_v10  ;;  %v3680_v2 = vadd.f32 %v3679_v14, %v3678_v39  ;;  %v3724_v19 = vadd.f32 %v3723_v5, %v3722_v49  ;;  %4538 = vmatpush3.bf16.msra.mxu1 %v4535_v11  ;;  %v2336_v13 = vld [vmem:[#allocation13 + $0x58] sm:$0xff]  ;;  %v2325_v10 = vld [vmem:[#allocation13] sm:$0xff]  ;;  %v2342_v5 = vld [vmem:[#allocation13 + $0x88] sm:$0xff]  ;;  %4548 = vmatprep.subr.bf16.mxu0 %v4547_v4 }
 0x3f1   : > { %v2333_v39 = vld [vmem:[#allocation13 + $0x40] sm:$0xff]  ;;  %v2360_v4 = vld [vmem:[#allocation13 + $0x118] sm:$0xff] }
 0x3f2   : > { %v2011_v20 = vadd.f32 %v3680_v2, %v3636_v47  ;;  %v4549_v14 = vpack.c.bf16 %v2333_v39, %v2325_v10  ;;  %v2359_v39 = vld [vmem:[#allocation13 + $0x110] sm:$0xff] }
 0x3f4   : > { %v2096_v22 = vadd.f32 %v3724_v19, %v2011_v20  ;;  %4550 = vmatpush1.bf16.msra.mxu0 %v4549_v14  ;;  %v2341_v19 = vld [vmem:[#allocation13 + $0x80] sm:$0xff] }
 0x3f5   : > { %v2349_v20 = vld [vmem:[#allocation13 + $0xc0] sm:$0xff] }
 0x423   : > { %v3757_v23 = vpop.f32.mrb[48].mxu0 }
 0x424   : > { %v3758_v17 = vpop.f32.mrb[49].mxu0 }
 0x425   : > { %v3759_v16 = vadd.f32 %v3758_v17, %v3757_v23  ;;  %v2358_v23 = vld [vmem:[#allocation13 + $0x108] sm:$0xff] }
 0x426   : > { %v2366_v17 = vld [vmem:[#allocation13 + $0x148] sm:$0xff] }
 0x427   : > { %v3760_v25 = vpop.f32.mrb[50].mxu0  ;;  %v2166_v26 = vadd.f32 %v3759_v16, %v2081_v48  ;;  %v2220_v48 = vld [vmem:[#allocation12 + $0x60] sm:$0xff]  ;;  %v4555_v16 = vpack.c.bf16 %v2366_v17, %v2358_v23 }
 0x428   : > { %v3761_v27 = vpop.f32.mrb[51].mxu0  ;;  %v4539_v53 = vpack.c.bf16 %v2221_v51, %v2220_v48  ;;  %v2327_v51 = vld [vmem:[#allocation13 + $0x10] sm:$0xff] }
 0x429   : > { %v3762_v29 = vadd.f32 %v3761_v27, %v3760_v25  ;;  %v5859_v50 = vsel %vm1676_vm1, -1e+30, %v2166_v26  ;;  %v2357_v25 = vld [vmem:[#allocation13 + $0x100] sm:$0xff] }
 0x42a   : > { %2188 = vmax.xlane.f32.xlu0 %v5859_v50  ;;  %4540 = vmatprep.subr.bf16.mxu1 %v4539_v53  ;;  %v2365_v26 = vld [vmem:[#allocation13 + $0x140] sm:$0xff] }
 0x42b   : > { %v3763_v30 = vpop.f32.mrb[52].mxu0  ;;  %v2171_v24 = vadd.f32 %v3762_v29, %v2086_v18  ;;  %4542 = vmatpush3.bf16.msra.mxu1 %v4539_v53  ;;  %v2328_v18 = vld [vmem:[#allocation13 + $0x18] sm:$0xff]  ;;  %v4557_v27 = vpack.c.bf16 %v2365_v26, %v2357_v25  ;;  %v2374_v29 = vld [vmem:[#allocation13 + $0x188] sm:$0xff]  ;;  %v2335_v53 = vld [vmem:[#allocation13 + $0x50] sm:$0xff] }
 0x42c   : > { %v3764_v47 = vpop.f32.mrb[53].mxu0  ;;  %4544 = vmatprep.subr.bf16.mxu1 %v4543_v1  ;;  %v4579_v49 = vpack.c.bf16 %v2336_v13, %v2328_v18  ;;  %v2351_v18 = vld [vmem:[#allocation13 + $0xd0] sm:$0xff]  ;;  %v2368_v13 = vld [vmem:[#allocation13 + $0x158] sm:$0xff]  ;;  %v2398_v25 = vld [vmem:[#allocation13 + $0x248] sm:$0xff] }
 0x42d   : > { %v3765_v37 = vadd.f32 %v3764_v47, %v3763_v30  ;;  %v5865_v31 = vsel %vm1677_vm2, -1e+30, %v2171_v24  ;;  %v2382_v30 = vld [vmem:[#allocation13 + $0x1c8] sm:$0xff]  ;;  %v2373_v47 = vld [vmem:[#allocation13 + $0x180] sm:$0xff]  ;;  %v4587_v10 = vpack.c.bf16 %v2368_v13, %v2360_v4  ;;  %v2392_v26 = vld [vmem:[#allocation13 + $0x218] sm:$0xff] }
 0x42e   : > { %2190 = vmax.xlane.f32.xlu0 %v5865_v31  ;;  %v4559_v24 = vpack.c.bf16 %v2382_v30, %v2374_v29  ;;  %v2400_v29 = vld [vmem:[#allocation13 + $0x258] sm:$0xff]  ;;  %v2389_v30 = vld [vmem:[#allocation13 + $0x200] sm:$0xff] }
 0x42f   : > { %v3766_v32 = vpop.f32.mrb[54].mxu0  ;;  %v2176_v33 = vadd.f32 %v3765_v37, %v2091_v15  ;;  %4546 = vmatpush3.bf16.msra.mxu1 %v4543_v1  ;;  %v2350_v15 = vld [vmem:[#allocation13 + $0xc8] sm:$0xff]  ;;  %v2381_v37 = vld [vmem:[#allocation13 + $0x1c0] sm:$0xff]  ;;  %v2352_v1 = vld [vmem:[#allocation13 + $0xd8] sm:$0xff] }
 0x430   : > { %v3767_v35 = vpop.f32.mrb[55].mxu0  ;;  %4580 = vmatprep.subr.bf16.mxu1 %v4579_v49  ;;  %v4551_v2 = vpack.c.bf16 %v2350_v15, %v2342_v5  ;;  %v4583_v6 = vpack.c.bf16 %v2352_v1, %v2344_v63  ;;  %v2367_v49 = vld [vmem:[#allocation13 + $0x150] sm:$0xff]  ;;  %v2376_v5 = vld [vmem:[#allocation13 + $0x198] sm:$0xff]  ;;  %v2422_v63 = vld [vmem:[#allocation13 + $0x308] sm:$0xff] }
 0x431   : > { %v3768_v36 = vadd.f32 %v3767_v35, %v3766_v32  ;;  %v5871_v55 = vsel %vm1678_vm3, -1e+30, %v2176_v33  ;;  %v4561_v32 = vpack.c.bf16 %v2381_v37, %v2373_v47  ;;  %v2384_v15 = vld [vmem:[#allocation13 + $0x1d8] sm:$0xff]  ;;  %v4595_v47 = vpack.c.bf16 %v2400_v29, %v2392_v26  ;;  %v2430_v1 = vld [vmem:[#allocation13 + $0x348] sm:$0xff]  ;;  %v2429_v4 = vld [vmem:[#allocation13 + $0x340] sm:$0xff] }
 0x432   : > { %2192 = vmax.xlane.f32.xlu1 %v5871_v55  ;;  %4552 = vmatprep.subr.bf16.mxu0 %v4551_v2  ;;  %v4589_v2 = vpack.c.bf16 %v2367_v49, %v2359_v39  ;;  %v2431_v39 = vld [vmem:[#allocation13 + $0x350] sm:$0xff] }
 0x433   : > { %v2181_v61 = vadd.f32 %v3768_v36, %v2096_v22  ;;  %v4553_v22 = vpack.c.bf16 %v2349_v20, %v2341_v19  ;;  %v4591_v19 = vpack.c.bf16 %v2384_v15, %v2376_v5  ;;  %v2375_v20 = vld [vmem:[#allocation13 + $0x190] sm:$0xff]  ;;  %v2438_v5 = vld [vmem:[#allocation13 + $0x388] sm:$0xff] }
 0x434   : > { %v2446_v15 = vld [vmem:[#allocation13 + $0x3c8] sm:$0xff]  ;;  %v2439_v26 = vld [vmem:[#allocation13 + $0x390] sm:$0xff] }
 0x435   : > { %v5877_v40 = vsel %vm1679_vm4, -1e+30, %v2181_v61  ;;  %4554 = vmatpush1.bf16.msra.mxu0 %v4553_v22  ;;  %v2383_v22 = vld [vmem:[#allocation13 + $0x1d0] sm:$0xff] }
 0x436   : > { %2194 = vmax.xlane.f32.xlu1 %v5877_v40  ;;  %4556 = vmatprep.subr.bf16.mxu0 %v4555_v16  ;;  %v4593_v17 = vpack.c.bf16 %v2383_v22, %v2375_v20  ;;  %v2390_v16 = vld [vmem:[#allocation13 + $0x208] sm:$0xff]  ;;  %v2448_v20 = vld [vmem:[#allocation13 + $0x3d8] sm:$0xff]  ;;  %v2437_v22 = vld [vmem:[#allocation13 + $0x380] sm:$0xff] }
 0x439   : > { %4558 = vmatpush1.bf16.msra.mxu0 %v4557_v27  ;;  %v4563_v27 = vpack.c.bf16 %v2398_v25, %v2390_v16 }
 0x43a   : > { %4560 = vmatprep.subr.bf16.mxu0 %v4559_v24  ;;  %v2397_v24 = vld [vmem:[#allocation13 + $0x240] sm:$0xff] }
 0x43b   : > { %v4565_v37 = vpack.c.bf16 %v2397_v24, %v2389_v30  ;;  %v2330_v30 = vld [vmem:[#allocation13 + $0x28] sm:$0xff] }
 0x43c   : > { %v2338_v24 = vld [vmem:[#allocation13 + $0x68] sm:$0xff] }
 0x43d   : > { %4562 = vmatpush1.bf16.msra.mxu0 %v4561_v32  ;;  %v2391_v32 = vld [vmem:[#allocation13 + $0x210] sm:$0xff] }
 0x43e   : > { %4564 = vmatprep.subr.bf16.mxu0 %v4563_v27  ;;  %v2447_v27 = vld [vmem:[#allocation13 + $0x3d0] sm:$0xff] }
 0x43f   : > { %v4609_v29 = vpack.c.bf16 %v2447_v27, %v2439_v26  ;;  %v2369_v26 = vld [vmem:[#allocation13 + $0x160] sm:$0xff]  ;;  %v2363_v27 = vld [vmem:[#allocation13 + $0x130] sm:$0xff] }
 0x441   : > { %4566 = vmatpush1.bf16.msra.mxu0 %v4565_v37  ;;  %v4611_v37 = vpack.c.bf16 %v2338_v24, %v2330_v30 }
 0x4b7   : > { %v2189_v33 = vpop.xlane.xlu0 %2188 }
 0x4b8   : > { %v2196_v35 = vsub.f32 %v5859_v50, %v2189_v33  ;;  %v2399_v33 = vld [vmem:[#allocation13 + $0x250] sm:$0xff] }
 0x4ba   : > { %v2200_v36 = vmul.f32 1.442695, %v2196_v35  ;;  %v4597_v35 = vpack.c.bf16 %v2399_v33, %v2391_v32  ;;  %v2340_v32 = vld [vmem:[#allocation13 + $0x78] sm:$0xff] }
 0x4bb   : > { %v2191_v61 = vpop.xlane.xlu0 %2190 }
 0x4bc   : > { %4932 = vpow2.f32 %v2200_v36  ;;  %v2197_v41 = vsub.f32 %v5865_v31, %v2191_v61  ;;  %v4581_v31 = vpack.c.bf16 %v2335_v53, %v2327_v51  ;;  %v2406_v36 = vld [vmem:[#allocation13 + $0x288] sm:$0xff]  ;;  %v2407_v51 = vld [vmem:[#allocation13 + $0x290] sm:$0xff] }
 0x4bd   : > { %v2414_v61 = vld [vmem:[#allocation13 + $0x2c8] sm:$0xff]  ;;  %v2415_v53 = vld [vmem:[#allocation13 + $0x2d0] sm:$0xff] }
 0x4be   : > { %v2202_v42 = vmul.f32 1.442695, %v2197_v41  ;;  %v2408_v41 = vld [vmem:[#allocation13 + $0x298] sm:$0xff] }
 0x4bf   : > { %v2193_v43 = vpop.xlane.xlu1 %2192 }
 0x4c0   : > { %4934 = vpow2.f32 %v2202_v42  ;;  %v2198_v44 = vsub.f32 %v5871_v55, %v2193_v43  ;;  %v4567_v42 = vpack.c.bf16 %v2414_v61, %v2406_v36  ;;  %v2416_v43 = vld [vmem:[#allocation13 + $0x2d8] sm:$0xff] }
 0x4c2   : > { %v2204_v45 = vmul.f32 1.442695, %v2198_v44  ;;  %v2405_v44 = vld [vmem:[#allocation13 + $0x280] sm:$0xff]  ;;  %4568 = vmatprep.subr.bf16.mxu0 %v4567_v42 }
 0x4c3   : > { %v2195_v11 = vpop.xlane.xlu1 %2194 }
 0x4c4   : > { %4936 = vpow2.f32 %v2204_v45  ;;  %v2199_v48 = vsub.f32 %v5877_v40, %v2195_v11  ;;  %v4585_v40 = vpack.c.bf16 %v2351_v18, %v2343_v7  ;;  %v2413_v45 = vld [vmem:[#allocation13 + $0x2c0] sm:$0xff]  ;;  %v4599_v11 = vpack.c.bf16 %v2416_v43, %v2408_v41  ;;  %v2432_v7 = vld [vmem:[#allocation13 + $0x358] sm:$0xff] }
 0x4c5   : > { %v2421_v18 = vld [vmem:[#allocation13 + $0x300] sm:$0xff] }
 0x4c6   : > { %v5884_v21 = vpop.eup %4932  ;;  %v2206_v50 = vmul.f32 1.442695, %v2199_v48  ;;  %v4569_v48 = vpack.c.bf16 %v2413_v45, %v2405_v44 }
 0x4c7   : > { %3997 = vmatprep.mubr.f32.mxu1 %v5884_v21 }
 0x4c8   : > { %4938 = vpow2.f32 %v2206_v50  ;;  %v4601_v50 = vpack.c.bf16 %v2415_v53, %v2407_v51  ;;  %4570 = vmatpush1.bf16.msra.mxu0 %v4569_v48  ;;  %v2337_v48 = vld [vmem:[#allocation13 + $0x60] sm:$0xff]  ;;  %v2331_v51 = vld [vmem:[#allocation13 + $0x30] sm:$0xff] }
 0x4c9   : > { %v2339_v53 = vld [vmem:[#allocation13 + $0x70] sm:$0xff] }
 0x4ca   : > { %v5887_v55 = vpop.eup %4934 }
 0x4cb   : > { %3998 = vmatmul.mubr.f32.vlgmr.msra.gmra.mrb[40].mxu1 %v5887_v55 }
 0x4cc   : > { %4582 = vmatpush1.bf16.msra.mxu1 %v4581_v31  ;;  %v2424_v31 = vld [vmem:[#allocation13 + $0x318] sm:$0xff] }
 0x4cd   : > { %4584 = vmatprep.subr.bf16.mxu1 %v4583_v6  ;;  %v4571_v6 = vpack.c.bf16 %v2430_v1, %v2422_v63  ;;  %v4603_v13 = vpack.c.bf16 %v2432_v7, %v2424_v31  ;;  %v2354_v63 = vld [vmem:[#allocation13 + $0xe8] sm:$0xff]  ;;  %v2348_v1 = vld [vmem:[#allocation13 + $0xb8] sm:$0xff] }
 0x4ce   : > { %v5890_v14 = vpop.eup %4936  ;;  %v2356_v31 = vld [vmem:[#allocation13 + $0xf8] sm:$0xff] }
 0x4cf   : > { %4000 = vmatprep.mubr.f32.mxu1 %v5890_v14  ;;  %4572 = vmatprep.subr.bf16.mxu0 %v4571_v6 }
 0x4d0   : > { %4586 = vmatpush1.bf16.msra.mxu1 %v4585_v40  ;;  %v4573_v40 = vpack.c.bf16 %v2429_v4, %v2421_v18  ;;  %v4645_v18 = vpack.c.bf16 %v2339_v53, %v2331_v51  ;;  %v2345_v4 = vld [vmem:[#allocation13 + $0xa0] sm:$0xff]  ;;  %v2402_v53 = vld [vmem:[#allocation13 + $0x268] sm:$0xff] }
 0x4d1   : > { %4588 = vmatprep.subr.bf16.mxu1 %v4587_v10  ;;  %v2423_v10 = vld [vmem:[#allocation13 + $0x310] sm:$0xff] }
 0x4d2   : > { %v5893_v23 = vpop.eup %4938  ;;  %v4605_v49 = vpack.c.bf16 %v2431_v39, %v2423_v10  ;;  %4574 = vmatpush1.bf16.msra.mxu0 %v4573_v40  ;;  %v2353_v40 = vld [vmem:[#allocation13 + $0xe0] sm:$0xff]  ;;  %v2347_v10 = vld [vmem:[#allocation13 + $0xb0] sm:$0xff] }
 0x4d3   : > { %4001 = vmatmul.mubr.f32.gmra.mrb[42].mxu1 %v5893_v23  ;;  %v2355_v39 = vld [vmem:[#allocation13 + $0xf0] sm:$0xff]  ;;  %v4617_v56 = vpack.c.bf16 %v2353_v40, %v2345_v4  ;;  %v4627_v4 = vpack.c.bf16 %v2402_v53, %v2394_v60 }
 0x4d4   : > { %4590 = vmatpush1.bf16.msra.mxu1 %v4589_v2  ;;  %2606 = vmatprep.mubr.f32.mxu1 %v5271_v0  ;;  %v2440_v2 = vld [vmem:[#allocation13 + $0x398] sm:$0xff] }
 0x4d5   : > { %4592 = vmatprep.subr.bf16.mxu1 %v4591_v19  ;;  %v4575_v19 = vpack.c.bf16 %v2446_v15, %v2438_v5  ;;  %v4607_v16 = vpack.c.bf16 %v2448_v20, %v2440_v2  ;;  %v4647_v2 = vpack.c.bf16 %v2356_v31, %v2348_v1  ;;  %v2364_v20 = vld [vmem:[#allocation13 + $0x138] sm:$0xff] }
 0x4d7   : > { %4576 = vmatprep.subr.bf16.mxu0 %v4575_v19  ;;  %v2362_v19 = vld [vmem:[#allocation13 + $0x128] sm:$0xff] }
 0x4d8   : > { %4594 = vmatpush1.bf16.msra.mxu1 %v4593_v17  ;;  %v2445_v17 = vld [vmem:[#allocation13 + $0x3c0] sm:$0xff] }
 0x4d9   : > { %4596 = vmatprep.subr.bf16.mxu1 %v4595_v47  ;;  %v4577_v25 = vpack.c.bf16 %v2445_v17, %v2437_v22  ;;  %v2332_v47 = vld [vmem:[#allocation13 + $0x38] sm:$0xff]  ;;  %v4649_v17 = vpack.c.bf16 %v2355_v39, %v2347_v10  ;;  %v2403_v10 = vld [vmem:[#allocation13 + $0x270] sm:$0xff]  ;;  %v2410_v39 = vld [vmem:[#allocation13 + $0x2a8] sm:$0xff] }
 0x4da   : > { %v4643_v33 = vpack.c.bf16 %v2340_v32, %v2332_v47  ;;  %v2372_v22 = vld [vmem:[#allocation13 + $0x178] sm:$0xff] }
 0x4db   : > { %4578 = vmatpush1.bf16.msra.mxu0 %v4577_v25  ;;  %v4651_v47 = vpack.c.bf16 %v2372_v22, %v2364_v20  ;;  %v2380_v32 = vld [vmem:[#allocation13 + $0x1b8] sm:$0xff]  ;;  %v2417_v20 = vld [vmem:[#allocation13 + $0x2e0] sm:$0xff] }
 0x4dc   : > { %4598 = vmatpush1.bf16.msra.mxu1 %v4597_v35  ;;  %4612 = vmatprep.subr.bf16.mxu0 %v4611_v37  ;;  %v2378_v37 = vld [vmem:[#allocation13 + $0x1a8] sm:$0xff]  ;;  %v4655_v51 = vpack.c.bf16 %v2388_v58, %v2380_v32  ;;  %v2433_v32 = vld [vmem:[#allocation13 + $0x360] sm:$0xff] }
 0x4dd   : > { %4600 = vmatprep.subr.bf16.mxu1 %v4599_v11  ;;  %v2329_v11 = vld [vmem:[#allocation13 + $0x20] sm:$0xff] }
 0x4de   : > { %v4613_v7 = vpack.c.bf16 %v2337_v48, %v2329_v11 }
 0x4e0   : > { %4602 = vmatpush1.bf16.msra.mxu1 %v4601_v50  ;;  %v2346_v50 = vld [vmem:[#allocation13 + $0xa8] sm:$0xff] }
 0x4e1   : > { %4604 = vmatprep.subr.bf16.mxu1 %v4603_v13  ;;  %v4615_v15 = vpack.c.bf16 %v2354_v63, %v2346_v50  ;;  %v2396_v50 = vld [vmem:[#allocation13 + $0x238] sm:$0xff] }
 0x4e2   : > { %v2404_v63 = vld [vmem:[#allocation13 + $0x278] sm:$0xff] }
 0x4e3   : > { %v4659_v40 = vpack.c.bf16 %v2404_v63, %v2396_v50  ;;  %v2443_v63 = vld [vmem:[#allocation13 + $0x3b0] sm:$0xff] }
 0x4e4   : > { %4606 = vmatpush1.bf16.msra.mxu1 %v4605_v49 }
 0x4e5   : > { %4608 = vmatprep.subr.bf16.mxu1 %v4607_v16  ;;  %v2361_v16 = vld [vmem:[#allocation13 + $0x120] sm:$0xff] }
 0x4e8   : > { %4610 = vmatpush1.bf16.msra.mxu1 %v4609_v29  ;;  %v2371_v29 = vld [vmem:[#allocation13 + $0x170] sm:$0xff] }
 0x4e9   : > { %4644 = vmatprep.subr.bf16.mxu1 %v4643_v33 }
 0x59e   : > { %v3999_v35 = vpop.f32.mrb[40].mxu1 }
 0x59f   : > { %v2290_v36 = vpop.f32.mrb[41].mxu1  ;;  %v2310_v61 = vmax.f32 %v3999_v35, 1e-30 }
 0x5a0   : > { %v2309_v41 = vmax.f32 %v2290_v36, 1e-30  ;;  %v4621_v36 = vpack.c.bf16 %v2369_v26, %v2361_v16  ;;  %v2419_v16 = vld [vmem:[#allocation13 + $0x2f0] sm:$0xff]  ;;  %v2426_v26 = vld [vmem:[#allocation13 + $0x328] sm:$0xff] }
 0x5a2   : > { %4940 = vrcp.f32 %v2309_v41  ;;  %v2377_v41 = vld [vmem:[#allocation13 + $0x1a0] sm:$0xff] }
 0x5a3   : > { %4942 = vrcp.f32 %v2310_v61  ;;  %v4653_v61 = vpack.c.bf16 %v2371_v29, %v2363_v27  ;;  %v2434_v27 = vld [vmem:[#allocation13 + $0x368] sm:$0xff]  ;;  %v2428_v29 = vld [vmem:[#allocation13 + $0x338] sm:$0xff] }
 0x5a4   : > { %v4635_v58 = vpack.c.bf16 %v2434_v27, %v2426_v26  ;;  %v2844_v26 = vld [vmem:[%s6488_s9 + $0x18] sm:$0xff] }
 0x5a6   : > { %v4002_v42 = vpop.f32.mrb[42].mxu1 }
 0x5a7   : > { %v2300_v43 = vpop.f32.mrb[43].mxu1  ;;  %v2312_v44 = vmax.f32 %v4002_v42, 1e-30  ;;  %v2385_v42 = vld [vmem:[#allocation13 + $0x1e0] sm:$0xff] }
 0x5a8   : > { %v2311_v45 = vmax.f32 %v2300_v43, 1e-30  ;;  %v4625_v1 = vpack.c.bf16 %v2385_v42, %v2377_v41  ;;  %v2442_v41 = vld [vmem:[#allocation13 + $0x3a8] sm:$0xff] }
 0x5a9   : > { %v2450_v42 = vld [vmem:[#allocation13 + $0x3e8] sm:$0xff] }
 0x5aa   : > { %4944 = vrcp.f32 %v2311_v45  ;;  %v2387_v45 = vld [vmem:[#allocation13 + $0x1f0] sm:$0xff]  ;;  %v4639_v53 = vpack.c.bf16 %v2450_v42, %v2442_v41 }
 0x5ab   : > { %4946 = vrcp.f32 %v2312_v44  ;;  %v2379_v44 = vld [vmem:[#allocation13 + $0x1b0] sm:$0xff] }
 0x5ac   : > { %v4941_v6 = vpop.eup %4940  ;;  %v4657_v31 = vpack.c.bf16 %v2387_v45, %v2379_v44  ;;  %v2444_v44 = vld [vmem:[#allocation13 + $0x3b8] sm:$0xff]  ;;  %v2877_v42 = vld [vmem:[%s6488_s9 + $0x120] sm:$0xff] }
 0x5ad   : > { %v5898_v13 = vmul.f32 %v4941_v6, %v5884_v21  ;;  %v4943_v49 = vpop.eup %4942  ;;  %v2370_v21 = vld [vmem:[#allocation13 + $0x168] sm:$0xff]  ;;  %v2393_v6 = vld [vmem:[#allocation13 + $0x220] sm:$0xff]  ;;  %v2452_v45 = vld [vmem:[#allocation13 + $0x3f8] sm:$0xff] }
 0x5ae   : > { %v5915_v25 = vmul.f32 %v4943_v49, %v5887_v55  ;;  %v4619_v24 = vpack.c.bf16 %v2370_v21, %v2362_v19  ;;  %v2386_v55 = vld [vmem:[#allocation13 + $0x1e8] sm:$0xff]  ;;  %v4661_v19 = vpack.c.bf16 %v2403_v10, %v2395_v28  ;;  %v2409_v21 = vld [vmem:[#allocation13 + $0x2a0] sm:$0xff]  ;;  %v4671_v50 = vpack.c.bf16 %v2452_v45, %v2444_v44  ;;  %v2878_v44 = vld [vmem:[%s6488_s9 + $0x128] sm:$0xff] }
 0x5af   : > { %3514 = vmatmul.mubr.msk.f32.vlgmr.msra.gmra.mrb[56].mxu0 %vm5902_vm5, %v5898_v13  ;;  %3522 = vmatmul.mubr.msk.f32.vlgmr.msra.gmra.mrb[44].mxu1 %vm5902_vm5, %v5898_v13  ;;  %v4623_v48 = vpack.c.bf16 %v2386_v55, %v2378_v37  ;;  %v2418_v49 = vld [vmem:[#allocation13 + $0x2e8] sm:$0xff]  ;;  %v2425_v55 = vld [vmem:[#allocation13 + $0x320] sm:$0xff] }
 0x5b0   : > { %4614 = vmatpush1.bf16.msra.mxu0 %v4613_v7  ;;  %4646 = vmatpush1.bf16.msra.mxu1 %v4645_v18  ;;  %v2401_v7 = vld [vmem:[#allocation13 + $0x260] sm:$0xff]  ;;  %v4631_v22 = vpack.c.bf16 %v2418_v49, %v2410_v39  ;;  %v4637_v60 = vpack.c.bf16 %v2433_v32, %v2425_v55  ;;  %v2841_v49 = vld [vmem:[%s6488_s9] sm:$0xff]  ;;  %v2862_v55 = vld [vmem:[%s6488_s9 + $0xa8] sm:$0xff] }
 0x5b1   : > { %2523 = vmatprep.mubr.f32.mxu0 %v5271_v0  ;;  %2612 = vmatprep.mubr.f32.mxu1 %v5271_v0  ;;  %v2893_v32 = vld [vmem:[%s6488_s9 + $0x1a0] sm:$0xff]  ;;  %v2863_v45 = vld [vmem:[%s6488_s9 + $0xb0] sm:$0xff] }
 0x5b2   : > { %4616 = vmatprep.subr.bf16.mxu0 %v4615_v15  ;;  %4648 = vmatprep.subr.bf16.mxu1 %v4647_v2  ;;  %v2412_v15 = vld [vmem:[#allocation13 + $0x2b8] sm:$0xff] }
 0x5b3   : > { %3516 = vmatmul.mubr.msk.f32.gmra.mrb[58].mxu0 %vm5919_vm6, %v5915_v25  ;;  %3524 = vmatmul.mubr.msk.f32.gmra.mrb[46].mxu1 %vm5919_vm6, %v5915_v25  ;;  %v2420_v2 = vld [vmem:[#allocation13 + $0x2f8] sm:$0xff] }
 0x5b4   : > { %v4945_v33 = vpop.eup %4944  ;;  %4618 = vmatpush1.bf16.msra.mxu0 %v4617_v56  ;;  %4650 = vmatpush1.bf16.msra.mxu1 %v4649_v17  ;;  %v4663_v56 = vpack.c.bf16 %v2420_v2, %v2412_v15  ;;  %v2411_v17 = vld [vmem:[#allocation13 + $0x2b0] sm:$0xff] }
 0x5b5   : > { %2529 = vmatprep.mubr.f32.mxu0 %v5271_v0  ;;  %2618 = vmatprep.mubr.f32.mxu1 %v5271_v0  ;;  %v5938_v43 = vmul.f32 %v4945_v33, %v5890_v14  ;;  %v4947_v11 = vpop.eup %4946  ;;  %v4665_v37 = vpack.c.bf16 %v2419_v16, %v2411_v17  ;;  %v2842_v15 = vld [vmem:[%s6488_s9 + $0x8] sm:$0xff]  ;;  %v2873_v2 = vld [vmem:[%s6488_s9 + $0x100] sm:$0xff]  ;;  %v2843_v16 = vld [vmem:[%s6488_s9 + $0x10] sm:$0xff] }
 0x5b6   : > { %4620 = vmatprep.subr.bf16.mxu0 %v4619_v24  ;;  %4652 = vmatprep.subr.bf16.mxu1 %v4651_v47  ;;  %v5955_v18 = vmul.f32 %v4947_v11, %v5893_v23  ;;  %v4629_v23 = vpack.c.bf16 %v2401_v7, %v2393_v6  ;;  %v2436_v24 = vld [vmem:[#allocation13 + $0x378] sm:$0xff]  ;;  %v4633_v47 = vpack.c.bf16 %v2417_v20, %v2409_v21  ;;  %v2889_v7 = vld [vmem:[%s6488_s9 + $0x180] sm:$0xff]  ;;  %v2860_v21 = vld [vmem:[%s6488_s9 + $0x98] sm:$0xff] }
 0x5b7   : > { %3518 = vmatmul.mubr.msk.f32.gmra.mrb[60].mxu0 %vm5931_vm7, %v5938_v43  ;;  %3526 = vmatmul.mubr.msk.f32.gmra.mrb[48].mxu1 %vm5931_vm7, %v5938_v43  ;;  %v4667_v33 = vpack.c.bf16 %v2436_v24, %v2428_v29  ;;  %v2858_v6 = vld [vmem:[%s6488_s9 + $0x88] sm:$0xff]  ;;  %v2891_v20 = vld [vmem:[%s6488_s9 + $0x190] sm:$0xff]  ;;  %v4681_v5 = vpack.c.bf16 %v2844_v26, %v2843_v16  ;;  %v2884_v26 = vld [vmem:[%s6488_s9 + $0x158] sm:$0xff] }
 0x5b8   : > { %4622 = vmatpush1.bf16.msra.mxu0 %v4621_v36  ;;  %4654 = vmatpush1.bf16.msra.mxu1 %v4653_v61  ;;  %v2427_v36 = vld [vmem:[#allocation13 + $0x330] sm:$0xff]  ;;  %v2875_v24 = vld [vmem:[%s6488_s9 + $0x110] sm:$0xff] }
 0x5b9   : > { %2535 = vmatprep.mubr.f32.mxu0 %v5271_v0  ;;  %2624 = vmatprep.mubr.f32.mxu1 %v5271_v0  ;;  %v2435_v61 = vld [vmem:[#allocation13 + $0x370] sm:$0xff]  ;;  %v2851_v14 = vld [vmem:[%s6488_s9 + $0x50] sm:$0xff] }
 0x5ba   : > { %4624 = vmatprep.subr.bf16.mxu0 %v4623_v48  ;;  %4656 = vmatprep.subr.bf16.mxu1 %v4655_v51  ;;  %v4669_v11 = vpack.c.bf16 %v2435_v61, %v2427_v36  ;;  %v2441_v48 = vld [vmem:[#allocation13 + $0x3a0] sm:$0xff]  ;;  %v2846_v36 = vld [vmem:[%s6488_s9 + $0x28] sm:$0xff] }
 0x5bb   : > { %3520 = vmatmul.mubr.msk.f32.gmra.mrb[62].mxu0 %vm5948_vm8, %v5955_v18  ;;  %3528 = vmatmul.mubr.msk.f32.gmra.mrb[50].mxu1 %vm5948_vm8, %v5955_v18  ;;  %v2449_v51 = vld [vmem:[#allocation13 + $0x3e0] sm:$0xff] }
 0x5bc   : > { %4626 = vmatpush1.bf16.msra.mxu0 %v4625_v1  ;;  %4658 = vmatpush1.bf16.msra.mxu1 %v4657_v31  ;;  %v2451_v1 = vld [vmem:[#allocation13 + $0x3f0] sm:$0xff]  ;;  %v2883_v16 = vld [vmem:[%s6488_s9 + $0x150] sm:$0xff] }
 0x5bd   : > { %4628 = vmatprep.subr.bf16.mxu0 %v4627_v4  ;;  %4660 = vmatprep.subr.bf16.mxu1 %v4659_v40  ;;  %v2857_v31 = vld [vmem:[%s6488_s9 + $0x80] sm:$0xff]  ;;  %v2890_v4 = vld [vmem:[%s6488_s9 + $0x188] sm:$0xff]  ;;  %v4641_v40 = vpack.c.bf16 %v2449_v51, %v2441_v48  ;;  %v4673_v28 = vpack.c.bf16 %v2451_v1, %v2443_v63  ;;  %v2896_v48 = vld [vmem:[%s6488_s9 + $0x1b8] sm:$0xff] }
 0x5be   : > { %2695 = vmatprep.mubr.f32.mxu0 %v5271_v0  ;;  %2784 = vmatprep.mubr.f32.mxu1 %v5271_v0  ;;  %v4675_v10 = vpack.c.bf16 %v2858_v6, %v2857_v31  ;;  %v4707_v39 = vpack.c.bf16 %v2890_v4, %v2889_v7  ;;  %v2847_v51 = vld [vmem:[%s6488_s9 + $0x30] sm:$0xff]  ;;  %v2880_v31 = vld [vmem:[%s6488_s9 + $0x138] sm:$0xff]  ;;  %v2865_v6 = vld [vmem:[%s6488_s9 + $0xc0] sm:$0xff] }
 0x5bf   : > { %v2879_v1 = vld [vmem:[%s6488_s9 + $0x130] sm:$0xff]  ;;  %v2866_v7 = vld [vmem:[%s6488_s9 + $0xc8] sm:$0xff]  ;;  %v2897_v4 = vld [vmem:[%s6488_s9 + $0x1c0] sm:$0xff] }
 0x5c0   : > { %4630 = vmatpush1.bf16.msra.mxu0 %v4629_v23  ;;  %4662 = vmatpush1.bf16.msra.mxu1 %v4661_v19  ;;  %v2874_v23 = vld [vmem:[%s6488_s9 + $0x108] sm:$0xff]  ;;  %v2859_v19 = vld [vmem:[%s6488_s9 + $0x90] sm:$0xff] }
 0x5c1   : > { %4632 = vmatprep.subr.bf16.mxu0 %v4631_v22  ;;  %4664 = vmatprep.subr.bf16.mxu1 %v4663_v56  ;;  %v2892_v22 = vld [vmem:[%s6488_s9 + $0x198] sm:$0xff]  ;;  %v4677_v56 = vpack.c.bf16 %v2842_v15, %v2841_v49  ;;  %v4709_v17 = vpack.c.bf16 %v2874_v23, %v2873_v2  ;;  %v4679_v27 = vpack.c.bf16 %v2860_v21, %v2859_v19  ;;  %v2882_v15 = vld [vmem:[%s6488_s9 + $0x148] sm:$0xff]  ;;  %v2867_v2 = vld [vmem:[%s6488_s9 + $0xd0] sm:$0xff] }
 0x5c2   : > { %v4711_v29 = vpack.c.bf16 %v2892_v22, %v2891_v20  ;;  %v2868_v23 = vld [vmem:[%s6488_s9 + $0xd8] sm:$0xff]  ;;  %v2899_v19 = vld [vmem:[%s6488_s9 + $0x1d0] sm:$0xff] }
 0x5c3   : > { %v2900_v21 = vld [vmem:[%s6488_s9 + $0x1d8] sm:$0xff] }
 0x5c4   : > { %4634 = vmatpush1.bf16.msra.mxu0 %v4633_v47  ;;  %4666 = vmatpush1.bf16.msra.mxu1 %v4665_v37  ;;  %v2876_v47 = vld [vmem:[%s6488_s9 + $0x118] sm:$0xff]  ;;  %v2861_v37 = vld [vmem:[%s6488_s9 + $0xa0] sm:$0xff] }
 0x5c5   : > { %4636 = vmatprep.subr.bf16.mxu0 %v4635_v58  ;;  %4668 = vmatprep.subr.bf16.mxu1 %v4667_v33  ;;  %v2894_v58 = vld [vmem:[%s6488_s9 + $0x1a8] sm:$0xff]  ;;  %v2845_v33 = vld [vmem:[%s6488_s9 + $0x20] sm:$0xff]  ;;  %v4683_v61 = vpack.c.bf16 %v2862_v55, %v2861_v37  ;;  %v4729_v55 = vpack.c.bf16 %v2884_v26, %v2883_v16  ;;  %v2907_v16 = vld [vmem:[%s6488_s9 + $0x210] sm:$0xff] }
 0x5c6   : > { %v4715_v41 = vpack.c.bf16 %v2894_v58, %v2893_v32  ;;  %v4685_v30 = vpack.c.bf16 %v2846_v36, %v2845_v33  ;;  %v2853_v32 = vld [vmem:[%s6488_s9 + $0x60] sm:$0xff]  ;;  %v2886_v36 = vld [vmem:[%s6488_s9 + $0x168] sm:$0xff]  ;;  %v2908_v26 = vld [vmem:[%s6488_s9 + $0x218] sm:$0xff] }
 0x5c7   : > { %v2885_v33 = vld [vmem:[%s6488_s9 + $0x160] sm:$0xff] }
 0x5c8   : > { %4638 = vmatpush1.bf16.msra.mxu0 %v4637_v60  ;;  %4670 = vmatpush1.bf16.msra.mxu1 %v4669_v11  ;;  %v2864_v60 = vld [vmem:[%s6488_s9 + $0xb8] sm:$0xff]  ;;  %v2895_v11 = vld [vmem:[%s6488_s9 + $0x1b0] sm:$0xff] }
 0x5c9   : > { %4640 = vmatprep.subr.bf16.mxu0 %v4639_v53  ;;  %4672 = vmatprep.subr.bf16.mxu1 %v4671_v50  ;;  %v2848_v53 = vld [vmem:[%s6488_s9 + $0x38] sm:$0xff]  ;;  %v4687_v50 = vpack.c.bf16 %v2864_v60, %v2863_v45  ;;  %v4719_v63 = vpack.c.bf16 %v2896_v48, %v2895_v11  ;;  %v2903_v45 = vld [vmem:[%s6488_s9 + $0x1f0] sm:$0xff] }
 0x5ca   : > { %v4689_v35 = vpack.c.bf16 %v2848_v53, %v2847_v51  ;;  %v2904_v11 = vld [vmem:[%s6488_s9 + $0x1f8] sm:$0xff]  ;;  %v2855_v48 = vld [vmem:[%s6488_s9 + $0x70] sm:$0xff] }
 0x5cb   : > { %v2887_v53 = vld [vmem:[%s6488_s9 + $0x170] sm:$0xff] }
 0x5cc   : > { %4642 = vmatpush1.bf16.msra.mxu0 %v4641_v40  ;;  %4674 = vmatpush1.bf16.msra.mxu1 %v4673_v28  ;;  %v2898_v40 = vld [vmem:[%s6488_s9 + $0x1c8] sm:$0xff]  ;;  %v2849_v28 = vld [vmem:[%s6488_s9 + $0x40] sm:$0xff] }
 0x5cd   : > { %4676 = vmatprep.subr.bf16.mxu0 %v4675_v10  ;;  %4708 = vmatprep.subr.bf16.mxu1 %v4707_v39  ;;  %v2850_v10 = vld [vmem:[%s6488_s9 + $0x48] sm:$0xff]  ;;  %v4691_v39 = vpack.c.bf16 %v2866_v7, %v2865_v6  ;;  %v4723_v49 = vpack.c.bf16 %v2898_v40, %v2897_v4  ;;  %v2953_v6 = vld [vmem:[%s6488_s9 + $0x380] sm:$0xff] }
 0x5ce   : > { %v4693_v20 = vpack.c.bf16 %v2850_v10, %v2849_v28  ;;  %v2954_v4 = vld [vmem:[%s6488_s9 + $0x388] sm:$0xff]  ;;  %v2937_v28 = vld [vmem:[%s6488_s9 + $0x300] sm:$0xff] }
 0x5cf   : > { %3530 = vmatmul.mubr.msk.f32.vlgmr.msra.gmra.mrb[64].mxu0 %vm5902_vm5, %v5898_v13  ;;  %3538 = vmatmul.mubr.msk.f32.vlgmr.msra.gmra.mrb[52].mxu1 %vm5902_vm5, %v5898_v13  ;;  %v4713_v13 = vpack.c.bf16 %v2876_v47, %v2875_v24  ;;  %v2901_v24 = vld [vmem:[%s6488_s9 + $0x1e0] sm:$0xff]  ;;  %v2902_v47 = vld [vmem:[%s6488_s9 + $0x1e8] sm:$0xff]  ;;  %v4771_v40 = vpack.c.bf16 %v2954_v4, %v2953_v6  ;;  %v2959_v6 = vld [vmem:[%s6488_s9 + $0x3b0] sm:$0xff] }
 0x5d0   : > { %2701 = vmatprep.mubr.f32.mxu0 %v5271_v0  ;;  %2790 = vmatprep.mubr.f32.mxu1 %v5271_v0  ;;  %v2938_v10 = vld [vmem:[%s6488_s9 + $0x308] sm:$0xff] }
 0x5d1   : > { %4678 = vmatpush3.bf16.msra.mxu0 %v4677_v56  ;;  %4710 = vmatpush3.bf16.msra.mxu1 %v4709_v17  ;;  %v4695_v56 = vpack.c.bf16 %v2868_v23, %v2867_v2  ;;  %v4727_v17 = vpack.c.bf16 %v2900_v21, %v2899_v19  ;;  %v2955_v2 = vld [vmem:[%s6488_s9 + $0x390] sm:$0xff]  ;;  %v2956_v23 = vld [vmem:[%s6488_s9 + $0x398] sm:$0xff] }
 0x5d2   : > { %4680 = vmatprep.subr.bf16.mxu0 %v4679_v27  ;;  %4712 = vmatprep.subr.bf16.mxu1 %v4711_v29  ;;  %v2869_v27 = vld [vmem:[%s6488_s9 + $0xe0] sm:$0xff]  ;;  %v2870_v29 = vld [vmem:[%s6488_s9 + $0xe8] sm:$0xff] }
 0x5d3   : > { %3532 = vmatmul.mubr.msk.f32.gmra.mrb[66].mxu0 %vm5919_vm6, %v5915_v25  ;;  %3540 = vmatmul.mubr.msk.f32.gmra.mrb[54].mxu1 %vm5919_vm6, %v5915_v25  ;;  %v4717_v25 = vpack.c.bf16 %v2878_v44, %v2877_v42  ;;  %v4699_v58 = vpack.c.bf16 %v2870_v29, %v2869_v27  ;;  %v2871_v42 = vld [vmem:[%s6488_s9 + $0xf0] sm:$0xff]  ;;  %v2872_v44 = vld [vmem:[%s6488_s9 + $0xf8] sm:$0xff]  ;;  %v4775_v29 = vpack.c.bf16 %v2956_v23, %v2955_v2 }
 0x5d4   : > { %2707 = vmatprep.mubr.f32.mxu0 %v5271_v0  ;;  %2796 = vmatprep.mubr.f32.mxu1 %v5271_v0  ;;  %v4703_v60 = vpack.c.bf16 %v2872_v44, %v2871_v42  ;;  %v4745_v42 = vpack.c.bf16 %v2908_v26, %v2907_v16 }
 0x5d5   : > { %4682 = vmatpush3.bf16.msra.mxu0 %v4681_v5  ;;  %4714 = vmatpush3.bf16.msra.mxu1 %v4713_v13  ;;  %v4731_v5 = vpack.c.bf16 %v2902_v47, %v2901_v24  ;;  %v2854_v13 = vld [vmem:[%s6488_s9 + $0x68] sm:$0xff]  ;;  %v2939_v24 = vld [vmem:[%s6488_s9 + $0x310] sm:$0xff]  ;;  %v2940_v47 = vld [vmem:[%s6488_s9 + $0x318] sm:$0xff] }
 0x5d6   : > { %4684 = vmatprep.subr.bf16.mxu0 %v4683_v61  ;;  %4716 = vmatprep.subr.bf16.mxu1 %v4715_v41  ;;  %v4701_v61 = vpack.c.bf16 %v2854_v13, %v2853_v32  ;;  %v4733_v41 = vpack.c.bf16 %v2886_v36, %v2885_v33  ;;  %v2958_v13 = vld [vmem:[%s6488_s9 + $0x3a8] sm:$0xff] }
 0x5d7   : > { %3534 = vmatmul.mubr.msk.f32.gmra.mrb[68].mxu0 %vm5931_vm7, %v5938_v43  ;;  %3542 = vmatmul.mubr.msk.f32.gmra.mrb[56].mxu1 %vm5931_vm7, %v5938_v43  ;;  %v4721_v43 = vpack.c.bf16 %v2880_v31, %v2879_v1  ;;  %v2921_v1 = vld [vmem:[%s6488_s9 + $0x280] sm:$0xff]  ;;  %v2922_v31 = vld [vmem:[%s6488_s9 + $0x288] sm:$0xff] }
 0x5d8   : > { %2713 = vmatprep.mubr.f32.mxu0 %v5271_v0  ;;  %2802 = vmatprep.mubr.f32.mxu1 %v5271_v0  ;;  %v2881_v0 = vld [vmem:[%s6488_s9 + $0x140] sm:$0xff]  ;;  %v4739_v7 = vpack.c.bf16 %v2922_v31, %v2921_v1  ;;  %v2928_v31 = vld [vmem:[%s6488_s9 + $0x2b8] sm:$0xff] }
 0x5d9   : > { %4686 = vmatpush3.bf16.msra.mxu0 %v4685_v30  ;;  %4718 = vmatpush3.bf16.msra.mxu1 %v4717_v25  ;;  %v4725_v22 = vpack.c.bf16 %v2882_v15, %v2881_v0  ;;  %v2856_v30 = vld [vmem:[%s6488_s9 + $0x78] sm:$0xff]  ;;  %v4735_v25 = vpack.c.bf16 %v2904_v11, %v2903_v45  ;;  %v2909_v11 = vld [vmem:[%s6488_s9 + $0x220] sm:$0xff] }
 0x5da   : > { %4688 = vmatprep.subr.bf16.mxu0 %v4687_v50  ;;  %4720 = vmatprep.subr.bf16.mxu1 %v4719_v63  ;;  %v4705_v51 = vpack.c.bf16 %v2856_v30, %v2855_v48  ;;  %v2888_v50 = vld [vmem:[%s6488_s9 + $0x178] sm:$0xff]  ;;  %v2910_v48 = vld [vmem:[%s6488_s9 + $0x228] sm:$0xff] }
 0x5db   : > { %3536 = vmatmul.mubr.msk.f32.gmra.mrb[70].mxu0 %vm5948_vm8, %v5955_v18  ;;  %3544 = vmatmul.mubr.msk.f32.gmra.mrb[58].mxu1 %vm5948_vm8, %v5955_v18  ;;  %v2852_v18 = vld [vmem:[%s6488_s9 + $0x58] sm:$0xff]  ;;  %v4737_v63 = vpack.c.bf16 %v2888_v50, %v2887_v53  ;;  %v2942_v53 = vld [vmem:[%s6488_s9 + $0x328] sm:$0xff]  ;;  %v2927_v50 = vld [vmem:[%s6488_s9 + $0x2b0] sm:$0xff] }
 0x5dc   : > { %v4697_v37 = vpack.c.bf16 %v2852_v18, %v2851_v14  ;;  %v2924_v15 = vld [vmem:[%s6488_s9 + $0x298] sm:$0xff]  ;;  %v4751_v2 = vpack.c.bf16 %v2928_v31, %v2927_v50  ;;  %v2933_v50 = vld [vmem:[%s6488_s9 + $0x2e0] sm:$0xff]  ;;  %v2966_v31 = vld [vmem:[%s6488_s9 + $0x3e8] sm:$0xff] }
 0x5dd   : > { %4690 = vmatpush3.bf16.msra.mxu0 %v4689_v35  ;;  %4722 = vmatpush3.bf16.msra.mxu1 %v4721_v43  ;;  %v2905_v35 = vld [vmem:[%s6488_s9 + $0x200] sm:$0xff]  ;;  %v2906_v43 = vld [vmem:[%s6488_s9 + $0x208] sm:$0xff] }
 0x5de   : > { %4692 = vmatprep.subr.bf16.mxu0 %v4691_v39  ;;  %4724 = vmatprep.subr.bf16.mxu1 %v4723_v49  ;;  %v2923_v39 = vld [vmem:[%s6488_s9 + $0x290] sm:$0xff] }
 0x5df   : > { %v4743_v27 = vpack.c.bf16 %v2924_v15, %v2923_v39  ;;  %v2912_v15 = vld [vmem:[%s6488_s9 + $0x238] sm:$0xff] }
 0x5e1   : > { %4694 = vmatpush3.bf16.msra.mxu0 %v4693_v20  ;;  %4726 = vmatpush3.bf16.msra.mxu1 %v4725_v22 }
 0x5e2   : > { %4696 = vmatprep.subr.bf16.mxu0 %v4695_v56  ;;  %4728 = vmatprep.subr.bf16.mxu1 %v4727_v17  ;;  %v4741_v56 = vpack.c.bf16 %v2906_v43, %v2905_v35  ;;  %v4773_v17 = vpack.c.bf16 %v2938_v10, %v2937_v28  ;;  %v4749_v28 = vpack.c.bf16 %v2910_v48, %v2909_v11  ;;  %v2915_v11 = vld [vmem:[%s6488_s9 + $0x250] sm:$0xff]  ;;  %v2916_v48 = vld [vmem:[%s6488_s9 + $0x258] sm:$0xff] }
 0x5e5   : > { %4698 = vmatpush3.bf16.msra.mxu0 %v4697_v37  ;;  %4730 = vmatpush3.bf16.msra.mxu1 %v4729_v55  ;;  %v2925_v37 = vld [vmem:[%s6488_s9 + $0x2a0] sm:$0xff] }
 0x5e6   : > { %4700 = vmatprep.subr.bf16.mxu0 %v4699_v58  ;;  %4732 = vmatprep.subr.bf16.mxu1 %v4731_v5  ;;  %v2926_v58 = vld [vmem:[%s6488_s9 + $0x2a8] sm:$0xff]  ;;  %v2957_v5 = vld [vmem:[%s6488_s9 + $0x3a0] sm:$0xff] }
 0x5e7   : > { %v4747_v30 = vpack.c.bf16 %v2926_v58, %v2925_v37  ;;  %v2914_v58 = vld [vmem:[%s6488_s9 + $0x248] sm:$0xff] }
 0x5e9   : > { %4702 = vmatpush3.bf16.msra.mxu0 %v4701_v61  ;;  %4734 = vmatpush3.bf16.msra.mxu1 %v4733_v41 }
 0x5ea   : > { %4704 = vmatprep.subr.bf16.mxu0 %v4703_v60  ;;  %4736 = vmatprep.subr.bf16.mxu1 %v4735_v25  ;;  %v4777_v60 = vpack.c.bf16 %v2940_v47, %v2939_v24  ;;  %v4779_v25 = vpack.c.bf16 %v2958_v13, %v2957_v5 }
 0x5ed   : > { %4706 = vmatpush3.bf16.msra.mxu0 %v4705_v51  ;;  %4738 = vmatpush3.bf16.msra.mxu1 %v4737_v63  ;;  %v2941_v51 = vld [vmem:[%s6488_s9 + $0x320] sm:$0xff] }
 0x5ee   : > { %4740 = vmatprep.subr.bf16.mxu0 %v4739_v7  ;;  %4772 = vmatprep.subr.bf16.mxu1 %v4771_v40  ;;  %v2960_v7 = vld [vmem:[%s6488_s9 + $0x3b8] sm:$0xff] }
 0x5ef   : > { %v4783_v23 = vpack.c.bf16 %v2960_v7, %v2959_v6  ;;  %v4761_v6 = vpack.c.bf16 %v2916_v48, %v2915_v11 }
 0x682   : > { %v2519_v49 = vpop.f32.mrb[56].mxu0  ;;  %v2608_v0 = vpop.f32.mrb[44].mxu1 }
 0x683   : > { %v2809_v19 = vmul.f32 %v2519_v49, %v5836_v3  ;;  %v2811_v21 = vmul.f32 %v2608_v0, %v5836_v3  ;;  %v2521_v20 = vpop.f32.mrb[57].mxu0  ;;  %v2610_v22 = vpop.f32.mrb[45].mxu1  ;;  %v4781_v49 = vpack.c.bf16 %v2942_v53, %v2941_v51  ;;  %v2911_v0 = vld [vmem:[%s6488_s9 + $0x230] sm:$0xff]  ;;  %v2948_v53 = vld [vmem:[%s6488_s9 + $0x358] sm:$0xff] }
 0x684   : > { %v2810_v14 = vmul.f32 %v5815_v54, %v2521_v20  ;;  %v2812_v18 = vmul.f32 %v5815_v54, %v2610_v22  ;;  %v2929_v20 = vld [vmem:[%s6488_s9 + $0x2c0] sm:$0xff]  ;;  %v4753_v24 = vpack.c.bf16 %v2912_v15, %v2911_v0  ;;  %v2947_v51 = vld [vmem:[%s6488_s9 + $0x350] sm:$0xff]  ;;  %v2968_v15 = vld [vmem:[%s6488_s9 + $0x3f8] sm:$0xff] }
 0x685   : > { %v4793_v7 = vpack.c.bf16 %v2948_v53, %v2947_v51  ;;  %v2967_v0 = vld [vmem:[%s6488_s9 + $0x3f0] sm:$0xff] }
 0x686   : > { %v2525_v55 = vpop.f32.mrb[58].mxu0  ;;  %v2614_v32 = vpop.f32.mrb[46].mxu1  ;;  %3040 = vmatprep.mubr.f32.mxu0 %v2810_v14  ;;  %3125 = vmatprep.mubr.f32.mxu1 %v2812_v18  ;;  %v2930_v18 = vld [vmem:[%s6488_s9 + $0x2c8] sm:$0xff] }
 0x687   : > { %v2817_v33 = vmul.f32 %v2525_v55, %v5840_v38  ;;  %v2819_v36 = vmul.f32 %v2614_v32, %v5840_v38  ;;  %v2527_v61 = vpop.f32.mrb[59].mxu0  ;;  %v2616_v41 = vpop.f32.mrb[47].mxu1  ;;  %3041 = vmatmul.mubr.f32.vlgmr.msra.gmra.mrb[72].mxu0 %v2809_v19  ;;  %3126 = vmatmul.mubr.f32.vlgmr.msra.gmra.mrb[60].mxu1 %v2811_v21  ;;  %v2943_v19 = vld [vmem:[%s6488_s9 + $0x330] sm:$0xff]  ;;  %v2944_v21 = vld [vmem:[%s6488_s9 + $0x338] sm:$0xff]  ;;  %v2913_v32 = vld [vmem:[%s6488_s9 + $0x240] sm:$0xff]  ;;  %v4755_v5 = vpack.c.bf16 %v2930_v18, %v2929_v20 }
 0x688   : > { %v2818_v44 = vmul.f32 %v5817_v46, %v2527_v61  ;;  %v2820_v45 = vmul.f32 %v5817_v46, %v2616_v41  ;;  %4742 = vmatpush3.bf16.msra.mxu0 %v4741_v56  ;;  %4774 = vmatpush3.bf16.msra.mxu1 %v4773_v17  ;;  %v2961_v56 = vld [vmem:[%s6488_s9 + $0x3c0] sm:$0xff]  ;;  %v2962_v17 = vld [vmem:[%s6488_s9 + $0x3c8] sm:$0xff]  ;;  %v4785_v55 = vpack.c.bf16 %v2944_v21, %v2943_v19  ;;  %v2931_v61 = vld [vmem:[%s6488_s9 + $0x2d0] sm:$0xff] }
 0x689   : > { %4744 = vmatprep.subr.bf16.mxu0 %v4743_v27  ;;  %4776 = vmatprep.subr.bf16.mxu1 %v4775_v29  ;;  %v4787_v13 = vpack.c.bf16 %v2962_v17, %v2961_v56  ;;  %v2932_v41 = vld [vmem:[%s6488_s9 + $0x2d8] sm:$0xff]  ;;  %v2919_v19 = vld [vmem:[%s6488_s9 + $0x270] sm:$0xff]  ;;  %v4799_v20 = vpack.c.bf16 %v2968_v15, %v2967_v0 }
 0x68a   : > { %v2531_v63 = vpop.f32.mrb[60].mxu0  ;;  %v2620_v1 = vpop.f32.mrb[48].mxu1  ;;  %3045 = vmatprep.mubr.f32.mxu0 %v2818_v44  ;;  %3130 = vmatprep.mubr.f32.mxu1 %v2820_v45  ;;  %v2964_v44 = vld [vmem:[%s6488_s9 + $0x3d8] sm:$0xff]  ;;  %v4757_v45 = vpack.c.bf16 %v2914_v58, %v2913_v32 }
 0x68b   : > { %v2825_v4 = vmul.f32 %v2531_v63, %v5844_v9  ;;  %v2827_v40 = vmul.f32 %v2620_v1, %v5844_v9  ;;  %v2533_v35 = vpop.f32.mrb[61].mxu0  ;;  %v2622_v43 = vpop.f32.mrb[49].mxu1  ;;  %3046 = vmatmul.mubr.f32.gmra.mrb[74].mxu0 %v2817_v33  ;;  %3131 = vmatmul.mubr.f32.gmra.mrb[62].mxu1 %v2819_v36  ;;  %v2945_v33 = vld [vmem:[%s6488_s9 + $0x340] sm:$0xff]  ;;  %v2946_v36 = vld [vmem:[%s6488_s9 + $0x348] sm:$0xff]  ;;  %v2952_v18 = vld [vmem:[%s6488_s9 + $0x378] sm:$0xff] }
 0x68c   : > { %v2826_v10 = vmul.f32 %v5819_v52, %v2533_v35  ;;  %v2828_v39 = vmul.f32 %v5819_v52, %v2622_v43  ;;  %4746 = vmatpush3.bf16.msra.mxu0 %v4745_v42  ;;  %4778 = vmatpush3.bf16.msra.mxu1 %v4777_v60  ;;  %v2963_v42 = vld [vmem:[%s6488_s9 + $0x3d0] sm:$0xff]  ;;  %v4789_v60 = vpack.c.bf16 %v2946_v36, %v2945_v33  ;;  %v2934_v63 = vld [vmem:[%s6488_s9 + $0x2e8] sm:$0xff]  ;;  %v2965_v1 = vld [vmem:[%s6488_s9 + $0x3e0] sm:$0xff] }
 0x68d   : > { %4748 = vmatprep.subr.bf16.mxu0 %v4747_v30  ;;  %4780 = vmatprep.subr.bf16.mxu1 %v4779_v25  ;;  %v4759_v30 = vpack.c.bf16 %v2932_v41, %v2931_v61  ;;  %v4791_v25 = vpack.c.bf16 %v2964_v44, %v2963_v42  ;;  %v4763_v35 = vpack.c.bf16 %v2934_v63, %v2933_v50 }
 0x68e   : > { %v2537_v22 = vpop.f32.mrb[62].mxu0  ;;  %v2626_v14 = vpop.f32.mrb[50].mxu1  ;;  %3050 = vmatprep.mubr.f32.mxu0 %v2826_v10  ;;  %3135 = vmatprep.mubr.f32.mxu1 %v2828_v39  ;;  %v4795_v43 = vpack.c.bf16 %v2966_v31, %v2965_v1  ;;  %v2950_v10 = vld [vmem:[%s6488_s9 + $0x368] sm:$0xff]  ;;  %v2935_v39 = vld [vmem:[%s6488_s9 + $0x2f0] sm:$0xff] }
 0x68f   : > { %v2833_v16 = vmul.f32 %v2537_v22, %v5848_v12  ;;  %v2835_v26 = vmul.f32 %v2626_v14, %v5848_v12  ;;  %v2539_v27 = vpop.f32.mrb[63].mxu0  ;;  %v2628_v29 = vpop.f32.mrb[51].mxu1  ;;  %3051 = vmatmul.mubr.f32.gmra.mrb[76].mxu0 %v2825_v4  ;;  %3136 = vmatmul.mubr.f32.gmra.mrb[64].mxu1 %v2827_v40  ;;  %v2917_v4 = vld [vmem:[%s6488_s9 + $0x260] sm:$0xff]  ;;  %v2918_v40 = vld [vmem:[%s6488_s9 + $0x268] sm:$0xff]  ;;  %v2920_v22 = vld [vmem:[%s6488_s9 + $0x278] sm:$0xff] }
 0x690   : > { %v2834_v47 = vmul.f32 %v5821_v8, %v2539_v27  ;;  %v2836_v37 = vmul.f32 %v5821_v8, %v2628_v29  ;;  %4750 = vmatpush3.bf16.msra.mxu0 %v4749_v28  ;;  %4782 = vmatpush3.bf16.msra.mxu1 %v4781_v49  ;;  %v2949_v28 = vld [vmem:[%s6488_s9 + $0x360] sm:$0xff]  ;;  %v2936_v49 = vld [vmem:[%s6488_s9 + $0x2f8] sm:$0xff]  ;;  %v2951_v14 = vld [vmem:[%s6488_s9 + $0x370] sm:$0xff]  ;;  %v4769_v56 = vpack.c.bf16 %v2920_v22, %v2919_v19 }
 0x691   : > { %4752 = vmatprep.subr.bf16.mxu0 %v4751_v2  ;;  %4784 = vmatprep.subr.bf16.mxu1 %v4783_v23  ;;  %v4765_v2 = vpack.c.bf16 %v2918_v40, %v2917_v4  ;;  %v4797_v23 = vpack.c.bf16 %v2950_v10, %v2949_v28  ;;  %v4767_v21 = vpack.c.bf16 %v2936_v49, %v2935_v39  ;;  %v3545_v1 = vld [vmem:[#allocation15] ss:$0 sm:$0xff] }
 0x692   : > { %3055 = vmatprep.mubr.f32.mxu0 %v2834_v47  ;;  %3140 = vmatprep.mubr.f32.mxu1 %v2836_v37  ;;  %v4801_v17 = vpack.c.bf16 %v2952_v18, %v2951_v14 }
 0x693   : > { %3056 = vmatmul.mubr.f32.gmra.mrb[78].mxu0 %v2833_v16  ;;  %3141 = vmatmul.mubr.f32.gmra.mrb[66].mxu1 %v2835_v26 }
 0x694   : > { %4754 = vmatpush3.bf16.msra.mxu0 %v4753_v24  ;;  %4786 = vmatpush3.bf16.msra.mxu1 %v4785_v55 }
 0x695   : > { %4756 = vmatprep.subr.bf16.mxu0 %v4755_v5  ;;  %4788 = vmatprep.subr.bf16.mxu1 %v4787_v13 }
 0x698   : > { %4758 = vmatpush3.bf16.msra.mxu0 %v4757_v45  ;;  %4790 = vmatpush3.bf16.msra.mxu1 %v4789_v60 }
 0x699   : > { %4760 = vmatprep.subr.bf16.mxu0 %v4759_v30  ;;  %4792 = vmatprep.subr.bf16.mxu1 %v4791_v25 }
 0x69c   : > { %4762 = vmatpush3.bf16.msra.mxu0 %v4761_v6  ;;  %4794 = vmatpush3.bf16.msra.mxu1 %v4793_v7 }
 0x69d   : > { %4764 = vmatprep.subr.bf16.mxu0 %v4763_v35  ;;  %4796 = vmatprep.subr.bf16.mxu1 %v4795_v43 }
 0x6a0   : > { %4766 = vmatpush3.bf16.msra.mxu0 %v4765_v2  ;;  %4798 = vmatpush3.bf16.msra.mxu1 %v4797_v23 }
 0x6a1   : > { %4768 = vmatprep.subr.bf16.mxu0 %v4767_v21  ;;  %4800 = vmatprep.subr.bf16.mxu1 %v4799_v20 }
 0x6a2   : > { %v2697_v16 = vpop.f32.mrb[64].mxu0  ;;  %v2786_v26 = vpop.f32.mrb[52].mxu1 }
 0x6a3   : > { %v2813_v27 = vmul.f32 %v2697_v16, %v5836_v3  ;;  %v2815_v29 = vmul.f32 %v2786_v26, %v5836_v3  ;;  %v2699_v24 = vpop.f32.mrb[65].mxu0  ;;  %v2788_v47 = vpop.f32.mrb[53].mxu1 }
 0x6a4   : > { %v2814_v37 = vmul.f32 %v5815_v54, %v2699_v24  ;;  %v2816_v55 = vmul.f32 %v5815_v54, %v2788_v47  ;;  %4770 = vmatpush3.bf16.msra.mxu0 %v4769_v56  ;;  %4802 = vmatpush3.bf16.msra.mxu1 %v4801_v17 }
 0x6a6   : > { %v2703_v32 = vpop.f32.mrb[66].mxu0  ;;  %v2792_v58 = vpop.f32.mrb[54].mxu1  ;;  %3210 = vmatprep.mubr.f32.mxu0 %v2814_v37  ;;  %3295 = vmatprep.mubr.f32.mxu1 %v2816_v55 }
 0x6a7   : > { %v2821_v5 = vmul.f32 %v2703_v32, %v5840_v38  ;;  %v2823_v13 = vmul.f32 %v2792_v58, %v5840_v38  ;;  %v2705_v33 = vpop.f32.mrb[67].mxu0  ;;  %v2794_v36 = vpop.f32.mrb[55].mxu1  ;;  %3211 = vmatmul.mubr.f32.vlgmr.msra.gmra.mrb[80].mxu0 %v2813_v27  ;;  %3296 = vmatmul.mubr.f32.vlgmr.msra.gmra.mrb[68].mxu1 %v2815_v29 }
 0x6a8   : > { %v2822_v3 = vmul.f32 %v5817_v46, %v2705_v33  ;;  %v2824_v61 = vmul.f32 %v5817_v46, %v2794_v36 }
 0x6aa   : > { %v2709_v41 = vpop.f32.mrb[68].mxu0  ;;  %v2798_v54 = vpop.f32.mrb[56].mxu1  ;;  %3215 = vmatprep.mubr.f32.mxu0 %v2822_v3  ;;  %3300 = vmatprep.mubr.f32.mxu1 %v2824_v61 }
 0x6ab   : > { %v2829_v42 = vmul.f32 %v2709_v41, %v5844_v9  ;;  %v2831_v44 = vmul.f32 %v2798_v54, %v5844_v9  ;;  %v2711_v45 = vpop.f32.mrb[69].mxu0  ;;  %v2800_v60 = vpop.f32.mrb[57].mxu1  ;;  %3216 = vmatmul.mubr.f32.gmra.mrb[82].mxu0 %v2821_v5  ;;  %3301 = vmatmul.mubr.f32.gmra.mrb[70].mxu1 %v2823_v13 }
 0x6ac   : > { %v2830_v38 = vmul.f32 %v5819_v52, %v2711_v45  ;;  %v2832_v11 = vmul.f32 %v5819_v52, %v2800_v60 }
 0x6ae   : > { %v2715_v48 = vpop.f32.mrb[70].mxu0  ;;  %v2804_v30 = vpop.f32.mrb[58].mxu1  ;;  %3220 = vmatprep.mubr.f32.mxu0 %v2830_v38  ;;  %3305 = vmatprep.mubr.f32.mxu1 %v2832_v11 }
 0x6af   : > { %v2837_v46 = vmul.f32 %v2715_v48, %v5848_v12  ;;  %v2839_v25 = vmul.f32 %v2804_v30, %v5848_v12  ;;  %v2717_v51 = vpop.f32.mrb[71].mxu0  ;;  %v2806_v53 = vpop.f32.mrb[59].mxu1  ;;  %3221 = vmatmul.mubr.f32.gmra.mrb[84].mxu0 %v2829_v42  ;;  %3306 = vmatmul.mubr.f32.gmra.mrb[72].mxu1 %v2831_v44 }
 0x6b0   : > { %v2838_v9 = vmul.f32 %v5821_v8, %v2717_v51  ;;  %v2840_v50 = vmul.f32 %v5821_v8, %v2806_v53 }
 0x6b2   : > { %3225 = vmatprep.mubr.f32.mxu0 %v2838_v9  ;;  %3310 = vmatprep.mubr.f32.mxu1 %v2840_v50 }
 0x6b3   : > { %3226 = vmatmul.mubr.f32.gmra.mrb[86].mxu0 %v2837_v46  ;;  %3311 = vmatmul.mubr.f32.gmra.mrb[74].mxu1 %v2839_v25 }
 0x75a   : > { %v3821_v52 = vpop.f32.mrb[72].mxu0  ;;  %v3865_v63 = vpop.f32.mrb[60].mxu1 }
 0x75b   : > { %v3822_v31 = vpop.f32.mrb[73].mxu0  ;;  %v3866_v6 = vpop.f32.mrb[61].mxu1 }
 0x75c   : > { %v3823_v7 = vadd.f32 %v3822_v31, %v3821_v52  ;;  %v3867_v4 = vadd.f32 %v3866_v6, %v3865_v63 }
 0x75e   : > { %v3043_v12 = vadd.f32 %v3823_v7, %v3545_v1  ;;  %v3824_v40 = vpop.f32.mrb[74].mxu0  ;;  %v3868_v35 = vpop.f32.mrb[62].mxu1 }
 0x75f   : > { %v3825_v43 = vpop.f32.mrb[75].mxu0  ;;  %v3869_v28 = vpop.f32.mrb[63].mxu1 }
 0x760   : > { %v3128_v10 = vadd.f32 %v3867_v4, %v3043_v12  ;;  %v3826_v39 = vadd.f32 %v3825_v43, %v3824_v40  ;;  %v3870_v49 = vadd.f32 %v3869_v28, %v3868_v35 }
 0x762   : > { %v3048_v8 = vadd.f32 %v3826_v39, %v3545_v1  ;;  %v3827_v0 = vpop.f32.mrb[76].mxu0  ;;  %v3871_v15 = vpop.f32.mrb[64].mxu1 }
 0x763   : > { %v3828_v2 = vpop.f32.mrb[77].mxu0  ;;  %v3872_v23 = vpop.f32.mrb[65].mxu1 }
 0x764   : > { %v3133_v19 = vadd.f32 %v3870_v49, %v3048_v8  ;;  %v3829_v21 = vadd.f32 %v3828_v2, %v3827_v0  ;;  %v3873_v20 = vadd.f32 %v3872_v23, %v3871_v15 }
 0x766   : > { %v3053_v22 = vadd.f32 %v3829_v21, %v3545_v1  ;;  %v3830_v14 = vpop.f32.mrb[78].mxu0  ;;  %v3874_v18 = vpop.f32.mrb[66].mxu1 }
 0x767   : > { %v3831_v56 = vpop.f32.mrb[79].mxu0  ;;  %v3875_v17 = vpop.f32.mrb[67].mxu1 }
 0x768   : > { %v3138_v16 = vadd.f32 %v3873_v20, %v3053_v22  ;;  %v3832_v26 = vadd.f32 %v3831_v56, %v3830_v14  ;;  %v3876_v27 = vadd.f32 %v3875_v17, %v3874_v18 }
 0x76a   : > { %v3058_v29 = vadd.f32 %v3832_v26, %v3545_v1 }
 0x76c   : > { %v3143_v24 = vadd.f32 %v3876_v27, %v3058_v29 }
 0x77a   : > { %v3909_v47 = vpop.f32.mrb[80].mxu0  ;;  %v3953_v37 = vpop.f32.mrb[68].mxu1 }
 0x77b   : > { %v3910_v55 = vpop.f32.mrb[81].mxu0  ;;  %v3954_v32 = vpop.f32.mrb[69].mxu1 }
 0x77c   : > { %v3911_v58 = vadd.f32 %v3910_v55, %v3909_v47  ;;  %v3955_v5 = vadd.f32 %v3954_v32, %v3953_v37 }
 0x77e   : > { %v3213_v13 = vadd.f32 %v3911_v58, %v3128_v10  ;;  %v3912_v33 = vpop.f32.mrb[82].mxu0  ;;  %v3956_v36 = vpop.f32.mrb[70].mxu1 }
 0x77f   : > { %v3913_v3 = vpop.f32.mrb[83].mxu0  ;;  %v3957_v61 = vpop.f32.mrb[71].mxu1 }
 0x780   : > { %v3298_v41 = vadd.f32 %v3955_v5, %v3213_v13  ;;  %v3914_v54 = vadd.f32 %v3913_v3, %v3912_v33  ;;  %v3958_v42 = vadd.f32 %v3957_v61, %v3956_v36 }
 0x782   : > { %v3316_v44 = vsel %vm1680_vm10, 0.0, %v3298_v41  ;;  %v3218_v45 = vadd.f32 %v3914_v54, %v3133_v19  ;;  %v3915_v60 = vpop.f32.mrb[84].mxu0  ;;  %v3959_v38 = vpop.f32.mrb[72].mxu1 }
 0x783   : > { %3321 = vst.msk [vmem:[%s6416_s14] sm:$0xff] %vm3320_vm9, %v3316_v44  ;;  %v3916_v11 = vpop.f32.mrb[85].mxu0  ;;  %v3960_v48 = vpop.f32.mrb[73].mxu1 }
 0x784   : > { %v3303_v30 = vadd.f32 %v3958_v42, %v3218_v45  ;;  %v3917_v46 = vadd.f32 %v3916_v11, %v3915_v60  ;;  %v3961_v25 = vadd.f32 %v3960_v48, %v3959_v38 }
 0x786   : > { %v3317_v51 = vsel %vm1681_vm11, 0.0, %v3303_v30  ;;  %v3223_v53 = vadd.f32 %v3917_v46, %v3138_v16  ;;  %v3918_v9 = vpop.f32.mrb[86].mxu0  ;;  %v3962_v57 = vpop.f32.mrb[74].mxu1 }
 0x787   : > { %3322 = vst.msk [vmem:[%s6416_s14 + $0x8] sm:$0xff] %vm3320_vm9, %v3317_v51  ;;  %v3919_v50 = vpop.f32.mrb[87].mxu0  ;;  %v3963_v52 = vpop.f32.mrb[75].mxu1 }
 0x788   : > { %v3308_v63 = vadd.f32 %v3961_v25, %v3223_v53  ;;  %v3920_v1 = vadd.f32 %v3919_v50, %v3918_v9  ;;  %v3964_v31 = vadd.f32 %v3963_v52, %v3962_v57 }
 0x78a   : > { %v3318_v6 = vsel %vm1682_vm12, 0.0, %v3308_v63  ;;  %v3228_v7 = vadd.f32 %v3920_v1, %v3143_v24 }
 0x78b   : > { %3323 = vst.msk [vmem:[%s6416_s14 + $0x10] sm:$0xff] %vm3320_vm9, %v3318_v6 }
 0x78c   : > { %v3313_v4 = vadd.f32 %v3964_v31, %v3228_v7 }
 0x78e   : > { %v3319_v59 = vsel %vm1683_vm13, 0.0, %v3313_v4 }
 0x78f   : > { %3324 = vst.msk [vmem:[%s6416_s14 + $0x18] sm:$0xff] %vm3320_vm9, %v3319_v59 }
 0x790 PF: > { %p25_p5 = scmp.ge.s32.totalorder %s5562_s21, 4   ;;  %s6490_s17 = smov %s5244_s18 }
 0x791   : > { %s6491_s18 = smov %s5248_s19  ;;  %s6492_s19 = smov %s5574_s15 }
 0x792   : > { %s6493_s20 = smov %s5562_s21  ;;  %27 = sbr.rel (!%p25_p5) target bundleno = 11 (0xb), region = 139 }
 0x799   :  { %3347 = vsyncpa [#allocation3], 1 }
 0x79a   :  { %3349 = vsyncpa [#allocation3 + $0x1], 1 }
 0x79b   :  { %3350 = vsyncpa [#allocation5], 1 }
 0x79c   :  { %3351 = vsyncpa [#allocation8], 1 }
 0x79d   :  { %3352 = vsyncpa [#allocation11], 1 }
 0x79e   :  { %3353 = vsyncpa [#allocation14], 1 }

</bundles_post_ra>
